<compile_context>
chip_gen: v5e
topology: v5e:2x2
jax: 0.10.0
libtpu: 0.0.40
codegen_flags: <defaults>
</compile_context>

<pallas_src>
import functools

import jax
import jax.numpy as jnp
import numpy as np
from jax.experimental import pallas as pl
from jax.experimental.pallas import tpu as pltpu

BN_EPS = 0.8          # nn.BatchNorm1d(out_feat, 0.8) -> eps = 0.8
LRELU_SLOPE = 0.2     # nn.LeakyReLU(0.2)


# ----------------------------------------------------------------------------
# Kernel: full MLP (6 Linear + 4 BatchNorm + LeakyReLU + Tanh) + fused heads.
# ----------------------------------------------------------------------------
def _encoder_kernel(
    x_ref,
    w1_ref, b1_ref,
    w2_ref, g2_ref, be2_ref,
    w3_ref, g3_ref, be3_ref,
    w4_ref, g4_ref, be4_ref,
    w5_ref, g5_ref, be5_ref,
    w6_ref, b6_ref,
    wh_ref, bh_ref,
    out_ref,
):
    def matmul(h, w_ref):
        # bf16 activations x bf16 weights on the MXU, f32 accumulation.
        return jnp.dot(h.astype(jnp.bfloat16), w_ref[...],
                       preferred_element_type=jnp.float32)

    def lrelu(h):
        # For slope in (0,1): max(h, slope*h) == LeakyReLU(h).  Single VALU op.
        return jnp.maximum(h, LRELU_SLOPE * h)

    def bn_lrelu(h, g_ref, be_ref):
        # Training-mode BN: batch mean, biased variance, eps = 0.8.  Stats in
        # f32; affine folded into one (1, N) scale/shift pair so the (B, N)
        # activation only sees  h*scale + shift.  The preceding Linear bias is
        # omitted upstream because mean subtraction cancels it exactly.
        mean = jnp.mean(h, axis=0, keepdims=True)
        var = jnp.mean(h * h, axis=0, keepdims=True) - mean * mean
        scale = g_ref[...] * jax.lax.rsqrt(var + BN_EPS)
        shift = be_ref[...] - mean * scale
        return lrelu(h * scale + shift)

    x = x_ref[...].astype(jnp.float32)

    h = lrelu(matmul(x, w1_ref) + b1_ref[...])                  # (B, 1024)
    h = bn_lrelu(matmul(h, w2_ref), g2_ref, be2_ref)            # (B,  512)
    h = bn_lrelu(matmul(h, w3_ref), g3_ref, be3_ref)            # (B,  256)
    h = bn_lrelu(matmul(h, w4_ref), g4_ref, be4_ref)            # (B,  128)
    h = bn_lrelu(matmul(h, w5_ref), g5_ref, be5_ref)            # (B,   64)
    latent = jnp.tanh(matmul(h, w6_ref) + b6_ref[...])          # (B,    L)

    # Fused [mu | logvar] head: one MXU op + one lane-denser (B, 2L) store.
    out_ref[...] = matmul(latent, wh_ref) + bh_ref[...]


# ----------------------------------------------------------------------------
# Parameter construction (deterministic, synthetic, PyTorch-style init).
# PyTorch Linear weight is (out, in); we store the transposed (in, out) form.
# Biases / BN affine params are stored as (1, out) for 2-D broadcast.
# ----------------------------------------------------------------------------
def init_params(key, latent_dim, coord_size):
    dims = [1 + coord_size, 1024, 512, 256, 128, 64, latent_dim]
    params = {}
    keys = jax.random.split(key, 2 * (len(dims) - 1) + 4)
    ki = 0
    for li in range(len(dims) - 1):
        fan_in, fan_out = dims[li], dims[li + 1]
        scale = 1.0 / np.sqrt(fan_in)
        params[f"w{li + 1}"] = jax.random.uniform(
            keys[ki], (fan_in, fan_out), jnp.float32, -scale, scale); ki += 1
        params[f"b{li + 1}"] = jax.random.uniform(
            keys[ki], (1, fan_out), jnp.float32, -scale, scale); ki += 1
        # BatchNorm affine params for blocks 2..5 (PyTorch init: gamma=1, beta=0)
        if 1 <= li <= 4:
            params[f"g{li + 1}"] = jnp.ones((1, fan_out), jnp.float32)
            params[f"be{li + 1}"] = jnp.zeros((1, fan_out), jnp.float32)
    # mu / logvar heads
    scale = 1.0 / np.sqrt(latent_dim)
    params["wmu"] = jax.random.uniform(
        keys[ki], (latent_dim, latent_dim), jnp.float32, -scale, scale); ki += 1
    params["bmu"] = jax.random.uniform(
        keys[ki], (1, latent_dim), jnp.float32, -scale, scale); ki += 1
    params["wvar"] = jax.random.uniform(
        keys[ki], (latent_dim, latent_dim), jnp.float32, -scale, scale); ki += 1
    params["bvar"] = jax.random.uniform(
        keys[ki], (1, latent_dim), jnp.float32, -scale, scale); ki += 1
    return params


def prepare_kernel_params(params):
    """One-time prep for the kernel: quantize weight matrices to bf16 (halves
    per-call HBM->VMEM weight traffic, the dominant cost at small batch) and
    fuse the mu/logvar heads into a single (L, 2L) matmul.  Biases and BN
    parameters stay in f32.  Biases b2..b5 are intentionally NOT part of the
    kernel operand set (cancelled by BatchNorm's mean subtraction)."""
    bf16 = jnp.bfloat16
    kp = dict(params)
    for name in ("w1", "w2", "w3", "w4", "w5", "w6"):
        kp[name] = params[name].astype(bf16)
    kp["whead"] = jnp.concatenate(
        [params["wmu"], params["wvar"]], axis=1).astype(bf16)
    kp["bhead"] = jnp.concatenate([params["bmu"], params["bvar"]], axis=1)
    return kp


_KERNEL_PARAM_ORDER = [
    "w1", "b1",
    "w2", "g2", "be2",
    "w3", "g3", "be3",
    "w4", "g4", "be4",
    "w5", "g5", "be5",
    "w6", "b6",
    "whead", "bhead",
]


# ----------------------------------------------------------------------------
# Wrapper
# ----------------------------------------------------------------------------
@functools.partial(jax.jit, static_argnames=("latent_dim",))
def encoder_forward(noise, labels, kparams, *, latent_dim):
    # torch.cat((labels, noise), -1)   -- glue, done outside the kernel
    x = jnp.concatenate([labels, noise], axis=-1).astype(jnp.float32)
    batch = x.shape[0]

    args = [x] + [kparams[name] for name in _KERNEL_PARAM_ORDER]
    vmem_spec = pl.BlockSpec(memory_space=pltpu.MemorySpace.VMEM)

    fused = pl.pallas_call(
        _encoder_kernel,
        out_shape=jax.ShapeDtypeStruct((batch, 2 * latent_dim), jnp.float32),
        in_specs=[vmem_spec] * len(args),
        out_specs=vmem_spec,
    )(*args)
    # Split the fused [mu | logvar] output outside the kernel.
    return fused[:, :latent_dim], fused[:, latent_dim:]


# ----------------------------------------------------------------------------
# Pure-JAX reference mirroring the PyTorch graph (including the Linear biases
# in front of each BatchNorm), using the same bf16 weights and bf16 matmul
# inputs (f32 accumulate / BN) as the kernel, so the check is tight.  Parity
# with a pure-f32 PyTorch module would need ~1e-2 tolerance due to the
# intentional bf16 weight quantization.
# ----------------------------------------------------------------------------
def encoder_reference(noise, labels, kparams):
    x = jnp.concatenate([labels, noise], axis=-1).astype(jnp.float32)

    def linear(h, w, b):
        return jnp.dot(h.astype(jnp.bfloat16), w.astype(jnp.bfloat16),
                       preferred_element_type=jnp.float32) + b

    def lrelu(h):
        return jnp.where(h >= 0.0, h, LRELU_SLOPE * h)

    def bn(h, g, be):
        mean = jnp.mean(h, axis=0, keepdims=True)
        var = jnp.mean((h - mean) ** 2, axis=0, keepdims=True)
        return (h - mean) / jnp.sqrt(var + BN_EPS) * g + be

    p = kparams
    h = lrelu(linear(x, p["w1"], p["b1"]))
    h = lrelu(bn(linear(h, p["w2"], p["b2"]), p["g2"], p["be2"]))
    h = lrelu(bn(linear(h, p["w3"], p["b3"]), p["g3"], p["be3"]))
    h = lrelu(bn(linear(h, p["w4"], p["b4"]), p["g4"], p["be4"]))
    h = lrelu(bn(linear(h, p["w5"], p["b5"]), p["g5"], p["be5"]))
    latent = jnp.tanh(linear(h, p["w6"], p["b6"]))
    mu = linear(latent, p["wmu"], p["bmu"])
    logvar = linear(latent, p["wvar"], p["bvar"])
    return mu, logvar


if __name__ == "__main__":
    latent_dim = 16
    coord_size = 7
    batch = 8

    key = jax.random.PRNGKey(0)
    k_params, k_noise, k_labels = jax.random.split(key, 3)

    params = init_params(k_params, latent_dim, coord_size)
    kparams = prepare_kernel_params(params)

    noise = jax.random.normal(k_noise, (batch, 1), jnp.float32)              # scalar field value
    labels = jax.random.normal(k_labels, (batch, coord_size), jnp.float32)   # coordinates

    mu, logvar = encoder_forward(noise, labels, kparams, latent_dim=latent_dim)
    jax.block_until_ready((mu, logvar))

    mu_ref, logvar_ref = encoder_reference(noise, labels, kparams)
    assert mu.shape == (batch, latent_dim) and logvar.shape == (batch, latent_dim)
    np.testing.assert_allclose(np.asarray(mu), np.asarray(mu_ref), rtol=5e-3, atol=5e-3)
    np.testing.assert_allclose(np.asarray(logvar), np.asarray(logvar_ref), rtol=5e-3, atol=5e-3)

    print("KERNEL_OK")
</pallas_src>

<mosaic_0001>
module attributes {stable_mosaic.version = 11 : i64} {
  func.func @_encoder_kernel(%arg0: memref<8x8xf32, #tpu.memory_space<vmem>>, %arg1: memref<8x1024xbf16, #tpu.memory_space<vmem>>, %arg2: memref<1x1024xf32, #tpu.memory_space<vmem>>, %arg3: memref<1024x512xbf16, #tpu.memory_space<vmem>>, %arg4: memref<1x512xf32, #tpu.memory_space<vmem>>, %arg5: memref<1x512xf32, #tpu.memory_space<vmem>>, %arg6: memref<512x256xbf16, #tpu.memory_space<vmem>>, %arg7: memref<1x256xf32, #tpu.memory_space<vmem>>, %arg8: memref<1x256xf32, #tpu.memory_space<vmem>>, %arg9: memref<256x128xbf16, #tpu.memory_space<vmem>>, %arg10: memref<1x128xf32, #tpu.memory_space<vmem>>, %arg11: memref<1x128xf32, #tpu.memory_space<vmem>>, %arg12: memref<128x64xbf16, #tpu.memory_space<vmem>>, %arg13: memref<1x64xf32, #tpu.memory_space<vmem>>, %arg14: memref<1x64xf32, #tpu.memory_space<vmem>>, %arg15: memref<64x16xbf16, #tpu.memory_space<vmem>>, %arg16: memref<1x16xf32, #tpu.memory_space<vmem>>, %arg17: memref<16x32xbf16, #tpu.memory_space<vmem>>, %arg18: memref<1x32xf32, #tpu.memory_space<vmem>>, %arg19: memref<8x32xf32, #tpu.memory_space<vmem>>) attributes {dimension_semantics = [], scalar_prefetch = 0 : i64, scratch_operands = 0 : i64, tpu.core_type = #tpu.core_type<tc>} {
    %c0 = arith.constant 0 : index
    %c0_0 = arith.constant 0 : index
    %0 = vector.load %arg0[%c0, %c0_0] : memref<8x8xf32, #tpu.memory_space<vmem>>, vector<8x8xf32>
    %1 = arith.truncf %0 : vector<8x8xf32> to vector<8x8xbf16>
    %c0_1 = arith.constant 0 : index
    %c0_2 = arith.constant 0 : index
    %2 = vector.load %arg1[%c0_1, %c0_2] : memref<8x1024xbf16, #tpu.memory_space<vmem>>, vector<8x1024xbf16>
    %cst = arith.constant dense<0.000000e+00> : vector<8x1024xf32>
    %3 = tpu.matmul %1, %2, %cst {dimension_numbers = #tpu.dot_dimension_numbers<[1], [0], [0], [1], [0, 0, 1, 1], [], []>} : vector<8x8xbf16>, vector<8x1024xbf16>, vector<8x1024xf32> -> vector<8x1024xf32>
    %c0_3 = arith.constant 0 : index
    %c0_4 = arith.constant 0 : index
    %4 = vector.load %arg2[%c0_3, %c0_4] : memref<1x1024xf32, #tpu.memory_space<vmem>>, vector<1x1024xf32>
    %5 = vector.broadcast %4 : vector<1x1024xf32> to vector<8x1024xf32>
    %6 = arith.addf %3, %5 : vector<8x1024xf32>
    %cst_5 = arith.constant 2.000000e-01 : f32
    %7 = vector.broadcast %cst_5 : f32 to vector<8x1024xf32>
    %8 = arith.mulf %7, %6 : vector<8x1024xf32>
    %9 = arith.maximumf %6, %8 : vector<8x1024xf32>
    %10 = arith.truncf %9 : vector<8x1024xf32> to vector<8x1024xbf16>
    %c0_6 = arith.constant 0 : index
    %c0_7 = arith.constant 0 : index
    %11 = vector.load %arg3[%c0_6, %c0_7] : memref<1024x512xbf16, #tpu.memory_space<vmem>>, vector<1024x512xbf16>
    %cst_8 = arith.constant dense<0.000000e+00> : vector<8x512xf32>
    %12 = tpu.matmul %10, %11, %cst_8 {dimension_numbers = #tpu.dot_dimension_numbers<[1], [0], [0], [1], [0, 0, 1, 1], [], []>} : vector<8x1024xbf16>, vector<1024x512xbf16>, vector<8x512xf32> -> vector<8x512xf32>
    %cst_9 = arith.constant dense<0.000000e+00> : vector<512xf32>
    %13 = vector.multi_reduction <add>, %12, %cst_9 [0] : vector<8x512xf32> to vector<512xf32>
    %14 = vector.shape_cast %13 : vector<512xf32> to vector<1x512xf32>
    %cst_10 = arith.constant 8.000000e+00 : f32
    %15 = vector.broadcast %cst_10 : f32 to vector<1x512xf32>
    %16 = arith.divf %14, %15 : vector<1x512xf32>
    %17 = arith.mulf %12, %12 : vector<8x512xf32>
    %cst_11 = arith.constant dense<0.000000e+00> : vector<512xf32>
    %18 = vector.multi_reduction <add>, %17, %cst_11 [0] : vector<8x512xf32> to vector<512xf32>
    %19 = vector.shape_cast %18 : vector<512xf32> to vector<1x512xf32>
    %cst_12 = arith.constant 8.000000e+00 : f32
    %20 = vector.broadcast %cst_12 : f32 to vector<1x512xf32>
    %21 = arith.divf %19, %20 : vector<1x512xf32>
    %22 = arith.mulf %16, %16 : vector<1x512xf32>
    %23 = arith.subf %21, %22 : vector<1x512xf32>
    %c0_13 = arith.constant 0 : index
    %c0_14 = arith.constant 0 : index
    %24 = vector.load %arg4[%c0_13, %c0_14] : memref<1x512xf32, #tpu.memory_space<vmem>>, vector<1x512xf32>
    %cst_15 = arith.constant 8.000000e-01 : f32
    %25 = vector.broadcast %cst_15 : f32 to vector<1x512xf32>
    %26 = arith.addf %23, %25 : vector<1x512xf32>
    %27 = math.rsqrt %26 : vector<1x512xf32>
    %28 = arith.mulf %24, %27 : vector<1x512xf32>
    %c0_16 = arith.constant 0 : index
    %c0_17 = arith.constant 0 : index
    %29 = vector.load %arg5[%c0_16, %c0_17] : memref<1x512xf32, #tpu.memory_space<vmem>>, vector<1x512xf32>
    %30 = arith.mulf %16, %28 : vector<1x512xf32>
    %31 = arith.subf %29, %30 : vector<1x512xf32>
    %32 = vector.broadcast %28 : vector<1x512xf32> to vector<8x512xf32>
    %33 = arith.mulf %12, %32 : vector<8x512xf32>
    %34 = vector.broadcast %31 : vector<1x512xf32> to vector<8x512xf32>
    %35 = arith.addf %33, %34 : vector<8x512xf32>
    %cst_18 = arith.constant 2.000000e-01 : f32
    %36 = vector.broadcast %cst_18 : f32 to vector<8x512xf32>
    %37 = arith.mulf %36, %35 : vector<8x512xf32>
    %38 = arith.maximumf %35, %37 : vector<8x512xf32>
    %39 = arith.truncf %38 : vector<8x512xf32> to vector<8x512xbf16>
    %c0_19 = arith.constant 0 : index
    %c0_20 = arith.constant 0 : index
    %40 = vector.load %arg6[%c0_19, %c0_20] : memref<512x256xbf16, #tpu.memory_space<vmem>>, vector<512x256xbf16>
    %cst_21 = arith.constant dense<0.000000e+00> : vector<8x256xf32>
    %41 = tpu.matmul %39, %40, %cst_21 {dimension_numbers = #tpu.dot_dimension_numbers<[1], [0], [0], [1], [0, 0, 1, 1], [], []>} : vector<8x512xbf16>, vector<512x256xbf16>, vector<8x256xf32> -> vector<8x256xf32>
    %cst_22 = arith.constant dense<0.000000e+00> : vector<256xf32>
    %42 = vector.multi_reduction <add>, %41, %cst_22 [0] : vector<8x256xf32> to vector<256xf32>
    %43 = vector.shape_cast %42 : vector<256xf32> to vector<1x256xf32>
    %cst_23 = arith.constant 8.000000e+00 : f32
    %44 = vector.broadcast %cst_23 : f32 to vector<1x256xf32>
    %45 = arith.divf %43, %44 : vector<1x256xf32>
    %46 = arith.mulf %41, %41 : vector<8x256xf32>
    %cst_24 = arith.constant dense<0.000000e+00> : vector<256xf32>
    %47 = vector.multi_reduction <add>, %46, %cst_24 [0] : vector<8x256xf32> to vector<256xf32>
    %48 = vector.shape_cast %47 : vector<256xf32> to vector<1x256xf32>
    %cst_25 = arith.constant 8.000000e+00 : f32
    %49 = vector.broadcast %cst_25 : f32 to vector<1x256xf32>
    %50 = arith.divf %48, %49 : vector<1x256xf32>
    %51 = arith.mulf %45, %45 : vector<1x256xf32>
    %52 = arith.subf %50, %51 : vector<1x256xf32>
    %c0_26 = arith.constant 0 : index
    %c0_27 = arith.constant 0 : index
    %53 = vector.load %arg7[%c0_26, %c0_27] : memref<1x256xf32, #tpu.memory_space<vmem>>, vector<1x256xf32>
    %cst_28 = arith.constant 8.000000e-01 : f32
    %54 = vector.broadcast %cst_28 : f32 to vector<1x256xf32>
    %55 = arith.addf %52, %54 : vector<1x256xf32>
    %56 = math.rsqrt %55 : vector<1x256xf32>
    %57 = arith.mulf %53, %56 : vector<1x256xf32>
    %c0_29 = arith.constant 0 : index
    %c0_30 = arith.constant 0 : index
    %58 = vector.load %arg8[%c0_29, %c0_30] : memref<1x256xf32, #tpu.memory_space<vmem>>, vector<1x256xf32>
    %59 = arith.mulf %45, %57 : vector<1x256xf32>
    %60 = arith.subf %58, %59 : vector<1x256xf32>
    %61 = vector.broadcast %57 : vector<1x256xf32> to vector<8x256xf32>
    %62 = arith.mulf %41, %61 : vector<8x256xf32>
    %63 = vector.broadcast %60 : vector<1x256xf32> to vector<8x256xf32>
    %64 = arith.addf %62, %63 : vector<8x256xf32>
    %cst_31 = arith.constant 2.000000e-01 : f32
    %65 = vector.broadcast %cst_31 : f32 to vector<8x256xf32>
    %66 = arith.mulf %65, %64 : vector<8x256xf32>
    %67 = arith.maximumf %64, %66 : vector<8x256xf32>
    %68 = arith.truncf %67 : vector<8x256xf32> to vector<8x256xbf16>
    %c0_32 = arith.constant 0 : index
    %c0_33 = arith.constant 0 : index
    %69 = vector.load %arg9[%c0_32, %c0_33] : memref<256x128xbf16, #tpu.memory_space<vmem>>, vector<256x128xbf16>
    %cst_34 = arith.constant dense<0.000000e+00> : vector<8x128xf32>
    %70 = tpu.matmul %68, %69, %cst_34 {dimension_numbers = #tpu.dot_dimension_numbers<[1], [0], [0], [1], [0, 0, 1, 1], [], []>} : vector<8x256xbf16>, vector<256x128xbf16>, vector<8x128xf32> -> vector<8x128xf32>
    %cst_35 = arith.constant dense<0.000000e+00> : vector<128xf32>
    %71 = vector.multi_reduction <add>, %70, %cst_35 [0] : vector<8x128xf32> to vector<128xf32>
    %72 = vector.shape_cast %71 : vector<128xf32> to vector<1x128xf32>
    %cst_36 = arith.constant 8.000000e+00 : f32
    %73 = vector.broadcast %cst_36 : f32 to vector<1x128xf32>
    %74 = arith.divf %72, %73 : vector<1x128xf32>
    %75 = arith.mulf %70, %70 : vector<8x128xf32>
    %cst_37 = arith.constant dense<0.000000e+00> : vector<128xf32>
    %76 = vector.multi_reduction <add>, %75, %cst_37 [0] : vector<8x128xf32> to vector<128xf32>
    %77 = vector.shape_cast %76 : vector<128xf32> to vector<1x128xf32>
    %cst_38 = arith.constant 8.000000e+00 : f32
    %78 = vector.broadcast %cst_38 : f32 to vector<1x128xf32>
    %79 = arith.divf %77, %78 : vector<1x128xf32>
    %80 = arith.mulf %74, %74 : vector<1x128xf32>
    %81 = arith.subf %79, %80 : vector<1x128xf32>
    %c0_39 = arith.constant 0 : index
    %c0_40 = arith.constant 0 : index
    %82 = vector.load %arg10[%c0_39, %c0_40] : memref<1x128xf32, #tpu.memory_space<vmem>>, vector<1x128xf32>
    %cst_41 = arith.constant 8.000000e-01 : f32
    %83 = vector.broadcast %cst_41 : f32 to vector<1x128xf32>
    %84 = arith.addf %81, %83 : vector<1x128xf32>
    %85 = math.rsqrt %84 : vector<1x128xf32>
    %86 = arith.mulf %82, %85 : vector<1x128xf32>
    %c0_42 = arith.constant 0 : index
    %c0_43 = arith.constant 0 : index
    %87 = vector.load %arg11[%c0_42, %c0_43] : memref<1x128xf32, #tpu.memory_space<vmem>>, vector<1x128xf32>
    %88 = arith.mulf %74, %86 : vector<1x128xf32>
    %89 = arith.subf %87, %88 : vector<1x128xf32>
    %90 = vector.broadcast %86 : vector<1x128xf32> to vector<8x128xf32>
    %91 = arith.mulf %70, %90 : vector<8x128xf32>
    %92 = vector.broadcast %89 : vector<1x128xf32> to vector<8x128xf32>
    %93 = arith.addf %91, %92 : vector<8x128xf32>
    %cst_44 = arith.constant 2.000000e-01 : f32
    %94 = vector.broadcast %cst_44 : f32 to vector<8x128xf32>
    %95 = arith.mulf %94, %93 : vector<8x128xf32>
    %96 = arith.maximumf %93, %95 : vector<8x128xf32>
    %97 = arith.truncf %96 : vector<8x128xf32> to vector<8x128xbf16>
    %c0_45 = arith.constant 0 : index
    %c0_46 = arith.constant 0 : index
    %98 = vector.load %arg12[%c0_45, %c0_46] : memref<128x64xbf16, #tpu.memory_space<vmem>>, vector<128x64xbf16>
    %cst_47 = arith.constant dense<0.000000e+00> : vector<8x64xf32>
    %99 = tpu.matmul %97, %98, %cst_47 {dimension_numbers = #tpu.dot_dimension_numbers<[1], [0], [0], [1], [0, 0, 1, 1], [], []>} : vector<8x128xbf16>, vector<128x64xbf16>, vector<8x64xf32> -> vector<8x64xf32>
    %cst_48 = arith.constant dense<0.000000e+00> : vector<64xf32>
    %100 = vector.multi_reduction <add>, %99, %cst_48 [0] : vector<8x64xf32> to vector<64xf32>
    %101 = vector.shape_cast %100 : vector<64xf32> to vector<1x64xf32>
    %cst_49 = arith.constant 8.000000e+00 : f32
    %102 = vector.broadcast %cst_49 : f32 to vector<1x64xf32>
    %103 = arith.divf %101, %102 : vector<1x64xf32>
    %104 = arith.mulf %99, %99 : vector<8x64xf32>
    %cst_50 = arith.constant dense<0.000000e+00> : vector<64xf32>
    %105 = vector.multi_reduction <add>, %104, %cst_50 [0] : vector<8x64xf32> to vector<64xf32>
    %106 = vector.shape_cast %105 : vector<64xf32> to vector<1x64xf32>
    %cst_51 = arith.constant 8.000000e+00 : f32
    %107 = vector.broadcast %cst_51 : f32 to vector<1x64xf32>
    %108 = arith.divf %106, %107 : vector<1x64xf32>
    %109 = arith.mulf %103, %103 : vector<1x64xf32>
    %110 = arith.subf %108, %109 : vector<1x64xf32>
    %c0_52 = arith.constant 0 : index
    %c0_53 = arith.constant 0 : index
    %111 = vector.load %arg13[%c0_52, %c0_53] : memref<1x64xf32, #tpu.memory_space<vmem>>, vector<1x64xf32>
    %cst_54 = arith.constant 8.000000e-01 : f32
    %112 = vector.broadcast %cst_54 : f32 to vector<1x64xf32>
    %113 = arith.addf %110, %112 : vector<1x64xf32>
    %114 = math.rsqrt %113 : vector<1x64xf32>
    %115 = arith.mulf %111, %114 : vector<1x64xf32>
    %c0_55 = arith.constant 0 : index
    %c0_56 = arith.constant 0 : index
    %116 = vector.load %arg14[%c0_55, %c0_56] : memref<1x64xf32, #tpu.memory_space<vmem>>, vector<1x64xf32>
    %117 = arith.mulf %103, %115 : vector<1x64xf32>
    %118 = arith.subf %116, %117 : vector<1x64xf32>
    %119 = vector.broadcast %115 : vector<1x64xf32> to vector<8x64xf32>
    %120 = arith.mulf %99, %119 : vector<8x64xf32>
    %121 = vector.broadcast %118 : vector<1x64xf32> to vector<8x64xf32>
    %122 = arith.addf %120, %121 : vector<8x64xf32>
    %cst_57 = arith.constant 2.000000e-01 : f32
    %123 = vector.broadcast %cst_57 : f32 to vector<8x64xf32>
    %124 = arith.mulf %123, %122 : vector<8x64xf32>
    %125 = arith.maximumf %122, %124 : vector<8x64xf32>
    %126 = arith.truncf %125 : vector<8x64xf32> to vector<8x64xbf16>
    %c0_58 = arith.constant 0 : index
    %c0_59 = arith.constant 0 : index
    %127 = vector.load %arg15[%c0_58, %c0_59] : memref<64x16xbf16, #tpu.memory_space<vmem>>, vector<64x16xbf16>
    %cst_60 = arith.constant dense<0.000000e+00> : vector<8x16xf32>
    %128 = tpu.matmul %126, %127, %cst_60 {dimension_numbers = #tpu.dot_dimension_numbers<[1], [0], [0], [1], [0, 0, 1, 1], [], []>} : vector<8x64xbf16>, vector<64x16xbf16>, vector<8x16xf32> -> vector<8x16xf32>
    %c0_61 = arith.constant 0 : index
    %c0_62 = arith.constant 0 : index
    %129 = vector.load %arg16[%c0_61, %c0_62] : memref<1x16xf32, #tpu.memory_space<vmem>>, vector<1x16xf32>
    %130 = vector.broadcast %129 : vector<1x16xf32> to vector<8x16xf32>
    %131 = arith.addf %128, %130 : vector<8x16xf32>
    %132 = math.tanh %131 : vector<8x16xf32>
    %133 = arith.truncf %132 : vector<8x16xf32> to vector<8x16xbf16>
    %c0_63 = arith.constant 0 : index
    %c0_64 = arith.constant 0 : index
    %134 = vector.load %arg17[%c0_63, %c0_64] : memref<16x32xbf16, #tpu.memory_space<vmem>>, vector<16x32xbf16>
    %cst_65 = arith.constant dense<0.000000e+00> : vector<8x32xf32>
    %135 = tpu.matmul %133, %134, %cst_65 {dimension_numbers = #tpu.dot_dimension_numbers<[1], [0], [0], [1], [0, 0, 1, 1], [], []>} : vector<8x16xbf16>, vector<16x32xbf16>, vector<8x32xf32> -> vector<8x32xf32>
    %c0_66 = arith.constant 0 : index
    %c0_67 = arith.constant 0 : index
    %136 = vector.load %arg18[%c0_66, %c0_67] : memref<1x32xf32, #tpu.memory_space<vmem>>, vector<1x32xf32>
    %137 = vector.broadcast %136 : vector<1x32xf32> to vector<8x32xf32>
    %138 = arith.addf %135, %137 : vector<8x32xf32>
    %c0_68 = arith.constant 0 : index
    %c0_69 = arith.constant 0 : index
    %139 = vector.load %arg19[%c0_68, %c0_69] : memref<8x32xf32, #tpu.memory_space<vmem>>, vector<8x32xf32>
    tpu.vector_store %arg19[%c0_68, %c0_69], %138 {strides = array<i32>} : memref<8x32xf32, #tpu.memory_space<vmem>>, vector<8x32xf32>,
    return
  }
}

</mosaic_0001>

<bundles_post_ra>
// kernel: encoder_forward.1
= control target key start
LH: loop header
LB: loop body
LE: loop exit
PB: predicated region body
PF: predicated region fallthrough
CT: control target
= control target key end

     0   :  { %s5738_s0 = inlined_call_operand.vmem [shape: f32[8,8], index: 0, kind: input, shape index: {}]   ;;  %s5739_s1 = inlined_call_operand.vmem [shape: bf16[8,1024], index: 1, kind: input, shape index: {}]   ;;  %s5740_s2 = inlined_call_operand.vmem [shape: f32[1,1024], index: 2, kind: input, shape index: {}]   ;;  %s5741_s3 = inlined_call_operand.hbm [shape: bf16[1024,512], index: 3, kind: input, shape index: {}]   ;;  %s5742_s4 = inlined_call_operand.vmem [shape: f32[1,512], index: 4, kind: input, shape index: {}]   ;;  %s5743_s5 = inlined_call_operand.vmem [shape: f32[1,512], index: 5, kind: input, shape index: {}]   ;;  %s5744_s6 = inlined_call_operand.hbm [shape: bf16[512,256], index: 6, kind: input, shape index: {}]   ;;  %s5745_s7 = inlined_call_operand.vmem [shape: f32[1,256], index: 7, kind: input, shape index: {}]   ;;  %s5746_s8 = inlined_call_operand.vmem [shape: f32[1,256], index: 8, kind: input, shape index: {}]   ;;  %s5747_s9 = inlined_call_operand.hbm [shape: bf16[256,128], index: 9, kind: input, shape index: {}]   ;;  %s5748_s10 = inlined_call_operand.vmem [shape: f32[1,128], index: 10, kind: input, shape index: {}]   ;;  %s5749_s11 = inlined_call_operand.vmem [shape: f32[1,128], index: 11, kind: input, shape index: {}]   ;;  %s5750_s12 = inlined_call_operand.vmem [shape: bf16[128,64], index: 12, kind: input, shape index: {}]   ;;  %s5751_s13 = inlined_call_operand.vmem [shape: f32[1,64], index: 13, kind: input, shape index: {}]   ;;  %s5752_s14 = inlined_call_operand.vmem [shape: f32[1,64], index: 14, kind: input, shape index: {}]   ;;  %s5753_s15 = inlined_call_operand.vmem [shape: bf16[64,16], index: 15, kind: input, shape index: {}]   ;;  %s5754_s16 = inlined_call_operand.vmem [shape: f32[1,16], index: 16, kind: input, shape index: {}]   ;;  %s5755_s17 = inlined_call_operand.vmem [shape: bf16[16,32], index: 17, kind: input, shape index: {}]   ;;  %s5756_s18 = inlined_call_operand.vmem [shape: f32[1,32], index: 18, kind: input, shape index: {}]   ;;  %s5757_s19 = inlined_call_operand.vmem [shape: f32[8,32], index: 19, kind: output, shape index: {}]  }
   0x1   :  { %5759 = sst [smem:[#allocation9_spill]] %s5738_s0 }
   0x2   :  { %5760 = sst [smem:[#allocation10_spill]] %s5739_s1 }
   0x3   :  { %5761 = sst [smem:[#allocation11_spill]] %s5740_s2 }
   0x4   :  { %5762 = sst [smem:[#allocation12_spill]] %s5741_s3 }
   0x5   :  { %5763 = sst [smem:[#allocation13_spill]] %s5757_s19 }
   0x6   :  { %24 = vsyncpa [#allocation3], 0 }
   0x7   :  { %25 = vsyncpa [#allocation5], 0  ;;  %s53_s20 = sshll.u32 %s5744_s6, 4  ;;  %s5309_s21 = smov [#allocation4]   ;;  %s54_s20 = int_to_ptr.hbm [resolvable:$true] %s53_s20 }
   0x8   :  { %s55_s1 = sshll.u32 %s5309_s21, 4  ;;  %s5764_s23 = sld [smem:[#allocation12_spill]]  ;;  %s56_s1 = int_to_ptr.vmem [resolvable:$true] %s55_s1 }
   0x9   :  { %s5310_s25 = smov 128   ;;  %s5311_s3 = smov 8  }
   0xa   :  { %61 = dma.hbm_to_vmem [thread:$0]  %s54_s20, 8192, %s56_s1, [#allocation5], %s5310_s25, %s5310_s25, %s5311_s3  }
   0xb   :  { %s5312_s26 = smov [#allocation2]   ;;  %s5313_s28 = smov 256  }
   0xc   :  { %s38_s27 = sshll.u32 %s5312_s26, 4  ;;  %s5314_s29 = smov 16   ;;  %s39_s27 = int_to_ptr.vmem [resolvable:$true] %s38_s27 }
   0xd   :  { %s70_s30 = sshll.u32 %s5747_s9, 4  ;;  %s5315_s21 = smov [#allocation6]   ;;  %s71_s30 = int_to_ptr.hbm [resolvable:$true] %s70_s30 }
   0xe   :  { %s36_s24 = sshll.u32 %s5764_s23, 4  ;;  %s72_s19 = sshll.u32 %s5315_s21, 4  ;;  %s37_s24 = int_to_ptr.hbm [resolvable:$true] %s36_s24  ;;  %s73_s19 = int_to_ptr.vmem [resolvable:$true] %s72_s19 }
   0xf   :  { %44 = dma.hbm_to_vmem [thread:$0]  %s37_s24, 32768, %s39_s27, [#allocation3], %s5313_s28, %s5313_s28, %s5314_s29  }
  0x10   :  { %s5316_s22 = smov 64   ;;  %s5317_s2 = smov 4  }
  0x11   :  { %78 = dma.hbm_to_vmem [thread:$0]  %s71_s30, 2048, %s73_s19, [#allocation5], %s5316_s22, %s5316_s22, %s5317_s2  }
  0x12   :  { %5305 = dma.done.wait [#allocation3], 32768  }
  0x13   :  { %5306 = vsyncadd [#allocation3], 4294934528 }
  0x14   :  { %5307 = dma.done.wait [#allocation5], 10240  }
  0x15   :  { %5308 = vsyncadd [#allocation5], 4294957056  ;;  %s5765_s23 = sld [smem:[#allocation10_spill]]  ;;  %vm158_vm0 = vcmask 1043456   ;;  %vm154_vm1 = vcmask 64512   ;;  %vm2390_vm8 = vcmask 1040384  }
  0x16   :  { %s5766_s26 = sld [smem:[#allocation9_spill]]  ;;  %v3568_v17 = vld [vmem:[#allocation2 + $0xe0] sm:$0xf]  ;;  %v4882_v18 = vld [vmem:[#allocation2 + $0xec] sm:$0xf0] }
  0x17   :  { %v3696_v23 = vld [vmem:[#allocation2 + $0x1e0] sm:$0xf]  ;;  %v4914_v24 = vld [vmem:[#allocation2 + $0x1ec] sm:$0xf0]  ;;  %v3569_v38 = vor.u32 %v4882_v18, %v3568_v17  ;;  %s5767_s30 = sld [smem:[#allocation11_spill]] }
  0x18   :  { %v3824_v25 = vld [vmem:[#allocation2 + $0x2e0] sm:$0xf]  ;;  %v4946_v30 = vld [vmem:[#allocation2 + $0x2ec] sm:$0xf0]  ;;  %v3697_v39 = vor.u32 %v4914_v24, %v3696_v23  ;;  %s5772_s0 = sld [smem:[#allocation13_spill]] }
  0x19   :  { %v3952_v34 = vld [vmem:[#allocation2 + $0x3e0] sm:$0xf]  ;;  %v4978_v35 = vld [vmem:[#allocation2 + $0x3ec] sm:$0xf0]  ;;  %v3825_v44 = vor.u32 %v4946_v30, %v3824_v25 }
  0x1a   :  { %v3552_v40 = vld [vmem:[#allocation2 + $0xc0] sm:$0xf]  ;;  %v4878_v41 = vld [vmem:[#allocation2 + $0xcc] sm:$0xf0]  ;;  %v3953_v45 = vor.u32 %v4978_v35, %v3952_v34 }
  0x1b   :  { %v112_v0 = vld [vmem:[%s5765_s23] sm:$0xff]  ;;  %v113_v1 = vld [vmem:[%s5765_s23 + $0x8] sm:$0xff]  ;;  %v114_v7 = vld [vmem:[%s5765_s23 + $0x10] sm:$0xff]  ;;  %v3553_v50 = vor.u32 %v4878_v41, %v3552_v40 }
  0x1c   :  { %v110_v2 = vld [vmem:[%s5766_s26] sm:$0xff]  ;;  %v138_v3 = vunpack.c.l.b16 %v112_v0  ;;  %v139_v4 = vunpack.c.h.b16 %v112_v0  ;;  %v140_v5 = vunpack.c.l.b16 %v113_v1  ;;  %v141_v6 = vunpack.c.h.b16 %v113_v1  ;;  %v115_v8 = vld [vmem:[%s5765_s23 + $0x18] sm:$0xff]  ;;  %v4910_v43 = vld [vmem:[#allocation2 + $0x1cc] sm:$0xf0] }
  0x1d   :  { %v5443_v9 = vpack.c.bf16 %v110_v2, %v110_v2  ;;  %v142_v10 = vunpack.c.l.b16 %v114_v7  ;;  %v143_v11 = vunpack.c.h.b16 %v114_v7  ;;  %v144_v12 = vunpack.c.l.b16 %v115_v8  ;;  %v3680_v42 = vld [vmem:[#allocation2 + $0x1c0] sm:$0xf]  ;;  %v4942_v47 = vld [vmem:[#allocation2 + $0x2cc] sm:$0xf0] }
  0x1e   :  { %v146_v13 = vpack.c.b16 %v138_v3, %v138_v3  ;;  %v147_v14 = vpack.c.b16 %v139_v4, %v139_v4  ;;  %v148_v15 = vpack.c.b16 %v140_v5, %v140_v5  ;;  %v149_v16 = vpack.c.b16 %v141_v6, %v141_v6  ;;  %v3808_v46 = vld [vmem:[#allocation2 + $0x2c0] sm:$0xf]  ;;  %v4974_v49 = vld [vmem:[#allocation2 + $0x3cc] sm:$0xf0] }
  0x1f   :  { %v150_v19 = vpack.c.b16 %v142_v10, %v142_v10  ;;  %v151_v20 = vpack.c.b16 %v143_v11, %v143_v11  ;;  %v152_v21 = vpack.c.b16 %v144_v12, %v144_v12  ;;  %v145_v22 = vunpack.c.h.b16 %v115_v8  ;;  %v3936_v48 = vld [vmem:[#allocation2 + $0x3c0] sm:$0xf]  ;;  %v4874_v53 = vld [vmem:[#allocation2 + $0xac] sm:$0xf0] }
  0x20   :  { %v160_v26 = vsel %vm158_vm0, %v146_v13, 0  ;;  %v163_v27 = vsel %vm158_vm0, %v147_v14, 0  ;;  %v166_v28 = vsel %vm158_vm0, %v148_v15, 0  ;;  %v169_v29 = vsel %vm158_vm0, %v149_v16, 0  ;;  %v3536_v52 = vld [vmem:[#allocation2 + $0xa0] sm:$0xf] }
  0x21   :  { %190 = vmatpush.bf16.msra.mxu0 %v160_v26  ;;  %203 = vmatpush.bf16.msra.mxu1 %v163_v27  ;;  %v172_v31 = vsel %vm158_vm0, %v150_v19, 0  ;;  %v175_v32 = vsel %vm158_vm0, %v151_v20, 0  ;;  %v153_v33 = vpack.c.b16 %v145_v22, %v145_v22  ;;  %v178_v36 = vsel %vm158_vm0, %v152_v21, 0  ;;  %v3664_v54 = vld [vmem:[#allocation2 + $0x1a0] sm:$0xf] }
  0x22   :  { %216 = vmatpush.bf16.msra.mxu2 %v166_v28  ;;  %229 = vmatpush.bf16.msra.mxu3 %v169_v29  ;;  %v3681_v51 = vor.u32 %v4910_v43, %v3680_v42  ;;  %v4906_v55 = vld [vmem:[#allocation2 + $0x1ac] sm:$0xf0]  ;;  %v3809_v56 = vor.u32 %v4942_v47, %v3808_v46  ;;  %v3937_v57 = vor.u32 %v4974_v49, %v3936_v48  ;;  %v3792_v58 = vld [vmem:[#allocation2 + $0x2a0] sm:$0xf] }
  0x23   :  { %v181_v37 = vsel %vm158_vm0, %v153_v33, 0  ;;  %v4938_v59 = vld [vmem:[#allocation2 + $0x2ac] sm:$0xf0]  ;;  %v3920_v60 = vld [vmem:[#allocation2 + $0x3a0] sm:$0xf]  ;;  %v3537_v62 = vor.u32 %v4874_v53, %v3536_v52  ;;  %v3665_v63 = vor.u32 %v4906_v55, %v3664_v54  ;;  %vm2392_vm0 = vcmask 1042434  }
  0x24   :  { %3446 = vmatmul.msk.bf16.vlgmr.msra.gmra.mxu0 %vm154_vm1, %v5443_v9  ;;  %3447 = vmatmul.msk.bf16.vlgmr.msra.gmra.mxu1 %vm154_vm1, %v5443_v9  ;;  %v4970_v61 = vld [vmem:[#allocation2 + $0x3ac] sm:$0xf0]  ;;  %v3520_v0 = vld [vmem:[#allocation2 + $0x80] sm:$0xf]  ;;  %v3793_v4 = vor.u32 %v4938_v59, %v3792_v58 }
  0x25   :  { %242 = vmatpush.bf16.msrb.mxu0 %v172_v31  ;;  %255 = vmatpush.bf16.msrb.mxu1 %v175_v32  ;;  %v4870_v1 = vld [vmem:[#allocation2 + $0x8c] sm:$0xf0]  ;;  %v3648_v2 = vld [vmem:[#allocation2 + $0x180] sm:$0xf]  ;;  %v3921_v5 = vor.u32 %v4970_v61, %v3920_v60 }
  0x26   :  { %3448 = vmatmul.msk.bf16.vlgmr.msra.gmra.mxu2 %vm154_vm1, %v5443_v9  ;;  %3449 = vmatmul.msk.bf16.vlgmr.msra.gmra.mxu3 %vm154_vm1, %v5443_v9  ;;  %v4902_v3 = vld [vmem:[#allocation2 + $0x18c] sm:$0xf0]  ;;  %v3504_v6 = vld [vmem:[#allocation2 + $0x60] sm:$0xf]  ;;  %v3521_v8 = vor.u32 %v4870_v1, %v3520_v0 }
  0x27   :  { %268 = vmatpush.bf16.msrb.mxu2 %v178_v36  ;;  %281 = vmatpush.bf16.msrb.mxu3 %v181_v37  ;;  %v3776_v7 = vld [vmem:[#allocation2 + $0x280] sm:$0xf]  ;;  %v3649_v10 = vor.u32 %v4902_v3, %v3648_v2  ;;  %v4934_v11 = vld [vmem:[#allocation2 + $0x28c] sm:$0xf0] }
  0x28   :  { %v3904_v12 = vld [vmem:[#allocation2 + $0x380] sm:$0xf]  ;;  %v4966_v13 = vld [vmem:[#allocation2 + $0x38c] sm:$0xf0]  ;;  %v3777_v17 = vor.u32 %v4934_v11, %v3776_v7 }
  0x29   :  { %1847 = vmatpush.bf16.msra.mxu0 %v3569_v38  ;;  %1860 = vmatpush.bf16.msra.mxu1 %v3697_v39  ;;  %v4866_v14 = vld [vmem:[#allocation2 + $0x6c] sm:$0xf0]  ;;  %v3632_v15 = vld [vmem:[#allocation2 + $0x160] sm:$0xf]  ;;  %v3905_v18 = vor.u32 %v4966_v13, %v3904_v12 }
  0x2a   :  { %v4898_v16 = vld [vmem:[#allocation2 + $0x16c] sm:$0xf0]  ;;  %v3488_v19 = vld [vmem:[#allocation2 + $0x40] sm:$0xf]  ;;  %v3505_v21 = vor.u32 %v4866_v14, %v3504_v6 }
  0x2b   :  { %1873 = vmatpush.bf16.msra.mxu2 %v3825_v44  ;;  %1886 = vmatpush.bf16.msra.mxu3 %v3953_v45  ;;  %v3760_v20 = vld [vmem:[#allocation2 + $0x260] sm:$0xf]  ;;  %v3633_v22 = vor.u32 %v4898_v16, %v3632_v15  ;;  %v4930_v23 = vld [vmem:[#allocation2 + $0x26c] sm:$0xf0] }
  0x2c   :  { %v3888_v24 = vld [vmem:[#allocation2 + $0x360] sm:$0xf]  ;;  %v4962_v25 = vld [vmem:[#allocation2 + $0x36c] sm:$0xf0]  ;;  %v3761_v29 = vor.u32 %v4930_v23, %v3760_v20 }
  0x2d   :  { %1848 = vmatpush.bf16.msra.mxu0 %v3553_v50  ;;  %1861 = vmatpush.bf16.msra.mxu1 %v3681_v51  ;;  %v4862_v26 = vld [vmem:[#allocation2 + $0x4c] sm:$0xf0]  ;;  %v3616_v27 = vld [vmem:[#allocation2 + $0x140] sm:$0xf]  ;;  %v3889_v30 = vor.u32 %v4962_v25, %v3888_v24 }
  0x2e   :  { %v4894_v28 = vld [vmem:[#allocation2 + $0x14c] sm:$0xf0]  ;;  %v3472_v31 = vld [vmem:[#allocation2 + $0x20] sm:$0xf]  ;;  %v3489_v33 = vor.u32 %v4862_v26, %v3488_v19 }
  0x2f   :  { %1874 = vmatpush.bf16.msra.mxu2 %v3809_v56  ;;  %1887 = vmatpush.bf16.msra.mxu3 %v3937_v57  ;;  %v3744_v32 = vld [vmem:[#allocation2 + $0x240] sm:$0xf]  ;;  %v3617_v34 = vor.u32 %v4894_v28, %v3616_v27  ;;  %v4926_v35 = vld [vmem:[#allocation2 + $0x24c] sm:$0xf0] }
  0x30   :  { %v3872_v36 = vld [vmem:[#allocation2 + $0x340] sm:$0xf]  ;;  %v4958_v37 = vld [vmem:[#allocation2 + $0x34c] sm:$0xf0]  ;;  %v3745_v41 = vor.u32 %v4926_v35, %v3744_v32 }
  0x31   :  { %1849 = vmatpush.bf16.msra.mxu0 %v3537_v62  ;;  %1862 = vmatpush.bf16.msra.mxu1 %v3665_v63  ;;  %v4858_v38 = vld [vmem:[#allocation2 + $0x2c] sm:$0xf0]  ;;  %v3600_v39 = vld [vmem:[#allocation2 + $0x120] sm:$0xf] }
  0x32   :  { %v4890_v40 = vld [vmem:[#allocation2 + $0x12c] sm:$0xf0]  ;;  %v3456_v42 = vld [vmem:[#allocation2] sm:$0xf]  ;;  %v3473_v46 = vor.u32 %v4858_v38, %v3472_v31 }
  0x33   :  { %1875 = vmatpush.bf16.msra.mxu2 %v3793_v4  ;;  %1888 = vmatpush.bf16.msra.mxu3 %v3921_v5  ;;  %v4854_v43 = vld [vmem:[#allocation2 + $0xc] sm:$0xf0]  ;;  %v3584_v44 = vld [vmem:[#allocation2 + $0x100] sm:$0xf]  ;;  %v3601_v47 = vor.u32 %v4890_v40, %v3600_v39 }
  0x34   :  { %3450 = vmatmul.msk.bf16.vlgmr.msrb.gmra.mxu0 %vm154_vm1, %v5443_v9  ;;  %3451 = vmatmul.msk.bf16.vlgmr.msrb.gmra.mxu1 %vm154_vm1, %v5443_v9  ;;  %v3728_v45 = vld [vmem:[#allocation2 + $0x220] sm:$0xf]  ;;  %v4922_v48 = vld [vmem:[#allocation2 + $0x22c] sm:$0xf0]  ;;  %v3457_v62 = vor.u32 %v4854_v43, %v3456_v42 }
  0x35   :  { %1850 = vmatpush.bf16.msra.mxu0 %v3521_v8  ;;  %1863 = vmatpush.bf16.msra.mxu1 %v3649_v10  ;;  %v3856_v49 = vld [vmem:[#allocation2 + $0x320] sm:$0xf]  ;;  %v4954_v50 = vld [vmem:[#allocation2 + $0x32c] sm:$0xf0]  ;;  %v3729_v57 = vor.u32 %v4922_v48, %v3728_v45 }
  0x36   :  { %3452 = vmatmul.msk.bf16.vlgmr.msrb.gmra.mxu2 %vm154_vm1, %v5443_v9  ;;  %3453 = vmatmul.msk.bf16.vlgmr.msrb.gmra.mxu3 %vm154_vm1, %v5443_v9  ;;  %v3873_v9 = vor.u32 %v4958_v37, %v3872_v36  ;;  %v4886_v51 = vld [vmem:[#allocation2 + $0x10c] sm:$0xf0]  ;;  %v4080_v52 = vld [vmem:[#allocation2 + $0x4e0] sm:$0xf]  ;;  %v3857_v58 = vor.u32 %v4954_v50, %v3856_v49  ;;  %vm2394_vm1 = vcmask 1041408  }
  0x37   :  { %1876 = vmatpush.bf16.msra.mxu2 %v3777_v17  ;;  %1889 = vmatpush.bf16.msra.mxu3 %v3905_v18  ;;  %v5010_v53 = vld [vmem:[#allocation2 + $0x4ec] sm:$0xf0]  ;;  %v4208_v54 = vld [vmem:[#allocation2 + $0x5e0] sm:$0xf]  ;;  %v3585_v63 = vor.u32 %v4886_v51, %v3584_v44 }
  0x38   :  { %v5042_v55 = vld [vmem:[#allocation2 + $0x5ec] sm:$0xf0]  ;;  %v3712_v56 = vld [vmem:[#allocation2 + $0x200] sm:$0xf]  ;;  %v4081_v4 = vor.u32 %v5010_v53, %v4080_v52 }
  0x39   :  { %1851 = vmatpush.bf16.msra.mxu0 %v3505_v21  ;;  %1864 = vmatpush.bf16.msra.mxu1 %v3633_v22  ;;  %v4918_v59 = vld [vmem:[#allocation2 + $0x20c] sm:$0xf0]  ;;  %v3840_v60 = vld [vmem:[#allocation2 + $0x300] sm:$0xf]  ;;  %v4209_v5 = vor.u32 %v5042_v55, %v4208_v54 }
  0x3a   :  { %v4950_v61 = vld [vmem:[#allocation2 + $0x30c] sm:$0xf0]  ;;  %v4064_v0 = vld [vmem:[#allocation2 + $0x4c0] sm:$0xf]  ;;  %v3713_v11 = vor.u32 %v4918_v59, %v3712_v56 }
  0x3b   :  { %1877 = vmatpush.bf16.msra.mxu2 %v3761_v29  ;;  %1890 = vmatpush.bf16.msra.mxu3 %v3889_v30  ;;  %v4336_v1 = vld [vmem:[#allocation2 + $0x6e0] sm:$0xf]  ;;  %v5074_v2 = vld [vmem:[#allocation2 + $0x6ec] sm:$0xf0]  ;;  %v3841_v12 = vor.u32 %v4950_v61, %v3840_v60 }
  0x3c   :  { %v4464_v3 = vld [vmem:[#allocation2 + $0x7e0] sm:$0xf]  ;;  %v5106_v6 = vld [vmem:[#allocation2 + $0x7ec] sm:$0xf0]  ;;  %v4337_v13 = vor.u32 %v5074_v2, %v4336_v1 }
  0x3d   :  { %1852 = vmatpush.bf16.msra.mxu0 %v3489_v33  ;;  %1865 = vmatpush.bf16.msra.mxu1 %v3617_v34  ;;  %v5006_v7 = vld [vmem:[#allocation2 + $0x4cc] sm:$0xf0]  ;;  %v4192_v8 = vld [vmem:[#allocation2 + $0x5c0] sm:$0xf]  ;;  %v4465_v14 = vor.u32 %v5106_v6, %v4464_v3 }
  0x3e   :  { %v5038_v10 = vld [vmem:[#allocation2 + $0x5cc] sm:$0xf0]  ;;  %v4048_v15 = vld [vmem:[#allocation2 + $0x4a0] sm:$0xf]  ;;  %v4065_v17 = vor.u32 %v5006_v7, %v4064_v0 }
  0x3f   :  { %1878 = vmatpush.bf16.msra.mxu2 %v3745_v41  ;;  %1891 = vmatpush.bf16.msra.mxu3 %v3873_v9  ;;  %v4320_v16 = vld [vmem:[#allocation2 + $0x6c0] sm:$0xf]  ;;  %v4193_v18 = vor.u32 %v5038_v10, %v4192_v8  ;;  %v5070_v19 = vld [vmem:[#allocation2 + $0x6cc] sm:$0xf0] }
  0x40   :  { %v4448_v20 = vld [vmem:[#allocation2 + $0x7c0] sm:$0xf]  ;;  %v5102_v21 = vld [vmem:[#allocation2 + $0x7cc] sm:$0xf0]  ;;  %v4321_v25 = vor.u32 %v5070_v19, %v4320_v16 }
  0x41   :  { %1853 = vmatpush.bf16.msra.mxu0 %v3473_v46  ;;  %1866 = vmatpush.bf16.msra.mxu1 %v3601_v47  ;;  %v5002_v22 = vld [vmem:[#allocation2 + $0x4ac] sm:$0xf0]  ;;  %v4176_v23 = vld [vmem:[#allocation2 + $0x5a0] sm:$0xf]  ;;  %v4449_v26 = vor.u32 %v5102_v21, %v4448_v20 }
  0x42   :  { %v5034_v24 = vld [vmem:[#allocation2 + $0x5ac] sm:$0xf0]  ;;  %v4032_v27 = vld [vmem:[#allocation2 + $0x480] sm:$0xf]  ;;  %v4049_v29 = vor.u32 %v5002_v22, %v4048_v15 }
  0x43   :  { %1879 = vmatpush.bf16.msra.mxu2 %v3729_v57  ;;  %1892 = vmatpush.bf16.msra.mxu3 %v3857_v58  ;;  %v4304_v28 = vld [vmem:[#allocation2 + $0x6a0] sm:$0xf]  ;;  %v4177_v30 = vor.u32 %v5034_v24, %v4176_v23  ;;  %v5066_v31 = vld [vmem:[#allocation2 + $0x6ac] sm:$0xf0] }
  0x44   :  { %v4432_v32 = vld [vmem:[#allocation2 + $0x7a0] sm:$0xf]  ;;  %v5098_v33 = vld [vmem:[#allocation2 + $0x7ac] sm:$0xf0]  ;;  %v4305_v37 = vor.u32 %v5066_v31, %v4304_v28 }
  0x45   :  { %1854 = vmatpush.bf16.msra.mxu0 %v3457_v62  ;;  %1867 = vmatpush.bf16.msra.mxu1 %v3585_v63  ;;  %v4998_v34 = vld [vmem:[#allocation2 + $0x48c] sm:$0xf0]  ;;  %v4160_v35 = vld [vmem:[#allocation2 + $0x580] sm:$0xf]  ;;  %v4433_v38 = vor.u32 %v5098_v33, %v4432_v32 }
  0x46   :  { %v5030_v36 = vld [vmem:[#allocation2 + $0x58c] sm:$0xf0]  ;;  %v4016_v39 = vld [vmem:[#allocation2 + $0x460] sm:$0xf]  ;;  %v4033_v41 = vor.u32 %v4998_v34, %v4032_v27 }
  0x47   :  { %1880 = vmatpush.bf16.msra.mxu2 %v3713_v11  ;;  %1893 = vmatpush.bf16.msra.mxu3 %v3841_v12  ;;  %v4288_v40 = vld [vmem:[#allocation2 + $0x680] sm:$0xf]  ;;  %v4161_v9 = vor.u32 %v5030_v36, %v4160_v35  ;;  %v5062_v42 = vld [vmem:[#allocation2 + $0x68c] sm:$0xf0] }
  0x48   :  { %v4416_v43 = vld [vmem:[#allocation2 + $0x780] sm:$0xf]  ;;  %v5094_v44 = vld [vmem:[#allocation2 + $0x78c] sm:$0xf0]  ;;  %v4289_v48 = vor.u32 %v5062_v42, %v4288_v40  ;;  %v4912_v40 = vld [vmem:[#allocation2 + $0x1e4] sm:$0xf] }
  0x49   :  { %1899 = vmatpush.bf16.msrb.mxu0 %v4081_v4  ;;  %1912 = vmatpush.bf16.msrb.mxu1 %v4209_v5  ;;  %v4994_v45 = vld [vmem:[#allocation2 + $0x46c] sm:$0xf0]  ;;  %v4144_v46 = vld [vmem:[#allocation2 + $0x560] sm:$0xf]  ;;  %v4417_v49 = vor.u32 %v5094_v44, %v4416_v43  ;;  %v3698_v42 = vld [vmem:[#allocation2 + $0x1f0] sm:$0xf0] }
  0x4a   :  { %v5026_v47 = vld [vmem:[#allocation2 + $0x56c] sm:$0xf0]  ;;  %v4017_v50 = vor.u32 %v4994_v45, %v4016_v39  ;;  %v4000_v52 = vld [vmem:[#allocation2 + $0x440] sm:$0xf]  ;;  %v3570_v39 = vld [vmem:[#allocation2 + $0xf0] sm:$0xf0] }
  0x4b   :  { %1925 = vmatpush.bf16.msrb.mxu2 %v4337_v13  ;;  %1938 = vmatpush.bf16.msrb.mxu3 %v4465_v14  ;;  %v4145_v51 = vor.u32 %v5026_v47, %v4144_v46  ;;  %v4990_v53 = vld [vmem:[#allocation2 + $0x44c] sm:$0xf0]  ;;  %v4128_v54 = vld [vmem:[#allocation2 + $0x540] sm:$0xf] }
  0x4c   :  { %v4001_v55 = vor.u32 %v4990_v53, %v4000_v52  ;;  %v5022_v56 = vld [vmem:[#allocation2 + $0x54c] sm:$0xf0]  ;;  %v4272_v58 = vld [vmem:[#allocation2 + $0x660] sm:$0xf] }
  0x4d   :  { %1900 = vmatpush.bf16.msrb.mxu0 %v4065_v17  ;;  %1913 = vmatpush.bf16.msrb.mxu1 %v4193_v18  ;;  %v4129_v57 = vor.u32 %v5022_v56, %v4128_v54  ;;  %v5058_v59 = vld [vmem:[#allocation2 + $0x66c] sm:$0xf0]  ;;  %v4400_v61 = vld [vmem:[#allocation2 + $0x760] sm:$0xf]  ;;  %v3554_v54 = vld [vmem:[#allocation2 + $0xd0] sm:$0xf0] }
  0x4e   :  { %v4273_v60 = vor.u32 %v5058_v59, %v4272_v58  ;;  %v5090_v62 = vld [vmem:[#allocation2 + $0x76c] sm:$0xf0]  ;;  %v3984_v0 = vld [vmem:[#allocation2 + $0x420] sm:$0xf]  ;;  %v3682_v56 = vld [vmem:[#allocation2 + $0x1d0] sm:$0xf0] }
  0x4f   :  { %1926 = vmatpush.bf16.msrb.mxu2 %v4321_v25  ;;  %1939 = vmatpush.bf16.msrb.mxu3 %v4449_v26  ;;  %v4401_v63 = vor.u32 %v5090_v62, %v4400_v61  ;;  %v4986_v1 = vld [vmem:[#allocation2 + $0x42c] sm:$0xf0]  ;;  %v4112_v2 = vld [vmem:[#allocation2 + $0x520] sm:$0xf]  ;;  %v4944_v61 = vld [vmem:[#allocation2 + $0x2e4] sm:$0xf] }
  0x50   :  { %v3985_v3 = vor.u32 %v4986_v1, %v3984_v0  ;;  %v5018_v4 = vld [vmem:[#allocation2 + $0x52c] sm:$0xf0]  ;;  %v4256_v6 = vld [vmem:[#allocation2 + $0x640] sm:$0xf]  ;;  %v3826_v62 = vld [vmem:[#allocation2 + $0x2f0] sm:$0xf0] }
  0x51   :  { %1901 = vmatpush.bf16.msrb.mxu0 %v4049_v29  ;;  %1914 = vmatpush.bf16.msrb.mxu1 %v4177_v30  ;;  %v4113_v5 = vor.u32 %v5018_v4, %v4112_v2  ;;  %v5054_v7 = vld [vmem:[#allocation2 + $0x64c] sm:$0xf0]  ;;  %v4384_v8 = vld [vmem:[#allocation2 + $0x740] sm:$0xf]  ;;  %v3954_v0 = vld [vmem:[#allocation2 + $0x3f0] sm:$0xf0] }
  0x52   :  { %v4257_v10 = vor.u32 %v5054_v7, %v4256_v6  ;;  %v5086_v11 = vld [vmem:[#allocation2 + $0x74c] sm:$0xf0]  ;;  %v3968_v13 = vld [vmem:[#allocation2 + $0x400] sm:$0xf]  ;;  %v4872_v1 = vld [vmem:[#allocation2 + $0xa4] sm:$0xf] }
  0x53   :  { %1927 = vmatpush.bf16.msrb.mxu2 %v4305_v37  ;;  %1940 = vmatpush.bf16.msrb.mxu3 %v4433_v38  ;;  %v4385_v12 = vor.u32 %v5086_v11, %v4384_v8  ;;  %v4982_v14 = vld [vmem:[#allocation2 + $0x40c] sm:$0xf0]  ;;  %v4096_v16 = vld [vmem:[#allocation2 + $0x500] sm:$0xf]  ;;  %v4880_v38 = vld [vmem:[#allocation2 + $0xe4] sm:$0xf] }
  0x54   :  { %v3969_v15 = vor.u32 %v4982_v14, %v3968_v13  ;;  %v5014_v17 = vld [vmem:[#allocation2 + $0x50c] sm:$0xf0]  ;;  %v4240_v19 = vld [vmem:[#allocation2 + $0x620] sm:$0xf]  ;;  %v3573_v47 = vor.u32 %v4880_v38, %v3570_v39  ;;  %v3538_v6 = vld [vmem:[#allocation2 + $0xb0] sm:$0xf0] }
  0x55   :  { %1902 = vmatpush.bf16.msrb.mxu0 %v4033_v41  ;;  %1915 = vmatpush.bf16.msrb.mxu1 %v4161_v9  ;;  %v4097_v18 = vor.u32 %v5014_v17, %v4096_v16  ;;  %v5050_v20 = vld [vmem:[#allocation2 + $0x62c] sm:$0xf0]  ;;  %v4368_v21 = vld [vmem:[#allocation2 + $0x720] sm:$0xf]  ;;  %v4904_v7 = vld [vmem:[#allocation2 + $0x1a4] sm:$0xf]  ;;  %v3541_v16 = vor.u32 %v4872_v1, %v3538_v6 }
  0x56   :  { %v4241_v22 = vor.u32 %v5050_v20, %v4240_v19  ;;  %v5082_v23 = vld [vmem:[#allocation2 + $0x72c] sm:$0xf0]  ;;  %v4224_v25 = vld [vmem:[#allocation2 + $0x600] sm:$0xf]  ;;  %v3666_v8 = vld [vmem:[#allocation2 + $0x1b0] sm:$0xf0] }
  0x57   :  { %1928 = vmatpush.bf16.msrb.mxu2 %v4289_v48  ;;  %1941 = vmatpush.bf16.msrb.mxu3 %v4417_v49  ;;  %v4369_v24 = vor.u32 %v5082_v23, %v4368_v21  ;;  %v5046_v26 = vld [vmem:[#allocation2 + $0x60c] sm:$0xf0]  ;;  %v4352_v28 = vld [vmem:[#allocation2 + $0x700] sm:$0xf]  ;;  %v3701_v48 = vor.u32 %v4912_v40, %v3698_v42  ;;  %v4876_v49 = vld [vmem:[#allocation2 + $0xc4] sm:$0xf]  ;;  %v3669_v21 = vor.u32 %v4904_v7, %v3666_v8 }
  0x58   :  { %v4225_v27 = vor.u32 %v5046_v26, %v4224_v25  ;;  %v5078_v29 = vld [vmem:[#allocation2 + $0x70c] sm:$0xf0]  ;;  %v5472_v31 = vld [vmem:[%s5767_s30] sm:$0xff]  ;;  %v3557_v4 = vor.u32 %v4876_v49, %v3554_v54  ;;  %v3938_v23 = vld [vmem:[#allocation2 + $0x3d0] sm:$0xf0] }
  0x59   :  { %1903 = vmatpush.bf16.msrb.mxu0 %v4017_v50  ;;  %1916 = vmatpush.bf16.msrb.mxu1 %v4145_v51  ;;  %v4353_v30 = vor.u32 %v5078_v29, %v4352_v28  ;;  %v118_v32 = vperm.slane %v5472_v31, 0  ;;  %v119_v33 = vperm.slane %v5472_v31, 1  ;;  %v120_v43 = vperm.slane %v5472_v31, 2  ;;  %v4940_v17 = vld [vmem:[#allocation2 + $0x2c4] sm:$0xf] }
  0x5a   :  { %v121_v44 = vperm.slane %v5472_v31, 3  ;;  %v122_v14 = vperm.slane %v5472_v31, 4  ;;  %v4900_v28 = vld [vmem:[#allocation2 + $0x184] sm:$0xf]  ;;  %v3650_v29 = vld [vmem:[#allocation2 + $0x190] sm:$0xf0] }
  0x5b   :  { %1929 = vmatpush.bf16.msrb.mxu2 %v4273_v60  ;;  %1942 = vmatpush.bf16.msrb.mxu3 %v4401_v63  ;;  %v4976_v63 = vld [vmem:[#allocation2 + $0x3e4] sm:$0xf]  ;;  %v3794_v38 = vld [vmem:[#allocation2 + $0x2b0] sm:$0xf0]  ;;  %v3653_v40 = vor.u32 %v4900_v28, %v3650_v29 }
  0x5c   :  { %v3957_v13 = vor.u32 %v4976_v63, %v3954_v0  ;;  %v4968_v42 = vld [vmem:[#allocation2 + $0x3a4] sm:$0xf]  ;;  %v3618_v6 = vld [vmem:[#allocation2 + $0x150] sm:$0xf0] }
  0x5d   :  { %1904 = vmatpush.bf16.msrb.mxu0 %v4001_v55  ;;  %1917 = vmatpush.bf16.msrb.mxu1 %v4129_v57  ;;  %v4908_v55 = vld [vmem:[#allocation2 + $0x1c4] sm:$0xf] }
  0x5e   :  { %v4896_v49 = vld [vmem:[#allocation2 + $0x164] sm:$0xf] }
  0x5f   :  { %1930 = vmatpush.bf16.msrb.mxu2 %v4257_v10  ;;  %1943 = vmatpush.bf16.msrb.mxu3 %v4385_v12  ;;  %v3829_v12 = vor.u32 %v4944_v61, %v3826_v62  ;;  %v4860_v1 = vld [vmem:[#allocation2 + $0x44] sm:$0xf] }
  0x61   :  { %1905 = vmatpush.bf16.msrb.mxu0 %v3985_v3  ;;  %1918 = vmatpush.bf16.msrb.mxu1 %v4113_v5  ;;  %v3685_v5 = vor.u32 %v4908_v55, %v3682_v56  ;;  %v4932_v56 = vld [vmem:[#allocation2 + $0x284] sm:$0xf] }
  0x63   :  { %1931 = vmatpush.bf16.msrb.mxu2 %v4241_v22  ;;  %1944 = vmatpush.bf16.msrb.mxu3 %v4369_v24  ;;  %v4972_v22 = vld [vmem:[#allocation2 + $0x3c4] sm:$0xf] }
  0x64   :  { %v4868_v24 = vld [vmem:[#allocation2 + $0x84] sm:$0xf] }
  0x65   :  { %1906 = vmatpush.bf16.msrb.mxu0 %v3969_v15  ;;  %1919 = vmatpush.bf16.msrb.mxu1 %v4097_v18  ;;  %v123_v15 = vperm.slane %v5472_v31, 5  ;;  %v3810_v18 = vld [vmem:[#allocation2 + $0x2d0] sm:$0xf0] }
  0x67   :  { %1932 = vmatpush.bf16.msrb.mxu2 %v4225_v27  ;;  %1945 = vmatpush.bf16.msrb.mxu3 %v4353_v30  ;;  %v3522_v27 = vld [vmem:[#allocation2 + $0x90] sm:$0xf0] }
  0x68   :  { %v3525_v39 = vor.u32 %v4868_v24, %v3522_v27  ;;  %v3602_v27 = vld [vmem:[#allocation2 + $0x130] sm:$0xf0] }
  0xa1   :  { %v192_v34 = vpop.f32.mrf.mxu0  ;;  %v205_v35 = vpop.f32.mrf.mxu1 }
  0xa2   :  { %v193_v36 = vadd.f32 %v192_v34, %v118_v32  ;;  %v206_v37 = vadd.f32 %v205_v35, %v119_v33  ;;  %v3813_v33 = vor.u32 %v4940_v17, %v3810_v18  ;;  %v3890_v17 = vld [vmem:[#allocation2 + $0x370] sm:$0xf0] }
  0xa4   :  { %v287_v41 = vmul.f32 0.2, %v193_v36  ;;  %v288_v9 = vmul.f32 0.2, %v206_v37 }
  0xa6   :  { %v295_v45 = vmax.f32 %v193_v36, %v287_v41  ;;  %v296_v46 = vmax.f32 %v206_v37, %v288_v9  ;;  %v3941_v36 = vor.u32 %v4972_v22, %v3938_v23  ;;  %v4936_v37 = vld [vmem:[#allocation2 + $0x2a4] sm:$0xf]  ;;  %v124_v41 = vperm.slane %v5472_v31, 6 }
  0xa7   :  { %v125_v9 = vperm.slane %v5472_v31, 7  ;;  %v3906_v31 = vld [vmem:[#allocation2 + $0x390] sm:$0xf0]  ;;  %v4856_v22 = vld [vmem:[#allocation2 + $0x24] sm:$0xf] }
  0xa8   :  { %v5478_v50 = vpack.c.bf16 %v295_v45, %v295_v45  ;;  %v5480_v51 = vpack.c.bf16 %v296_v46, %v296_v46  ;;  %v4864_v46 = vld [vmem:[#allocation2 + $0x64] sm:$0xf] }
  0xa9   :  { %v218_v52 = vpop.f32.mrf.mxu2  ;;  %v231_v53 = vpop.f32.mrf.mxu3 }
  0xaa   :  { %v219_v57 = vadd.f32 %v218_v52, %v120_v43  ;;  %v232_v58 = vadd.f32 %v231_v53, %v121_v44  ;;  %v194_v59 = vpop.f32.mrf.mxu0  ;;  %v207_v60 = vpop.f32.mrf.mxu1  ;;  %1855 = vmatmul.bf16.vlgmr.msra.gmra.mxu0 %v5478_v50  ;;  %1868 = vmatmul.bf16.vlgmr.msra.gmra.mxu1 %v5480_v51  ;;  %v3922_v43 = vld [vmem:[#allocation2 + $0x3b0] sm:$0xf0] }
  0xab   :  { %1951 = vmatpush.bf16.msra.mxu0 %v3573_v47  ;;  %1964 = vmatpush.bf16.msra.mxu1 %v3701_v48  ;;  %v3797_v47 = vor.u32 %v4936_v37, %v3794_v38  ;;  %v3506_v48 = vld [vmem:[#allocation2 + $0x70] sm:$0xf0]  ;;  %v3925_v55 = vor.u32 %v4968_v42, %v3922_v43  ;;  %v4884_v42 = vld [vmem:[#allocation2 + $0x104] sm:$0xf] }
  0xac   :  { %v289_v2 = vmul.f32 0.2, %v219_v57  ;;  %v290_v3 = vmul.f32 0.2, %v232_v58  ;;  %v3634_v52 = vld [vmem:[#allocation2 + $0x170] sm:$0xf0]  ;;  %v3509_v63 = vor.u32 %v4864_v46, %v3506_v48 }
  0xad   :  { %v3637_v0 = vor.u32 %v4896_v49, %v3634_v52  ;;  %v3586_v43 = vld [vmem:[#allocation2 + $0x110] sm:$0xf0]  ;;  %v5040_v48 = vld [vmem:[#allocation2 + $0x5e4] sm:$0xf] }
  0xae   :  { %v297_v10 = vmax.f32 %v219_v57, %v289_v2  ;;  %v298_v11 = vmax.f32 %v232_v58, %v290_v3  ;;  %v3778_v57 = vld [vmem:[#allocation2 + $0x290] sm:$0xf0]  ;;  %v4964_v58 = vld [vmem:[#allocation2 + $0x384] sm:$0xf] }
  0xaf   :  { %1952 = vmatpush.bf16.msra.mxu0 %v3557_v4  ;;  %1965 = vmatpush.bf16.msra.mxu1 %v3685_v5  ;;  %v3490_v4 = vld [vmem:[#allocation2 + $0x50] sm:$0xf0]  ;;  %v4892_v5 = vld [vmem:[#allocation2 + $0x144] sm:$0xf] }
  0xb0   :  { %v5486_v19 = vpack.c.bf16 %v297_v10, %v297_v10  ;;  %v5488_v20 = vpack.c.bf16 %v298_v11, %v298_v11  ;;  %v3781_v10 = vor.u32 %v4932_v56, %v3778_v57  ;;  %v3909_v11 = vor.u32 %v4964_v58, %v3906_v31  ;;  %v4210_v49 = vld [vmem:[#allocation2 + $0x5f0] sm:$0xf0]  ;;  %v4920_v52 = vld [vmem:[#allocation2 + $0x224] sm:$0xf] }
  0xb1   :  { %v220_v25 = vpop.f32.mrf.mxu2  ;;  %v233_v26 = vpop.f32.mrf.mxu3  ;;  %v3493_v18 = vor.u32 %v4860_v1, %v3490_v4  ;;  %v3589_v57 = vor.u32 %v4884_v42, %v3586_v43  ;;  %v4213_v31 = vor.u32 %v5040_v48, %v4210_v49  ;;  %v3714_v4 = vld [vmem:[#allocation2 + $0x210] sm:$0xf0] }
  0xb2   :  { %1881 = vmatmul.bf16.vlgmr.msra.gmra.mxu2 %v5486_v19  ;;  %1894 = vmatmul.bf16.vlgmr.msra.gmra.mxu3 %v5488_v20  ;;  %v244_v30 = vpop.f32.mrf.mxu0  ;;  %v257_v32 = vpop.f32.mrf.mxu1  ;;  %v3474_v25 = vld [vmem:[#allocation2 + $0x30] sm:$0xf0]  ;;  %v4888_v26 = vld [vmem:[#allocation2 + $0x124] sm:$0xf] }
  0xb3   :  { %1977 = vmatpush.bf16.msra.mxu2 %v3829_v12  ;;  %1990 = vmatpush.bf16.msra.mxu3 %v3957_v13  ;;  %v245_v34 = vadd.f32 %v244_v30, %v122_v14  ;;  %v258_v35 = vadd.f32 %v257_v32, %v123_v15  ;;  %v4928_v12 = vld [vmem:[#allocation2 + $0x264] sm:$0xf]  ;;  %v3762_v13 = vld [vmem:[#allocation2 + $0x270] sm:$0xf0]  ;;  %v3477_v37 = vor.u32 %v4856_v22, %v3474_v25 }
  0xb4   :  { %1953 = vmatpush.bf16.msra.mxu0 %v3541_v16  ;;  %1966 = vmatpush.bf16.msra.mxu1 %v3669_v21  ;;  %v4960_v14 = vld [vmem:[#allocation2 + $0x364] sm:$0xf]  ;;  %v3621_v21 = vor.u32 %v4892_v5, %v3618_v6  ;;  %v3765_v28 = vor.u32 %v4928_v12, %v3762_v13  ;;  %v3605_v38 = vor.u32 %v4888_v26, %v3602_v27  ;;  %v3842_v6 = vld [vmem:[#allocation2 + $0x310] sm:$0xf0] }
  0xb5   :  { %v291_v44 = vmul.f32 0.2, %v245_v34  ;;  %v292_v45 = vmul.f32 0.2, %v258_v35  ;;  %v3893_v29 = vor.u32 %v4960_v14, %v3890_v17  ;;  %v4924_v30 = vld [vmem:[#allocation2 + $0x244] sm:$0xf] }
  0xb6   :  { %v4948_v5 = vld [vmem:[#allocation2 + $0x304] sm:$0xf]  ;;  %v4050_v17 = vld [vmem:[#allocation2 + $0x4b0] sm:$0xf0] }
  0xb7   :  { %v299_v53 = vmax.f32 %v245_v34, %v291_v44  ;;  %v300_v54 = vmax.f32 %v258_v35, %v292_v45  ;;  %1978 = vmatpush.bf16.msra.mxu2 %v3813_v33  ;;  %1991 = vmatpush.bf16.msra.mxu3 %v3941_v36  ;;  %v3746_v34 = vld [vmem:[#allocation2 + $0x250] sm:$0xf0]  ;;  %v4956_v35 = vld [vmem:[#allocation2 + $0x344] sm:$0xf] }
  0xb8   :  { %1954 = vmatpush.bf16.msra.mxu0 %v3525_v39  ;;  %1967 = vmatpush.bf16.msra.mxu1 %v3653_v40  ;;  %v3874_v36 = vld [vmem:[#allocation2 + $0x350] sm:$0xf0]  ;;  %v5008_v44 = vld [vmem:[#allocation2 + $0x4e4] sm:$0xf]  ;;  %v3749_v46 = vor.u32 %v4924_v30, %v3746_v34 }
  0xb9   :  { %v5494_v59 = vpack.c.bf16 %v299_v53, %v299_v53  ;;  %v5496_v60 = vpack.c.bf16 %v300_v54, %v300_v54  ;;  %v270_v61 = vpop.f32.mrf.mxu2  ;;  %v283_v62 = vpop.f32.mrf.mxu3  ;;  %v4082_v45 = vld [vmem:[#allocation2 + $0x4f0] sm:$0xf0]  ;;  %v4952_v54 = vld [vmem:[#allocation2 + $0x324] sm:$0xf] }
  0xba   :  { %v271_v2 = vadd.f32 %v270_v61, %v124_v41  ;;  %v284_v3 = vadd.f32 %v283_v62, %v125_v9  ;;  %v246_v7 = vpop.f32.mrf.mxu0  ;;  %v259_v8 = vpop.f32.mrf.mxu1  ;;  %v4852_v41 = vld [vmem:[#allocation2 + $0x4] sm:$0xf]  ;;  %v3458_v9 = vld [vmem:[#allocation2 + $0x10] sm:$0xf0]  ;;  %v4085_v58 = vor.u32 %v5008_v44, %v4082_v45 }
  0xbb   :  { %1979 = vmatpush.bf16.msra.mxu2 %v3797_v47  ;;  %1992 = vmatpush.bf16.msra.mxu3 %v3925_v55  ;;  %v3877_v47 = vor.u32 %v4956_v35, %v3874_v36  ;;  %v3730_v53 = vld [vmem:[#allocation2 + $0x230] sm:$0xf0]  ;;  %v3461_v56 = vor.u32 %v4852_v41, %v3458_v9  ;;  %v5004_v61 = vld [vmem:[#allocation2 + $0x4c4] sm:$0xf] }
  0xbc   :  { %v293_v15 = vmul.f32 0.2, %v271_v2  ;;  %v294_v16 = vmul.f32 0.2, %v284_v3  ;;  %1907 = vmatmul.bf16.vlgmr.msrb.gmra.mxu0 %v5494_v59  ;;  %1920 = vmatmul.bf16.vlgmr.msrb.gmra.mxu1 %v5496_v60  ;;  %v3858_v55 = vld [vmem:[#allocation2 + $0x330] sm:$0xf0] }
  0xbd   :  { %1955 = vmatpush.bf16.msra.mxu0 %v3509_v63  ;;  %1968 = vmatpush.bf16.msra.mxu1 %v3637_v0  ;;  %v4066_v62 = vld [vmem:[#allocation2 + $0x4d0] sm:$0xf0]  ;;  %v5036_v63 = vld [vmem:[#allocation2 + $0x5c4] sm:$0xf]  ;;  %v3733_v0 = vor.u32 %v4920_v52, %v3730_v53  ;;  %v3861_v1 = vor.u32 %v4952_v54, %v3858_v55 }
  0xbe   :  { %v301_v23 = vmax.f32 %v271_v2, %v293_v15  ;;  %v302_v24 = vmax.f32 %v284_v3, %v294_v16  ;;  %v4194_v2 = vld [vmem:[#allocation2 + $0x5d0] sm:$0xf0]  ;;  %v4916_v3 = vld [vmem:[#allocation2 + $0x204] sm:$0xf]  ;;  %v4069_v12 = vor.u32 %v5004_v61, %v4066_v62  ;;  %v3845_v16 = vor.u32 %v4948_v5, %v3842_v6 }
  0xbf   :  { %1980 = vmatpush.bf16.msra.mxu2 %v3781_v10  ;;  %1993 = vmatpush.bf16.msra.mxu3 %v3909_v11  ;;  %v5072_v7 = vld [vmem:[#allocation2 + $0x6e4] sm:$0xf]  ;;  %v4338_v8 = vld [vmem:[#allocation2 + $0x6f0] sm:$0xf0]  ;;  %v4197_v13 = vor.u32 %v5036_v63, %v4194_v2  ;;  %v3717_v15 = vor.u32 %v4916_v3, %v3714_v4 }
  0xc0   :  { %v5500_v32 = vpack.c.bf16 %v301_v23, %v301_v23  ;;  %v5502_v33 = vpack.c.bf16 %v302_v24, %v302_v24  ;;  %v5104_v10 = vld [vmem:[#allocation2 + $0x7e4] sm:$0xf]  ;;  %v4466_v11 = vld [vmem:[#allocation2 + $0x7f0] sm:$0xf0]  ;;  %v4341_v22 = vor.u32 %v5072_v7, %v4338_v8 }
  0xc1   :  { %1956 = vmatpush.bf16.msra.mxu0 %v3493_v18  ;;  %1969 = vmatpush.bf16.msra.mxu1 %v3621_v21  ;;  %v272_v39 = vpop.f32.mrf.mxu2  ;;  %v285_v40 = vpop.f32.mrf.mxu3  ;;  %v5000_v14 = vld [vmem:[#allocation2 + $0x4a4] sm:$0xf]  ;;  %v4178_v21 = vld [vmem:[#allocation2 + $0x5b0] sm:$0xf0]  ;;  %v4469_v23 = vor.u32 %v5104_v10, %v4466_v11 }
  0xc2   :  { %1933 = vmatmul.bf16.vlgmr.msrb.gmra.mxu2 %v5500_v32  ;;  %1946 = vmatmul.bf16.vlgmr.msrb.gmra.mxu3 %v5502_v33  ;;  %v5032_v18 = vld [vmem:[#allocation2 + $0x5a4] sm:$0xf]  ;;  %v4322_v25 = vld [vmem:[#allocation2 + $0x6d0] sm:$0xf0] }
  0xc3   :  { %1981 = vmatpush.bf16.msra.mxu2 %v3765_v28  ;;  %1994 = vmatpush.bf16.msra.mxu3 %v3893_v29  ;;  %v5068_v24 = vld [vmem:[#allocation2 + $0x6c4] sm:$0xf]  ;;  %v4450_v27 = vld [vmem:[#allocation2 + $0x7d0] sm:$0xf0]  ;;  %v4053_v28 = vor.u32 %v5000_v14, %v4050_v17  ;;  %v4181_v29 = vor.u32 %v5032_v18, %v4178_v21 }
  0xc4   :  { %v5100_v26 = vld [vmem:[#allocation2 + $0x7c4] sm:$0xf]  ;;  %v4034_v34 = vld [vmem:[#allocation2 + $0x490] sm:$0xf0] }
  0xc5   :  { %1957 = vmatpush.bf16.msra.mxu0 %v3477_v37  ;;  %1970 = vmatpush.bf16.msra.mxu1 %v3605_v38  ;;  %v4996_v30 = vld [vmem:[#allocation2 + $0x484] sm:$0xf]  ;;  %v4162_v36 = vld [vmem:[#allocation2 + $0x590] sm:$0xf0]  ;;  %v4325_v37 = vor.u32 %v5068_v24, %v4322_v25  ;;  %v4453_v38 = vor.u32 %v5100_v26, %v4450_v27  ;;  %v3576_v26 = vld [vmem:[#allocation2 + $0xe8] sm:$0xf] }
  0xc6   :  { %v5028_v35 = vld [vmem:[#allocation2 + $0x584] sm:$0xf]  ;;  %v4306_v40 = vld [vmem:[#allocation2 + $0x6b0] sm:$0xf0]  ;;  %v4037_v42 = vor.u32 %v4996_v30, %v4034_v34  ;;  %v4883_v27 = vld [vmem:[#allocation2 + $0xf4] sm:$0xf0] }
  0xc7   :  { %1982 = vmatpush.bf16.msra.mxu2 %v3749_v46  ;;  %1995 = vmatpush.bf16.msra.mxu3 %v3877_v47  ;;  %v5064_v39 = vld [vmem:[#allocation2 + $0x6a4] sm:$0xf]  ;;  %v4434_v9 = vld [vmem:[#allocation2 + $0x7b0] sm:$0xf0]  ;;  %v4165_v43 = vor.u32 %v5028_v35, %v4162_v36  ;;  %v3704_v30 = vld [vmem:[#allocation2 + $0x1e8] sm:$0xf] }
  0xc8   :  { %v5096_v41 = vld [vmem:[#allocation2 + $0x7a4] sm:$0xf]  ;;  %v4018_v45 = vld [vmem:[#allocation2 + $0x470] sm:$0xf0]  ;;  %v4309_v48 = vor.u32 %v5064_v39, %v4306_v40  ;;  %v4915_v34 = vld [vmem:[#allocation2 + $0x1f4] sm:$0xf0] }
  0xc9   :  { %1958 = vmatpush.bf16.msra.mxu0 %v3461_v56  ;;  %1971 = vmatpush.bf16.msra.mxu1 %v3589_v57  ;;  %v4992_v44 = vld [vmem:[#allocation2 + $0x464] sm:$0xf]  ;;  %v4146_v47 = vld [vmem:[#allocation2 + $0x570] sm:$0xf0]  ;;  %v4437_v49 = vor.u32 %v5096_v41, %v4434_v9  ;;  %v3577_v41 = vor.u32 %v4883_v27, %v3576_v26  ;;  %v3705_v9 = vor.u32 %v4915_v34, %v3704_v30  ;;  %v3512_v26 = vld [vmem:[#allocation2 + $0x68] sm:$0xf] }
  0xca   :  { %v5024_v46 = vld [vmem:[#allocation2 + $0x564] sm:$0xf]  ;;  %v4290_v53 = vld [vmem:[#allocation2 + $0x690] sm:$0xf0]  ;;  %v4021_v56 = vor.u32 %v4992_v44, %v4018_v45  ;;  %v3688_v44 = vld [vmem:[#allocation2 + $0x1c8] sm:$0xf] }
  0xcb   :  { %1983 = vmatpush.bf16.msra.mxu2 %v3733_v0  ;;  %1996 = vmatpush.bf16.msra.mxu3 %v3861_v1  ;;  %v5060_v52 = vld [vmem:[#allocation2 + $0x684] sm:$0xf]  ;;  %v4418_v55 = vld [vmem:[#allocation2 + $0x790] sm:$0xf0]  ;;  %v4149_v57 = vor.u32 %v5024_v46, %v4146_v47  ;;  %v4911_v47 = vld [vmem:[#allocation2 + $0x1d4] sm:$0xf0] }
  0xcc   :  { %1959 = vmatmul.bf16.vlgmr.msra.gmra.mxu0 %v5478_v50  ;;  %1972 = vmatmul.bf16.vlgmr.msra.gmra.mxu1 %v5480_v51  ;;  %v5092_v54 = vld [vmem:[#allocation2 + $0x784] sm:$0xf]  ;;  %v4130_v62 = vld [vmem:[#allocation2 + $0x550] sm:$0xf0]  ;;  %v4293_v63 = vor.u32 %v5060_v52, %v4290_v53  ;;  %v4867_v27 = vld [vmem:[#allocation2 + $0x74] sm:$0xf0] }
  0xcd   :  { %2003 = vmatpush.bf16.msrb.mxu0 %v4085_v58  ;;  %2016 = vmatpush.bf16.msrb.mxu1 %v4213_v31  ;;  %v4988_v58 = vld [vmem:[#allocation2 + $0x444] sm:$0xf]  ;;  %v4002_v31 = vld [vmem:[#allocation2 + $0x450] sm:$0xf0]  ;;  %v4421_v0 = vor.u32 %v5092_v54, %v4418_v55  ;;  %v3832_v54 = vld [vmem:[#allocation2 + $0x2e8] sm:$0xf] }
  0xce   :  { %v5020_v61 = vld [vmem:[#allocation2 + $0x544] sm:$0xf]  ;;  %v4274_v2 = vld [vmem:[#allocation2 + $0x670] sm:$0xf0]  ;;  %v4005_v5 = vor.u32 %v4988_v58, %v4002_v31  ;;  %v4947_v55 = vld [vmem:[#allocation2 + $0x2f4] sm:$0xf0]  ;;  %v3689_v31 = vor.u32 %v4911_v47, %v3688_v44 }
  0xcf   :  { %1984 = vmatpush.bf16.msra.mxu2 %v3717_v15  ;;  %1997 = vmatpush.bf16.msra.mxu3 %v3845_v16  ;;  %v5056_v1 = vld [vmem:[#allocation2 + $0x664] sm:$0xf]  ;;  %v4402_v4 = vld [vmem:[#allocation2 + $0x770] sm:$0xf0]  ;;  %v4133_v6 = vor.u32 %v5020_v61, %v4130_v62  ;;  %v3640_v30 = vld [vmem:[#allocation2 + $0x168] sm:$0xf] }
  0xd0   :  { %v5088_v3 = vld [vmem:[#allocation2 + $0x764] sm:$0xf]  ;;  %v3986_v8 = vld [vmem:[#allocation2 + $0x430] sm:$0xf0]  ;;  %v4899_v34 = vld [vmem:[#allocation2 + $0x174] sm:$0xf0] }
  0xd1   :  { %2004 = vmatpush.bf16.msrb.mxu0 %v4069_v12  ;;  %2017 = vmatpush.bf16.msrb.mxu1 %v4197_v13  ;;  %v4984_v7 = vld [vmem:[#allocation2 + $0x424] sm:$0xf]  ;;  %v4114_v11 = vld [vmem:[#allocation2 + $0x530] sm:$0xf0]  ;;  %v4277_v12 = vor.u32 %v5056_v1, %v4274_v2  ;;  %v4405_v13 = vor.u32 %v5088_v3, %v4402_v4  ;;  %v3833_v1 = vor.u32 %v4947_v55, %v3832_v54  ;;  %v3672_v3 = vld [vmem:[#allocation2 + $0x1a8] sm:$0xf] }
  0xd2   :  { %1985 = vmatmul.bf16.vlgmr.msra.gmra.mxu2 %v5486_v19  ;;  %1998 = vmatmul.bf16.vlgmr.msra.gmra.mxu3 %v5488_v20  ;;  %v5016_v10 = vld [vmem:[#allocation2 + $0x524] sm:$0xf]  ;;  %v4258_v15 = vld [vmem:[#allocation2 + $0x650] sm:$0xf0]  ;;  %v3989_v18 = vor.u32 %v4984_v7, %v3986_v8  ;;  %v4907_v4 = vld [vmem:[#allocation2 + $0x1b4] sm:$0xf0] }
  0xd3   :  { %2029 = vmatpush.bf16.msrb.mxu2 %v4341_v22  ;;  %2042 = vmatpush.bf16.msrb.mxu3 %v4469_v23  ;;  %v5052_v14 = vld [vmem:[#allocation2 + $0x644] sm:$0xf]  ;;  %v4386_v17 = vld [vmem:[#allocation2 + $0x750] sm:$0xf0]  ;;  %v4117_v21 = vor.u32 %v5016_v10, %v4114_v11  ;;  %v3944_v7 = vld [vmem:[#allocation2 + $0x3c8] sm:$0xf]  ;;  %v3673_v11 = vor.u32 %v4907_v4, %v3672_v3 }
  0xd4   :  { %v5084_v16 = vld [vmem:[#allocation2 + $0x744] sm:$0xf]  ;;  %v3970_v23 = vld [vmem:[#allocation2 + $0x410] sm:$0xf0]  ;;  %v4975_v8 = vld [vmem:[#allocation2 + $0x3d4] sm:$0xf0] }
  0xd5   :  { %2005 = vmatpush.bf16.msrb.mxu0 %v4053_v28  ;;  %2018 = vmatpush.bf16.msrb.mxu1 %v4181_v29  ;;  %v4980_v22 = vld [vmem:[#allocation2 + $0x404] sm:$0xf]  ;;  %v4098_v25 = vld [vmem:[#allocation2 + $0x510] sm:$0xf0]  ;;  %v4261_v28 = vor.u32 %v5052_v14, %v4258_v15  ;;  %v4389_v29 = vor.u32 %v5084_v16, %v4386_v17  ;;  %v3945_v15 = vor.u32 %v4975_v8, %v3944_v7  ;;  %v3656_v16 = vld [vmem:[#allocation2 + $0x188] sm:$0xf] }
  0xd6   :  { %v5012_v24 = vld [vmem:[#allocation2 + $0x504] sm:$0xf]  ;;  %v4242_v36 = vld [vmem:[#allocation2 + $0x630] sm:$0xf0]  ;;  %v3973_v39 = vor.u32 %v4980_v22, %v3970_v23  ;;  %v4903_v17 = vld [vmem:[#allocation2 + $0x194] sm:$0xf0] }
  0xd7   :  { %2030 = vmatpush.bf16.msrb.mxu2 %v4325_v37  ;;  %2043 = vmatpush.bf16.msrb.mxu3 %v4453_v38  ;;  %v5048_v35 = vld [vmem:[#allocation2 + $0x624] sm:$0xf]  ;;  %v4370_v38 = vld [vmem:[#allocation2 + $0x730] sm:$0xf0]  ;;  %v4101_v40 = vor.u32 %v5012_v24, %v4098_v25  ;;  %v3928_v22 = vld [vmem:[#allocation2 + $0x3a8] sm:$0xf]  ;;  %v3657_v25 = vor.u32 %v4903_v17, %v3656_v16 }
  0xd8   :  { %v5080_v37 = vld [vmem:[#allocation2 + $0x724] sm:$0xf]  ;;  %v4245_v45 = vor.u32 %v5048_v35, %v4242_v36  ;;  %v4354_v53 = vld [vmem:[#allocation2 + $0x710] sm:$0xf0]  ;;  %v4971_v23 = vld [vmem:[#allocation2 + $0x3b4] sm:$0xf0] }
  0xd9   :  { %2006 = vmatpush.bf16.msrb.mxu0 %v4037_v42  ;;  %2019 = vmatpush.bf16.msrb.mxu1 %v4165_v43  ;;  %v3560_v42 = vld [vmem:[#allocation2 + $0xc8] sm:$0xf]  ;;  %v4879_v43 = vld [vmem:[#allocation2 + $0xd4] sm:$0xf0]  ;;  %v4373_v46 = vor.u32 %v5080_v37, %v4370_v38  ;;  %v5076_v52 = vld [vmem:[#allocation2 + $0x704] sm:$0xf] }
  0xda   :  { %v3561_v58 = vor.u32 %v4879_v43, %v3560_v42  ;;  %v4357_v62 = vor.u32 %v5076_v52, %v4354_v53  ;;  %v3784_v35 = vld [vmem:[#allocation2 + $0x288] sm:$0xf]  ;;  %v4935_v36 = vld [vmem:[#allocation2 + $0x294] sm:$0xf0] }
  0xdb   :  { %2031 = vmatpush.bf16.msrb.mxu2 %v4309_v48  ;;  %2044 = vmatpush.bf16.msrb.mxu3 %v4437_v49  ;;  %v5044_v48 = vld [vmem:[#allocation2 + $0x604] sm:$0xf]  ;;  %v4226_v49 = vld [vmem:[#allocation2 + $0x610] sm:$0xf0]  ;;  %v3912_v37 = vld [vmem:[#allocation2 + $0x388] sm:$0xf]  ;;  %v3785_v42 = vor.u32 %v4935_v36, %v3784_v35 }
  0xdc   :  { %v4229_v61 = vor.u32 %v5044_v48, %v4226_v49  ;;  %v4967_v38 = vld [vmem:[#allocation2 + $0x394] sm:$0xf0]  ;;  %v3624_v44 = vld [vmem:[#allocation2 + $0x148] sm:$0xf] }
  0xdd   :  { %2007 = vmatpush.bf16.msrb.mxu0 %v4021_v56  ;;  %2020 = vmatpush.bf16.msrb.mxu1 %v4149_v57  ;;  %v3960_v56 = vld [vmem:[#allocation2 + $0x3e8] sm:$0xf]  ;;  %v4979_v57 = vld [vmem:[#allocation2 + $0x3f4] sm:$0xf0]  ;;  %v3913_v43 = vor.u32 %v4967_v38, %v3912_v37 }
  0xde   :  { %v3961_v2 = vor.u32 %v4979_v57, %v3960_v56  ;;  %v4931_v47 = vld [vmem:[#allocation2 + $0x274] sm:$0xf0]  ;;  %v3896_v48 = vld [vmem:[#allocation2 + $0x368] sm:$0xf] }
  0xdf   :  { %2032 = vmatpush.bf16.msrb.mxu2 %v4293_v63  ;;  %2045 = vmatpush.bf16.msrb.mxu3 %v4421_v0  ;;  %v3544_v63 = vld [vmem:[#allocation2 + $0xa8] sm:$0xf]  ;;  %v4875_v0 = vld [vmem:[#allocation2 + $0xb4] sm:$0xf0] }
  0xe0   :  { %v3545_v10 = vor.u32 %v4875_v0, %v3544_v63  ;;  %v4963_v49 = vld [vmem:[#allocation2 + $0x374] sm:$0xf0]  ;;  %v3480_v54 = vld [vmem:[#allocation2 + $0x28] sm:$0xf] }
  0xe1   :  { %2008 = vmatpush.bf16.msrb.mxu0 %v4005_v5  ;;  %2021 = vmatpush.bf16.msrb.mxu1 %v4133_v6  ;;  %v3816_v5 = vld [vmem:[#allocation2 + $0x2c8] sm:$0xf]  ;;  %v4943_v6 = vld [vmem:[#allocation2 + $0x2d4] sm:$0xf0]  ;;  %v3897_v57 = vor.u32 %v4963_v49, %v3896_v48 }
  0xe2   :  { %v3817_v14 = vor.u32 %v4943_v6, %v3816_v5  ;;  %v4859_v55 = vld [vmem:[#allocation2 + $0x34] sm:$0xf0]  ;;  %v3880_v63 = vld [vmem:[#allocation2 + $0x348] sm:$0xf] }
  0xe3   :  { %2033 = vmatpush.bf16.msrb.mxu2 %v4277_v12  ;;  %2046 = vmatpush.bf16.msrb.mxu3 %v4405_v13  ;;  %v3528_v12 = vld [vmem:[#allocation2 + $0x88] sm:$0xf]  ;;  %v4871_v13 = vld [vmem:[#allocation2 + $0x94] sm:$0xf0] }
  0xe4   :  { %v3529_v24 = vor.u32 %v4871_v13, %v3528_v12  ;;  %v4959_v0 = vld [vmem:[#allocation2 + $0x354] sm:$0xf0]  ;;  %v3464_v3 = vld [vmem:[#allocation2 + $0x8] sm:$0xf] }
  0xe5   :  { %2009 = vmatpush.bf16.msrb.mxu0 %v3989_v18  ;;  %2022 = vmatpush.bf16.msrb.mxu1 %v4117_v21  ;;  %v3800_v18 = vld [vmem:[#allocation2 + $0x2a8] sm:$0xf]  ;;  %v4939_v21 = vld [vmem:[#allocation2 + $0x2b4] sm:$0xf0]  ;;  %v3881_v7 = vor.u32 %v4959_v0, %v3880_v63 }
  0xe6   :  { %v4855_v4 = vld [vmem:[#allocation2 + $0x14] sm:$0xf0]  ;;  %v3592_v5 = vld [vmem:[#allocation2 + $0x108] sm:$0xf] }
  0xe7   :  { %2034 = vmatpush.bf16.msrb.mxu2 %v4261_v28  ;;  %2047 = vmatpush.bf16.msrb.mxu3 %v4389_v29  ;;  %v3801_v28 = vor.u32 %v4939_v21, %v3800_v18  ;;  %v3929_v29 = vor.u32 %v4971_v23, %v3928_v22  ;;  %v4887_v8 = vld [vmem:[#allocation2 + $0x114] sm:$0xf0]  ;;  %v4216_v12 = vld [vmem:[#allocation2 + $0x5e8] sm:$0xf]  ;;  %v3465_v18 = vor.u32 %v4855_v4, %v3464_v3 }
  0xe8   :  { %v5043_v13 = vld [vmem:[#allocation2 + $0x5f4] sm:$0xf0]  ;;  %v3864_v16 = vld [vmem:[#allocation2 + $0x328] sm:$0xf]  ;;  %v3593_v21 = vor.u32 %v4887_v8, %v3592_v5 }
  0xe9   :  { %2010 = vmatpush.bf16.msrb.mxu0 %v3973_v39  ;;  %2023 = vmatpush.bf16.msrb.mxu1 %v4101_v40  ;;  %v3513_v39 = vor.u32 %v4867_v27, %v3512_v26  ;;  %v3641_v40 = vor.u32 %v4899_v34, %v3640_v30  ;;  %v4955_v17 = vld [vmem:[#allocation2 + $0x334] sm:$0xf0]  ;;  %v4217_v23 = vor.u32 %v5043_v13, %v4216_v12  ;;  %v4200_v26 = vld [vmem:[#allocation2 + $0x5c8] sm:$0xf] }
  0xea   :  { %v3720_v30 = vld [vmem:[#allocation2 + $0x208] sm:$0xf]  ;;  %v4919_v34 = vld [vmem:[#allocation2 + $0x214] sm:$0xf0] }
  0xeb   :  { %2035 = vmatpush.bf16.msrb.mxu2 %v4245_v45  ;;  %2048 = vmatpush.bf16.msrb.mxu3 %v4373_v46  ;;  %v4895_v45 = vld [vmem:[#allocation2 + $0x154] sm:$0xf0]  ;;  %v3768_v46 = vld [vmem:[#allocation2 + $0x268] sm:$0xf] }
  0xec   :  { %2011 = vmatmul.bf16.vlgmr.msrb.gmra.mxu0 %v5494_v59  ;;  %2024 = vmatmul.bf16.vlgmr.msrb.gmra.mxu1 %v5496_v60  ;;  %v3625_v53 = vor.u32 %v4895_v45, %v3624_v44  ;;  %v3769_v56 = vor.u32 %v4931_v47, %v3768_v46  ;;  %v3848_v35 = vld [vmem:[#allocation2 + $0x308] sm:$0xf]  ;;  %v4951_v36 = vld [vmem:[#allocation2 + $0x314] sm:$0xf0] }
  0xed   :  { %2055 = vmatpush.bf16.msra.mxu0 %v3577_v41  ;;  %2068 = vmatpush.bf16.msra.mxu1 %v3705_v9  ;;  %v3496_v41 = vld [vmem:[#allocation2 + $0x48] sm:$0xf]  ;;  %v4863_v9 = vld [vmem:[#allocation2 + $0x54] sm:$0xf0] }
  0xee   :  { %v3497_v52 = vor.u32 %v4863_v9, %v3496_v41  ;;  %v4344_v37 = vld [vmem:[#allocation2 + $0x6e8] sm:$0xf]  ;;  %v5075_v38 = vld [vmem:[#allocation2 + $0x6f4] sm:$0xf0] }
  0xef   :  { %2036 = vmatpush.bf16.msrb.mxu2 %v4229_v61  ;;  %2049 = vmatpush.bf16.msrb.mxu3 %v4357_v62  ;;  %v3752_v61 = vld [vmem:[#allocation2 + $0x248] sm:$0xf]  ;;  %v4927_v62 = vld [vmem:[#allocation2 + $0x254] sm:$0xf0]  ;;  %v4345_v46 = vor.u32 %v5075_v38, %v4344_v37 }
  0xf0   :  { %v3753_v6 = vor.u32 %v4927_v62, %v3752_v61  ;;  %v4056_v44 = vld [vmem:[#allocation2 + $0x4a8] sm:$0xf]  ;;  %v5003_v45 = vld [vmem:[#allocation2 + $0x4b4] sm:$0xf0] }
  0xf1   :  { %2056 = vmatpush.bf16.msra.mxu0 %v3561_v58  ;;  %2069 = vmatpush.bf16.msra.mxu1 %v3689_v31  ;;  %v3608_v58 = vld [vmem:[#allocation2 + $0x128] sm:$0xf]  ;;  %v4891_v31 = vld [vmem:[#allocation2 + $0x134] sm:$0xf0] }
  0xf2   :  { %2037 = vmatmul.bf16.vlgmr.msrb.gmra.mxu2 %v5500_v32  ;;  %2050 = vmatmul.bf16.vlgmr.msrb.gmra.mxu3 %v5502_v33  ;;  %v4184_v48 = vld [vmem:[#allocation2 + $0x5a8] sm:$0xf]  ;;  %v5035_v49 = vld [vmem:[#allocation2 + $0x5b4] sm:$0xf0] }
  0xf3   :  { %2081 = vmatpush.bf16.msra.mxu2 %v3833_v1  ;;  %2094 = vmatpush.bf16.msra.mxu3 %v3961_v2  ;;  %v3481_v1 = vor.u32 %v4859_v55, %v3480_v54  ;;  %v3609_v2 = vor.u32 %v4891_v31, %v3608_v58  ;;  %v4456_v54 = vld [vmem:[#allocation2 + $0x7c8] sm:$0xf]  ;;  %v5103_v55 = vld [vmem:[#allocation2 + $0x7d4] sm:$0xf0] }
  0xf4   :  { %v4040_v58 = vld [vmem:[#allocation2 + $0x488] sm:$0xf]  ;;  %v4999_v31 = vld [vmem:[#allocation2 + $0x494] sm:$0xf0]  ;;  %v4457_v62 = vor.u32 %v5103_v55, %v4456_v54 }
  0xf5   :  { %2057 = vmatpush.bf16.msra.mxu0 %v3545_v10  ;;  %2070 = vmatpush.bf16.msra.mxu1 %v3673_v11  ;;  %v4088_v10 = vld [vmem:[#allocation2 + $0x4e8] sm:$0xf]  ;;  %v5011_v11 = vld [vmem:[#allocation2 + $0x4f4] sm:$0xf0]  ;;  %v4041_v5 = vor.u32 %v4999_v31, %v4040_v58  ;;  %v4913_v58 = vld [vmem:[#allocation2 + $0x1ec] sm:$0xf] }
  0xf6   :  { %v4089_v22 = vor.u32 %v5011_v11, %v4088_v10  ;;  %v4168_v63 = vld [vmem:[#allocation2 + $0x588] sm:$0xf]  ;;  %v5031_v0 = vld [vmem:[#allocation2 + $0x594] sm:$0xf0]  ;;  %v3706_v31 = vld [vmem:[#allocation2 + $0x1f8] sm:$0xf0] }
  0xf7   :  { %2082 = vmatpush.bf16.msra.mxu2 %v3817_v14  ;;  %2095 = vmatpush.bf16.msra.mxu3 %v3945_v15  ;;  %v3736_v14 = vld [vmem:[#allocation2 + $0x228] sm:$0xf]  ;;  %v4923_v15 = vld [vmem:[#allocation2 + $0x234] sm:$0xf0] }
  0xf8   :  { %v3737_v27 = vor.u32 %v4923_v15, %v3736_v14  ;;  %v4440_v3 = vld [vmem:[#allocation2 + $0x7a8] sm:$0xf]  ;;  %v5099_v4 = vld [vmem:[#allocation2 + $0x7b4] sm:$0xf0] }
  0xf9   :  { %2058 = vmatpush.bf16.msra.mxu0 %v3529_v24  ;;  %2071 = vmatpush.bf16.msra.mxu1 %v3657_v25  ;;  %v4072_v24 = vld [vmem:[#allocation2 + $0x4c8] sm:$0xf]  ;;  %v5007_v25 = vld [vmem:[#allocation2 + $0x4d4] sm:$0xf0]  ;;  %v4441_v11 = vor.u32 %v5099_v4, %v4440_v3  ;;  %v3709_v4 = vor.u32 %v4913_v58, %v3706_v31  ;;  %v3514_v58 = vld [vmem:[#allocation2 + $0x78] sm:$0xf0] }
  0xfa   :  { %v4073_v41 = vor.u32 %v5007_v25, %v4072_v24  ;;  %v4995_v8 = vld [vmem:[#allocation2 + $0x474] sm:$0xf0]  ;;  %v4152_v12 = vld [vmem:[#allocation2 + $0x568] sm:$0xf] }
  0xfb   :  { %2083 = vmatpush.bf16.msra.mxu2 %v3801_v28  ;;  %2096 = vmatpush.bf16.msra.mxu3 %v3929_v29  ;;  %v3865_v28 = vor.u32 %v4955_v17, %v3864_v16  ;;  %v5039_v29 = vld [vmem:[#allocation2 + $0x5d4] sm:$0xf0]  ;;  %v4296_v14 = vld [vmem:[#allocation2 + $0x688] sm:$0xf] }
  0xfc   :  { %v4201_v9 = vor.u32 %v5039_v29, %v4200_v26  ;;  %v5027_v13 = vld [vmem:[#allocation2 + $0x574] sm:$0xf0]  ;;  %v4424_v16 = vld [vmem:[#allocation2 + $0x788] sm:$0xf] }
  0xfd   :  { %2059 = vmatpush.bf16.msra.mxu0 %v3513_v39  ;;  %2072 = vmatpush.bf16.msra.mxu1 %v3641_v40  ;;  %v4472_v39 = vld [vmem:[#allocation2 + $0x7e8] sm:$0xf]  ;;  %v5107_v40 = vld [vmem:[#allocation2 + $0x7f4] sm:$0xf0] }
  0xfe   :  { %v4473_v47 = vor.u32 %v5107_v40, %v4472_v39  ;;  %v5063_v15 = vld [vmem:[#allocation2 + $0x694] sm:$0xf0]  ;;  %v4136_v26 = vld [vmem:[#allocation2 + $0x548] sm:$0xf] }
  0xff   :  { %2084 = vmatpush.bf16.msra.mxu2 %v3785_v42  ;;  %2097 = vmatpush.bf16.msra.mxu3 %v3913_v43  ;;  %v3721_v42 = vor.u32 %v4919_v34, %v3720_v30  ;;  %v3849_v43 = vor.u32 %v4951_v36, %v3848_v35  ;;  %v5095_v17 = vld [vmem:[#allocation2 + $0x794] sm:$0xf0]  ;;  %v4297_v24 = vor.u32 %v5063_v15, %v4296_v14  ;;  %v4408_v30 = vld [vmem:[#allocation2 + $0x768] sm:$0xf] }
 0x100   :  { %v4425_v25 = vor.u32 %v5095_v17, %v4424_v16  ;;  %v5059_v29 = vld [vmem:[#allocation2 + $0x674] sm:$0xf0]  ;;  %v3992_v37 = vld [vmem:[#allocation2 + $0x428] sm:$0xf]  ;;  %v4945_v16 = vld [vmem:[#allocation2 + $0x2ec] sm:$0xf] }
 0x101   :  { %2060 = vmatpush.bf16.msra.mxu0 %v3497_v52  ;;  %2073 = vmatpush.bf16.msra.mxu1 %v3625_v53  ;;  %v4328_v52 = vld [vmem:[#allocation2 + $0x6c8] sm:$0xf]  ;;  %v5071_v53 = vld [vmem:[#allocation2 + $0x6d4] sm:$0xf0]  ;;  %v3834_v17 = vld [vmem:[#allocation2 + $0x2f8] sm:$0xf0] }
 0x102   :  { %v4329_v61 = vor.u32 %v5071_v53, %v4328_v52  ;;  %v5091_v34 = vld [vmem:[#allocation2 + $0x774] sm:$0xf0]  ;;  %v4104_v52 = vld [vmem:[#allocation2 + $0x508] sm:$0xf] }
 0x103   :  { %2085 = vmatpush.bf16.msra.mxu2 %v3769_v56  ;;  %2098 = vmatpush.bf16.msra.mxu3 %v3897_v57  ;;  %v4057_v56 = vor.u32 %v5003_v45, %v4056_v44  ;;  %v4185_v57 = vor.u32 %v5035_v49, %v4184_v48  ;;  %v4987_v38 = vld [vmem:[#allocation2 + $0x434] sm:$0xf0]  ;;  %v4409_v40 = vor.u32 %v5091_v34, %v4408_v30  ;;  %v4392_v44 = vld [vmem:[#allocation2 + $0x748] sm:$0xf]  ;;  %v4905_v30 = vld [vmem:[#allocation2 + $0x1ac] sm:$0xf] }
 0x104   :  { %v5087_v45 = vld [vmem:[#allocation2 + $0x754] sm:$0xf0]  ;;  %v3976_v48 = vld [vmem:[#allocation2 + $0x408] sm:$0xf]  ;;  %v3674_v34 = vld [vmem:[#allocation2 + $0x1b8] sm:$0xf0] }
 0x105   :  { %2061 = vmatpush.bf16.msra.mxu0 %v3481_v1  ;;  %2074 = vmatpush.bf16.msra.mxu1 %v3609_v2  ;;  %v4312_v1 = vld [vmem:[#allocation2 + $0x6a8] sm:$0xf]  ;;  %v5067_v2 = vld [vmem:[#allocation2 + $0x6b4] sm:$0xf0]  ;;  %v4393_v54 = vor.u32 %v5087_v45, %v4392_v44 }
 0x106   :  { %v4313_v10 = vor.u32 %v5067_v2, %v4312_v1  ;;  %v4983_v49 = vld [vmem:[#allocation2 + $0x414] sm:$0xf0]  ;;  %v4360_v14 = vld [vmem:[#allocation2 + $0x708] sm:$0xf] }
 0x107   :  { %2086 = vmatpush.bf16.msra.mxu2 %v3753_v6  ;;  %2099 = vmatpush.bf16.msra.mxu3 %v3881_v7  ;;  %v4169_v6 = vor.u32 %v5031_v0, %v4168_v63  ;;  %v4024_v7 = vld [vmem:[#allocation2 + $0x468] sm:$0xf]  ;;  %v5015_v55 = vld [vmem:[#allocation2 + $0x514] sm:$0xf0]  ;;  %v3977_v1 = vor.u32 %v4983_v49, %v3976_v48  ;;  %v3658_v48 = vld [vmem:[#allocation2 + $0x198] sm:$0xf0] }
 0x108   :  { %v4376_v63 = vld [vmem:[#allocation2 + $0x728] sm:$0xf]  ;;  %v5083_v0 = vld [vmem:[#allocation2 + $0x734] sm:$0xf0]  ;;  %v4105_v2 = vor.u32 %v5015_v55, %v4104_v52  ;;  %v4937_v49 = vld [vmem:[#allocation2 + $0x2ac] sm:$0xf] }
 0x109   :  { %2062 = vmatpush.bf16.msra.mxu0 %v3465_v18  ;;  %2075 = vmatpush.bf16.msra.mxu1 %v3593_v21  ;;  %v4025_v18 = vor.u32 %v4995_v8, %v4024_v7  ;;  %v4153_v21 = vor.u32 %v5027_v13, %v4152_v12  ;;  %v4909_v7 = vld [vmem:[#allocation2 + $0x1cc] sm:$0xf]  ;;  %v4232_v12 = vld [vmem:[#allocation2 + $0x608] sm:$0xf]  ;;  %v5047_v13 = vld [vmem:[#allocation2 + $0x614] sm:$0xf0] }
 0x10a   :  { %v5079_v15 = vld [vmem:[#allocation2 + $0x714] sm:$0xf0]  ;;  %v3802_v52 = vld [vmem:[#allocation2 + $0x2b8] sm:$0xf0] }
 0x10b   :  { %2087 = vmatpush.bf16.msra.mxu2 %v3737_v27  ;;  %2100 = vmatpush.bf16.msra.mxu3 %v3865_v28  ;;  %v5023_v27 = vld [vmem:[#allocation2 + $0x554] sm:$0xf0]  ;;  %v4280_v28 = vld [vmem:[#allocation2 + $0x668] sm:$0xf]  ;;  %v3805_v31 = vor.u32 %v4937_v49, %v3802_v52  ;;  %v3594_v49 = vld [vmem:[#allocation2 + $0x118] sm:$0xf0] }
 0x10c   :  { %2063 = vmatmul.bf16.vlgmr.msra.gmra.mxu0 %v5478_v50  ;;  %2076 = vmatmul.bf16.vlgmr.msra.gmra.mxu1 %v5480_v51  ;;  %v4137_v36 = vor.u32 %v5023_v27, %v4136_v26  ;;  %v4281_v39 = vor.u32 %v5059_v29, %v4280_v28  ;;  %v4873_v26 = vld [vmem:[#allocation2 + $0xac] sm:$0xf]  ;;  %v3546_v27 = vld [vmem:[#allocation2 + $0xb8] sm:$0xf0]  ;;  %v3837_v28 = vor.u32 %v4945_v16, %v3834_v17 }
 0x10d   :  { %2107 = vmatpush.bf16.msrb.mxu0 %v4089_v22  ;;  %2120 = vmatpush.bf16.msrb.mxu1 %v4217_v23  ;;  %v4008_v22 = vld [vmem:[#allocation2 + $0x448] sm:$0xf]  ;;  %v4991_v23 = vld [vmem:[#allocation2 + $0x454] sm:$0xf0]  ;;  %v3770_v16 = vld [vmem:[#allocation2 + $0x278] sm:$0xf0] }
 0x10e   :  { %v4009_v35 = vor.u32 %v4991_v23, %v4008_v22  ;;  %v4961_v17 = vld [vmem:[#allocation2 + $0x36c] sm:$0xf] }
 0x10f   :  { %2088 = vmatpush.bf16.msra.mxu2 %v3721_v42  ;;  %2101 = vmatpush.bf16.msra.mxu3 %v3849_v43  ;;  %v4264_v42 = vld [vmem:[#allocation2 + $0x648] sm:$0xf]  ;;  %v5055_v43 = vld [vmem:[#allocation2 + $0x654] sm:$0xf0]  ;;  %v5009_v52 = vld [vmem:[#allocation2 + $0x4ec] sm:$0xf] }
 0x110   :  { %v4265_v53 = vor.u32 %v5055_v43, %v4264_v42  ;;  %v4869_v42 = vld [vmem:[#allocation2 + $0x8c] sm:$0xf]  ;;  %v3530_v43 = vld [vmem:[#allocation2 + $0x98] sm:$0xf0] }
 0x111   :  { %2108 = vmatpush.bf16.msrb.mxu0 %v4073_v41  ;;  %2121 = vmatpush.bf16.msrb.mxu1 %v4201_v9  ;;  %v4120_v41 = vld [vmem:[#allocation2 + $0x528] sm:$0xf]  ;;  %v5019_v9 = vld [vmem:[#allocation2 + $0x534] sm:$0xf0]  ;;  %v3533_v55 = vor.u32 %v4869_v42, %v3530_v43  ;;  %v3466_v42 = vld [vmem:[#allocation2 + $0x18] sm:$0xf0] }
 0x112   :  { %2089 = vmatmul.bf16.vlgmr.msra.gmra.mxu2 %v5486_v19  ;;  %2102 = vmatmul.bf16.vlgmr.msra.gmra.mxu3 %v5488_v20  ;;  %v4885_v43 = vld [vmem:[#allocation2 + $0x10c] sm:$0xf] }
 0x113   :  { %2133 = vmatpush.bf16.msrb.mxu2 %v4345_v46  ;;  %2146 = vmatpush.bf16.msrb.mxu3 %v4473_v47  ;;  %v3993_v46 = vor.u32 %v4987_v38, %v3992_v37  ;;  %v4121_v47 = vor.u32 %v5019_v9, %v4120_v41  ;;  %v4973_v37 = vld [vmem:[#allocation2 + $0x3cc] sm:$0xf]  ;;  %v3946_v38 = vld [vmem:[#allocation2 + $0x3d8] sm:$0xf0] }
 0x115   :  { %2109 = vmatpush.bf16.msrb.mxu0 %v4057_v56  ;;  %2122 = vmatpush.bf16.msrb.mxu1 %v4185_v57  ;;  %v4881_v56 = vld [vmem:[#allocation2 + $0xec] sm:$0xf]  ;;  %v3578_v57 = vld [vmem:[#allocation2 + $0xf8] sm:$0xf0] }
 0x116   :  { %v3581_v3 = vor.u32 %v4881_v56, %v3578_v57  ;;  %v4865_v57 = vld [vmem:[#allocation2 + $0x6c] sm:$0xf] }
 0x117   :  { %2134 = vmatpush.bf16.msrb.mxu2 %v4329_v61  ;;  %2147 = vmatpush.bf16.msrb.mxu3 %v4457_v62  ;;  %v4248_v61 = vld [vmem:[#allocation2 + $0x628] sm:$0xf]  ;;  %v5051_v62 = vld [vmem:[#allocation2 + $0x634] sm:$0xf0] }
 0x118   :  { %v4249_v8 = vor.u32 %v5051_v62, %v4248_v61  ;;  %v4897_v62 = vld [vmem:[#allocation2 + $0x16c] sm:$0xf] }
 0x119   :  { %2110 = vmatpush.bf16.msrb.mxu0 %v4041_v5  ;;  %2123 = vmatpush.bf16.msrb.mxu1 %v4169_v6  ;;  %v4877_v5 = vld [vmem:[#allocation2 + $0xcc] sm:$0xf]  ;;  %v3562_v6 = vld [vmem:[#allocation2 + $0xd8] sm:$0xf0] }
 0x11a   :  { %v3565_v22 = vor.u32 %v4877_v5, %v3562_v6 }
 0x11b   :  { %2135 = vmatpush.bf16.msrb.mxu2 %v4313_v10  ;;  %2148 = vmatpush.bf16.msrb.mxu3 %v4441_v11  ;;  %v4377_v10 = vor.u32 %v5083_v0, %v4376_v63  ;;  %v3690_v11 = vld [vmem:[#allocation2 + $0x1d8] sm:$0xf0]  ;;  %v4933_v0 = vld [vmem:[#allocation2 + $0x28c] sm:$0xf] }
 0x11c   :  { %v3693_v23 = vor.u32 %v4909_v7, %v3690_v11  ;;  %v3642_v63 = vld [vmem:[#allocation2 + $0x178] sm:$0xf0] }
 0x11d   :  { %2111 = vmatpush.bf16.msrb.mxu0 %v4025_v18  ;;  %2124 = vmatpush.bf16.msrb.mxu1 %v4153_v21  ;;  %v4977_v18 = vld [vmem:[#allocation2 + $0x3ec] sm:$0xf]  ;;  %v3962_v21 = vld [vmem:[#allocation2 + $0x3f8] sm:$0xf0]  ;;  %v3645_v5 = vor.u32 %v4897_v62, %v3642_v63  ;;  %v3597_v63 = vor.u32 %v4885_v43, %v3594_v49 }
 0x11e   :  { %v3965_v29 = vor.u32 %v4977_v18, %v3962_v21  ;;  %v3898_v18 = vld [vmem:[#allocation2 + $0x378] sm:$0xf0]  ;;  %v5065_v49 = vld [vmem:[#allocation2 + $0x6ac] sm:$0xf] }
 0x11f   :  { %2136 = vmatpush.bf16.msrb.mxu2 %v4297_v24  ;;  %2149 = vmatpush.bf16.msrb.mxu3 %v4425_v25  ;;  %v4233_v24 = vor.u32 %v5047_v13, %v4232_v12  ;;  %v4361_v25 = vor.u32 %v5079_v15, %v4360_v14  ;;  %v4893_v13 = vld [vmem:[#allocation2 + $0x14c] sm:$0xf]  ;;  %v3626_v14 = vld [vmem:[#allocation2 + $0x158] sm:$0xf0] }
 0x120   :  { %v4929_v15 = vld [vmem:[#allocation2 + $0x26c] sm:$0xf] }
 0x121   :  { %2112 = vmatpush.bf16.msrb.mxu0 %v4009_v35  ;;  %2125 = vmatpush.bf16.msrb.mxu1 %v4137_v36  ;;  %v4941_v35 = vld [vmem:[#allocation2 + $0x2cc] sm:$0xf]  ;;  %v3818_v36 = vld [vmem:[#allocation2 + $0x2d8] sm:$0xf0] }
 0x122   :  { %v3821_v45 = vor.u32 %v4941_v35, %v3818_v36  ;;  %v3754_v36 = vld [vmem:[#allocation2 + $0x258] sm:$0xf0] }
 0x123   :  { %2137 = vmatpush.bf16.msrb.mxu2 %v4281_v39  ;;  %2150 = vmatpush.bf16.msrb.mxu3 %v4409_v40  ;;  %v3549_v39 = vor.u32 %v4873_v26, %v3546_v27  ;;  %v3677_v40 = vor.u32 %v4905_v30, %v3674_v34  ;;  %v3773_v27 = vor.u32 %v4929_v15, %v3770_v16  ;;  %v3610_v30 = vld [vmem:[#allocation2 + $0x138] sm:$0xf0]  ;;  %v4925_v34 = vld [vmem:[#allocation2 + $0x24c] sm:$0xf] }
 0x124   :  { %v5073_v15 = vld [vmem:[#allocation2 + $0x6ec] sm:$0xf]  ;;  %v4346_v16 = vld [vmem:[#allocation2 + $0x6f8] sm:$0xf0] }
 0x125   :  { %2113 = vmatpush.bf16.msrb.mxu0 %v3993_v46  ;;  %2126 = vmatpush.bf16.msrb.mxu1 %v4121_v47  ;;  %v3949_v46 = vor.u32 %v4973_v37, %v3946_v38  ;;  %v4901_v47 = vld [vmem:[#allocation2 + $0x18c] sm:$0xf]  ;;  %v3882_v38 = vld [vmem:[#allocation2 + $0x358] sm:$0xf0] }
 0x126   :  { %v3661_v56 = vor.u32 %v4901_v47, %v3658_v48  ;;  %v4957_v37 = vld [vmem:[#allocation2 + $0x34c] sm:$0xf]  ;;  %v3757_v47 = vor.u32 %v4925_v34, %v3754_v36 }
 0x127   :  { %2138 = vmatpush.bf16.msrb.mxu2 %v4265_v53  ;;  %2151 = vmatpush.bf16.msrb.mxu3 %v4393_v54  ;;  %v1856_v41 = vpop.f32.mrf.mxu0  ;;  %v1869_v9 = vpop.f32.mrf.mxu1  ;;  %v4969_v53 = vld [vmem:[#allocation2 + $0x3ac] sm:$0xf]  ;;  %v3930_v54 = vld [vmem:[#allocation2 + $0x3b8] sm:$0xf0]  ;;  %v3885_v48 = vor.u32 %v4957_v37, %v3882_v38 }
 0x128   :  { %v1870_v44 = vadd.f32 %v1869_v9, %v1856_v41  ;;  %v3933_v61 = vor.u32 %v4969_v53, %v3930_v54  ;;  %v4853_v9 = vld [vmem:[#allocation2 + $0xc] sm:$0xf]  ;;  %v4330_v37 = vld [vmem:[#allocation2 + $0x6d8] sm:$0xf0] }
 0x129   :  { %2114 = vmatpush.bf16.msrb.mxu0 %v3977_v1  ;;  %2127 = vmatpush.bf16.msrb.mxu1 %v4105_v2  ;;  %v3786_v1 = vld [vmem:[#allocation2 + $0x298] sm:$0xf0]  ;;  %v4965_v2 = vld [vmem:[#allocation2 + $0x38c] sm:$0xf]  ;;  %v3469_v62 = vor.u32 %v4853_v9, %v3466_v42 }
 0x12a   :  { %v3789_v11 = vor.u32 %v4933_v0, %v3786_v1  ;;  %v5041_v54 = vld [vmem:[#allocation2 + $0x5ec] sm:$0xf] }
 0x12b   :  { %2139 = vmatpush.bf16.msrb.mxu2 %v4249_v8  ;;  %2152 = vmatpush.bf16.msrb.mxu3 %v4377_v10  ;;  %v4861_v8 = vld [vmem:[#allocation2 + $0x4c] sm:$0xf]  ;;  %v3498_v10 = vld [vmem:[#allocation2 + $0x58] sm:$0xf0] }
 0x12c   :  { %2115 = vmatmul.bf16.vlgmr.msrb.gmra.mxu0 %v5494_v59  ;;  %2128 = vmatmul.bf16.vlgmr.msrb.gmra.mxu1 %v5496_v60  ;;  %v3501_v21 = vor.u32 %v4861_v8, %v3498_v10  ;;  %v4202_v10 = vld [vmem:[#allocation2 + $0x5d8] sm:$0xf0]  ;;  %v5033_v34 = vld [vmem:[#allocation2 + $0x5ac] sm:$0xf] }
 0x12d   :  { %2159 = vmatpush.bf16.msra.mxu0 %v3581_v3  ;;  %2172 = vmatpush.bf16.msra.mxu1 %v3709_v4  ;;  %v3914_v3 = vld [vmem:[#allocation2 + $0x398] sm:$0xf0]  ;;  %v3517_v4 = vor.u32 %v4865_v57, %v3514_v58  ;;  %v4953_v58 = vld [vmem:[#allocation2 + $0x32c] sm:$0xf] }
 0x12e   :  { %v3917_v12 = vor.u32 %v4965_v2, %v3914_v3  ;;  %v3738_v57 = vld [vmem:[#allocation2 + $0x238] sm:$0xf0]  ;;  %v5069_v36 = vld [vmem:[#allocation2 + $0x6cc] sm:$0xf] }
 0x12f   :  { %2140 = vmatpush.bf16.msrb.mxu2 %v4233_v24  ;;  %2153 = vmatpush.bf16.msrb.mxu3 %v4361_v25  ;;  %v1858_v6 = vpop.f32.mrf.mxu0  ;;  %v1871_v7 = vpop.f32.mrf.mxu1  ;;  %v3482_v24 = vld [vmem:[#allocation2 + $0x38] sm:$0xf0]  ;;  %v5101_v38 = vld [vmem:[#allocation2 + $0x7cc] sm:$0xf] }
 0x130   :  { %v5037_v6 = vld [vmem:[#allocation2 + $0x5cc] sm:$0xf] }
 0x131   :  { %2160 = vmatpush.bf16.msra.mxu0 %v3565_v22  ;;  %2173 = vmatpush.bf16.msra.mxu1 %v3693_v23  ;;  %v3629_v22 = vor.u32 %v4893_v13, %v3626_v14  ;;  %v4857_v23 = vld [vmem:[#allocation2 + $0x2c] sm:$0xf]  ;;  %v3850_v14 = vld [vmem:[#allocation2 + $0x318] sm:$0xf0] }
 0x132   :  { %2141 = vmatmul.bf16.vlgmr.msrb.gmra.mxu2 %v5500_v32  ;;  %2154 = vmatmul.bf16.vlgmr.msrb.gmra.mxu3 %v5502_v33  ;;  %v4949_v13 = vld [vmem:[#allocation2 + $0x30c] sm:$0xf] }
 0x133   :  { %2185 = vmatpush.bf16.msra.mxu2 %v3837_v28  ;;  %2198 = vmatpush.bf16.msra.mxu3 %v3965_v29  ;;  %v3901_v28 = vor.u32 %v4961_v17, %v3898_v18  ;;  %v4889_v29 = vld [vmem:[#allocation2 + $0x12c] sm:$0xf]  ;;  %v4474_v18 = vld [vmem:[#allocation2 + $0x7f8] sm:$0xf0] }
 0x134   :  { %v3613_v41 = vor.u32 %v4889_v29, %v3610_v30  ;;  %v5105_v17 = vld [vmem:[#allocation2 + $0x7ec] sm:$0xf]  ;;  %v4349_v29 = vor.u32 %v5073_v15, %v4346_v16  ;;  %v4138_v15 = vld [vmem:[#allocation2 + $0x558] sm:$0xf0] }
 0x135   :  { %2161 = vmatpush.bf16.msra.mxu0 %v3549_v39  ;;  %2174 = vmatpush.bf16.msra.mxu1 %v3677_v40  ;;  %v1882_v25 = vpop.f32.mrf.mxu2  ;;  %v1895_v26 = vpop.f32.mrf.mxu3  ;;  %v3485_v40 = vor.u32 %v4857_v23, %v3482_v24  ;;  %v4205_v24 = vor.u32 %v5037_v6, %v4202_v10  ;;  %v4477_v30 = vor.u32 %v5105_v17, %v4474_v18  ;;  %v4989_v10 = vld [vmem:[#allocation2 + $0x44c] sm:$0xf]  ;;  %v4282_v17 = vld [vmem:[#allocation2 + $0x678] sm:$0xf0] }
 0x136   :  { %v1883_v35 = vadd.f32 %v1882_v25, %v1870_v44  ;;  %v4090_v44 = vld [vmem:[#allocation2 + $0x4f8] sm:$0xf0]  ;;  %v5057_v16 = vld [vmem:[#allocation2 + $0x66c] sm:$0xf] }
 0x137   :  { %2186 = vmatpush.bf16.msra.mxu2 %v3821_v45  ;;  %2199 = vmatpush.bf16.msra.mxu3 %v3949_v46  ;;  %v4093_v2 = vor.u32 %v5009_v52, %v4090_v44  ;;  %v4314_v44 = vld [vmem:[#allocation2 + $0x6b8] sm:$0xf0]  ;;  %v5089_v18 = vld [vmem:[#allocation2 + $0x76c] sm:$0xf] }
 0x138   :  { %v1896_v39 = vadd.f32 %v1895_v26, %v1883_v35  ;;  %v3853_v26 = vor.u32 %v4949_v13, %v3850_v14  ;;  %v4186_v35 = vld [vmem:[#allocation2 + $0x5b8] sm:$0xf0]  ;;  %v5021_v14 = vld [vmem:[#allocation2 + $0x54c] sm:$0xf] }
 0x139   :  { %2162 = vmatpush.bf16.msra.mxu0 %v3533_v55  ;;  %2175 = vmatpush.bf16.msra.mxu1 %v3661_v56  ;;  %v1908_v45 = vpop.f32.mrf.mxu0  ;;  %v1921_v46 = vpop.f32.mrf.mxu1  ;;  %v4218_v55 = vld [vmem:[#allocation2 + $0x5f8] sm:$0xf0]  ;;  %v4921_v56 = vld [vmem:[#allocation2 + $0x22c] sm:$0xf]  ;;  %v4189_v43 = vor.u32 %v5033_v34, %v4186_v35 }
 0x13a   :  { %v1909_v53 = vadd.f32 %v1908_v45, %v1896_v39  ;;  %v4221_v3 = vor.u32 %v5041_v54, %v4218_v55  ;;  %v3741_v7 = vor.u32 %v4921_v56, %v3738_v57  ;;  %v4458_v39 = vld [vmem:[#allocation2 + $0x7d8] sm:$0xf0]  ;;  %v5053_v35 = vld [vmem:[#allocation2 + $0x64c] sm:$0xf] }
 0x13b   :  { %2187 = vmatpush.bf16.msra.mxu2 %v3805_v31  ;;  %2200 = vmatpush.bf16.msra.mxu3 %v3933_v61  ;;  %v3866_v31 = vld [vmem:[#allocation2 + $0x338] sm:$0xf0] }
 0x13c   :  { %v1922_v61 = vadd.f32 %v1921_v46, %v1909_v53  ;;  %v3869_v8 = vor.u32 %v4953_v58, %v3866_v31  ;;  %v4042_v45 = vld [vmem:[#allocation2 + $0x498] sm:$0xf0]  ;;  %v4461_v46 = vor.u32 %v5101_v38, %v4458_v39  ;;  %v5097_v53 = vld [vmem:[#allocation2 + $0x7ac] sm:$0xf]  ;;  %v5318_v39 = vmov 8.0  }
 0x13d   :  { %2163 = vmatpush.bf16.msra.mxu0 %v3517_v4  ;;  %2176 = vmatpush.bf16.msra.mxu1 %v3645_v5  ;;  %v1884_v0 = vpop.f32.mrf.mxu2  ;;  %v1897_v1 = vpop.f32.mrf.mxu3  ;;  %v5005_v4 = vld [vmem:[#allocation2 + $0x4cc] sm:$0xf]  ;;  %v4074_v5 = vld [vmem:[#allocation2 + $0x4d8] sm:$0xf0]  ;;  %5213 = vrcp.f32 %v5318_v39 }
 0x13e   :  { %v4077_v23 = vor.u32 %v5005_v4, %v4074_v5  ;;  %v4442_v54 = vld [vmem:[#allocation2 + $0x7b8] sm:$0xf0]  ;;  %v5025_v1 = vld [vmem:[#allocation2 + $0x56c] sm:$0xf] }
 0x13f   :  { %2188 = vmatpush.bf16.msra.mxu2 %v3789_v11  ;;  %2201 = vmatpush.bf16.msra.mxu3 %v3917_v12  ;;  %v4917_v11 = vld [vmem:[#allocation2 + $0x20c] sm:$0xf]  ;;  %v3722_v12 = vld [vmem:[#allocation2 + $0x218] sm:$0xf0]  ;;  %v4445_v0 = vor.u32 %v5097_v53, %v4442_v54 }
 0x140   :  { %v3725_v25 = vor.u32 %v4917_v11, %v3722_v12  ;;  %v5093_v4 = vld [vmem:[#allocation2 + $0x78c] sm:$0xf]  ;;  %v4010_v11 = vld [vmem:[#allocation2 + $0x458] sm:$0xf0] }
 0x141   :  { %2164 = vmatpush.bf16.msra.mxu0 %v3501_v21  ;;  %2177 = vmatpush.bf16.msra.mxu1 %v3629_v22  ;;  %v1910_v21 = vpop.f32.mrf.mxu0  ;;  %v1923_v22 = vpop.f32.mrf.mxu1  ;;  %v4122_v34 = vld [vmem:[#allocation2 + $0x538] sm:$0xf0]  ;;  %v5081_v53 = vld [vmem:[#allocation2 + $0x72c] sm:$0xf] }
 0x142   :  { %v4410_v21 = vld [vmem:[#allocation2 + $0x778] sm:$0xf0] }
 0x143   :  { %2189 = vmatpush.bf16.msra.mxu2 %v3773_v27  ;;  %2202 = vmatpush.bf16.msra.mxu3 %v3901_v28  ;;  %v5001_v27 = vld [vmem:[#allocation2 + $0x4ac] sm:$0xf]  ;;  %v4058_v28 = vld [vmem:[#allocation2 + $0x4b8] sm:$0xf0] }
 0x144   :  { %v4061_v42 = vor.u32 %v5001_v27, %v4058_v28  ;;  %v3994_v27 = vld [vmem:[#allocation2 + $0x438] sm:$0xf0]  ;;  %v4285_v28 = vor.u32 %v5057_v16, %v4282_v17 }
 0x145   :  { %2165 = vmatpush.bf16.msra.mxu0 %v3485_v40  ;;  %2178 = vmatpush.bf16.msra.mxu1 %v3613_v41  ;;  %v1934_v40 = vpop.f32.mrf.mxu2  ;;  %v1947_v41 = vpop.f32.mrf.mxu3  ;;  %v4394_v38 = vld [vmem:[#allocation2 + $0x758] sm:$0xf0] }
 0x146   :  { %v1935_v9 = vadd.f32 %v1934_v40, %v1922_v61  ;;  %v4993_v61 = vld [vmem:[#allocation2 + $0x46c] sm:$0xf]  ;;  %v4378_v54 = vld [vmem:[#allocation2 + $0x738] sm:$0xf0] }
 0x147   :  { %2190 = vmatpush.bf16.msra.mxu2 %v3757_v47  ;;  %2203 = vmatpush.bf16.msra.mxu3 %v3885_v48  ;;  %v5029_v47 = vld [vmem:[#allocation2 + $0x58c] sm:$0xf]  ;;  %v4170_v48 = vld [vmem:[#allocation2 + $0x598] sm:$0xf0] }
 0x148   :  { %v5524_v52 = vadd.f32 %v1947_v41, %v1935_v9  ;;  %v4173_v31 = vor.u32 %v5029_v47, %v4170_v48  ;;  %v5013_v47 = vld [vmem:[#allocation2 + $0x50c] sm:$0xf]  ;;  %v4106_v48 = vld [vmem:[#allocation2 + $0x518] sm:$0xf0] }
 0x149   :  { %2166 = vmatpush.bf16.msra.mxu0 %v3469_v62  ;;  %2179 = vmatpush.bf16.msra.mxu1 %v3597_v63  ;;  %v1960_v55 = vpop.f32.mrf.mxu0  ;;  %v1973_v56 = vpop.f32.mrf.mxu1  ;;  %v4026_v62 = vld [vmem:[#allocation2 + $0x478] sm:$0xf0]  ;;  %v4317_v63 = vor.u32 %v5065_v49, %v4314_v44  ;;  %v5049_v49 = vld [vmem:[#allocation2 + $0x62c] sm:$0xf] }
 0x14a   :  { %v5528_v57 = vadd.f32 %v1973_v56, %v1960_v55  ;;  %v4250_v44 = vld [vmem:[#allocation2 + $0x638] sm:$0xf0]  ;;  %v2263_v55 = vrot.slane %v5524_v52, 4  ;;  %v2298_v56 = vmul.f32 %v5524_v52, %v5524_v52 }
 0x14b   :  { %2191 = vmatpush.bf16.msra.mxu2 %v3741_v7  ;;  %2204 = vmatpush.bf16.msra.mxu3 %v3869_v8  ;;  %v4029_v7 = vor.u32 %v4993_v61, %v4026_v62  ;;  %v4109_v61 = vor.u32 %v5013_v47, %v4106_v48  ;;  %v5214_v62 = vpop.eup %5213 }
 0x14c   :  { %2167 = vmatmul.bf16.vlgmr.msra.gmra.mxu0 %v5478_v50  ;;  %2180 = vmatmul.bf16.vlgmr.msra.gmra.mxu1 %v5480_v51  ;;  %v4997_v50 = vld [vmem:[#allocation2 + $0x48c] sm:$0xf]  ;;  %v4333_v51 = vor.u32 %v5069_v36, %v4330_v37  ;;  %v4266_v36 = vld [vmem:[#allocation2 + $0x658] sm:$0xf0]  ;;  %vm2292_vm2 = vweird.f32 %v5214_v62 }
 0x14d   :  { %2211 = vmatpush.bf16.msrb.mxu0 %v4093_v2  ;;  %2224 = vmatpush.bf16.msrb.mxu1 %v4221_v3  ;;  %v4045_v58 = vor.u32 %v4997_v50, %v4042_v45  ;;  %v4154_v2 = vld [vmem:[#allocation2 + $0x578] sm:$0xf0]  ;;  %v5061_v3 = vld [vmem:[#allocation2 + $0x68c] sm:$0xf]  ;;  %v1936_v5 = vpop.f32.mrf.mxu2  ;;  %v1949_v6 = vpop.f32.mrf.mxu3 }
 0x14e   :  { %v4157_v8 = vor.u32 %v5025_v1, %v4154_v2  ;;  %v5085_v37 = vld [vmem:[#allocation2 + $0x74c] sm:$0xf]  ;;  %v3978_v50 = vld [vmem:[#allocation2 + $0x418] sm:$0xf0] }
 0x14f   :  { %2192 = vmatpush.bf16.msra.mxu2 %v3725_v25  ;;  %2205 = vmatpush.bf16.msra.mxu3 %v3853_v26  ;;  %v4141_v25 = vor.u32 %v5021_v14, %v4138_v15  ;;  %v4985_v26 = vld [vmem:[#allocation2 + $0x42c] sm:$0xf]  ;;  %v4234_v1 = vld [vmem:[#allocation2 + $0x618] sm:$0xf0] }
 0x150   :  { %v3997_v9 = vor.u32 %v4985_v26, %v3994_v27  ;;  %v5077_v2 = vld [vmem:[#allocation2 + $0x70c] sm:$0xf] }
 0x151   :  { %2212 = vmatpush.bf16.msrb.mxu0 %v4077_v23  ;;  %2225 = vmatpush.bf16.msrb.mxu1 %v4205_v24  ;;  %v1962_v22 = vpop.f32.mrf.mxu0  ;;  %v1975_v23 = vpop.f32.mrf.mxu1  ;;  %v4013_v24 = vor.u32 %v4989_v10, %v4010_v11 }
 0x152   :  { %2193 = vmatmul.bf16.vlgmr.msra.gmra.mxu2 %v5486_v19  ;;  %2206 = vmatmul.bf16.vlgmr.msra.gmra.mxu3 %v5488_v20  ;;  %v4298_v19 = vld [vmem:[#allocation2 + $0x698] sm:$0xf0] }
 0x153   :  { %2237 = vmatpush.bf16.msrb.mxu2 %v4349_v29  ;;  %2250 = vmatpush.bf16.msrb.mxu3 %v4477_v30  ;;  %v4426_v20 = vld [vmem:[#allocation2 + $0x798] sm:$0xf0]  ;;  %v4301_v12 = vor.u32 %v5061_v3, %v4298_v19  ;;  %v4413_v29 = vor.u32 %v5089_v18, %v4410_v21  ;;  %v5017_v30 = vld [vmem:[#allocation2 + $0x52c] sm:$0xf]  ;;  %v2264_v19 = vadd.f32 %v2263_v55, %v5524_v52 }
 0x154   :  { %v4429_v13 = vor.u32 %v5093_v4, %v4426_v20  ;;  %v4362_v3 = vld [vmem:[#allocation2 + $0x718] sm:$0xf0]  ;;  %v2302_v4 = vrot.slane %v2298_v56, 4  ;;  %v2288_v20 = vmul.f32 8.0, %v5214_v62 }
 0x155   :  { %2213 = vmatpush.bf16.msrb.mxu0 %v4061_v42  ;;  %2226 = vmatpush.bf16.msrb.mxu1 %v4189_v43  ;;  %v1986_v40 = vpop.f32.mrf.mxu2  ;;  %v1999_v41 = vpop.f32.mrf.mxu3  ;;  %v4125_v42 = vor.u32 %v5017_v30, %v4122_v34  ;;  %v4981_v43 = vld [vmem:[#allocation2 + $0x40c] sm:$0xf]  ;;  %v2265_v10 = vrot.slane %v2264_v19, 2 }
 0x156   :  { %v1987_v45 = vadd.f32 %v1986_v40, %v5528_v57  ;;  %v4253_v57 = vor.u32 %v5049_v49, %v4250_v44  ;;  %v2303_v11 = vadd.f32 %v2302_v4, %v2298_v56 }
 0x157   :  { %2238 = vmatpush.bf16.msrb.mxu2 %v4333_v51  ;;  %2251 = vmatpush.bf16.msrb.mxu3 %v4461_v46  ;;  %v4269_v51 = vor.u32 %v5053_v35, %v4266_v36  ;;  %v4397_v46 = vor.u32 %v5085_v37, %v4394_v38 }
 0x158   :  { %v2304_v14 = vrot.slane %v2303_v11, 2 }
 0x159   :  { %2214 = vmatpush.bf16.msrb.mxu0 %v4045_v58  ;;  %2227 = vmatpush.bf16.msrb.mxu1 %v4173_v31  ;;  %v2000_v58 = vadd.f32 %v1999_v41, %v1987_v45  ;;  %v3981_v31 = vor.u32 %v4981_v43, %v3978_v50 }
 0x15a   :  { %v2305_v22 = vadd.f32 %v2304_v14, %v2303_v11 }
 0x15b   :  { %2239 = vmatpush.bf16.msrb.mxu2 %v4317_v63  ;;  %2252 = vmatpush.bf16.msrb.mxu3 %v4445_v0  ;;  %v4381_v63 = vor.u32 %v5081_v53, %v4378_v54  ;;  %v5045_v0 = vld [vmem:[#allocation2 + $0x60c] sm:$0xf] }
 0x15d   :  { %2215 = vmatpush.bf16.msrb.mxu0 %v4029_v7  ;;  %2228 = vmatpush.bf16.msrb.mxu1 %v4157_v8  ;;  %v1988_v5 = vpop.f32.mrf.mxu2  ;;  %v2001_v6 = vpop.f32.mrf.mxu3  ;;  %v4237_v7 = vor.u32 %v5045_v0, %v4234_v1  ;;  %v4365_v8 = vor.u32 %v5077_v2, %v4362_v3 }
 0x15f   :  { %2240 = vmatpush.bf16.msrb.mxu2 %v4301_v12  ;;  %2253 = vmatpush.bf16.msrb.mxu3 %v4429_v13  ;;  %v2289_v12 = vsub.f32 1.0, %v2288_v20  ;;  %v2266_v13 = vadd.f32 %v2265_v10, %v2264_v19 }
 0x161   :  { %2216 = vmatpush.bf16.msrb.mxu0 %v4013_v24  ;;  %2229 = vmatpush.bf16.msrb.mxu1 %v4141_v25  ;;  %v2290_v15 = vmul.f32 %v5214_v62, %v2289_v12  ;;  %v2267_v21 = vrot.slane %v2266_v13, 1 }
 0x163   :  { %2241 = vmatpush.bf16.msrb.mxu2 %v4285_v28  ;;  %2254 = vmatpush.bf16.msrb.mxu3 %v4413_v29  ;;  %v2291_v24 = vadd.f32 %v5214_v62, %v2290_v15 }
 0x165   :  { %2217 = vmatpush.bf16.msrb.mxu0 %v3997_v9  ;;  %2230 = vmatpush.bf16.msrb.mxu1 %v4125_v42  ;;  %v5539_v25 = vsel %vm2292_vm2, %v5214_v62, %v2291_v24 }
 0x167   :  { %2242 = vmatpush.bf16.msrb.mxu2 %v4269_v51  ;;  %2255 = vmatpush.bf16.msrb.mxu3 %v4397_v46 }
 0x169   :  { %2218 = vmatpush.bf16.msrb.mxu0 %v3981_v31  ;;  %2231 = vmatpush.bf16.msrb.mxu1 %v4109_v61  ;;  %v2012_v16 = vpop.f32.mrf.mxu0  ;;  %v2025_v17 = vpop.f32.mrf.mxu1 }
 0x16a   :  { %v2013_v18 = vadd.f32 %v2012_v16, %v2000_v58 }
 0x16b   :  { %2243 = vmatpush.bf16.msrb.mxu2 %v4253_v57  ;;  %2256 = vmatpush.bf16.msrb.mxu3 %v4381_v63 }
 0x16c   :  { %2219 = vmatmul.bf16.vlgmr.msrb.gmra.mxu0 %v5494_v59  ;;  %2232 = vmatmul.bf16.vlgmr.msrb.gmra.mxu1 %v5496_v60  ;;  %v2026_v23 = vadd.f32 %v2025_v17, %v2013_v18  ;;  %v2268_v59 = vadd.f32 %v2267_v21, %v2266_v13  ;;  %v2306_v60 = vrot.slane %v2305_v22, 1 }
 0x16e   :  { %v5542_v28 = vmul.f32 %v5539_v25, %v2268_v59 }
 0x16f   :  { %2244 = vmatpush.bf16.msrb.mxu2 %v4237_v7  ;;  %2257 = vmatpush.bf16.msrb.mxu3 %v4365_v8 }
 0x170   :  { %v2330_v35 = vmul.f32 %v5542_v28, %v5542_v28 }
 0x171   :  { %v2014_v26 = vpop.f32.mrf.mxu0  ;;  %v2027_v27 = vpop.f32.mrf.mxu1 }
 0x172   :  { %2245 = vmatmul.bf16.vlgmr.msrb.gmra.mxu2 %v5500_v32  ;;  %2258 = vmatmul.bf16.vlgmr.msrb.gmra.mxu3 %v5502_v33  ;;  %v2307_v32 = vadd.f32 %v2306_v60, %v2305_v22 }
 0x174   :  { %v2326_v34 = vmul.f32 %v2307_v32, %v5539_v25 }
 0x175   :  { %v2038_v29 = vpop.f32.mrf.mxu2  ;;  %v2051_v33 = vpop.f32.mrf.mxu3 }
 0x176   :  { %v2039_v30 = vadd.f32 %v2038_v29, %v2026_v23  ;;  %v2334_v39 = vsub.f32 %v2326_v34, %v2330_v35 }
 0x178   :  { %v5547_v36 = vadd.f32 %v2051_v33, %v2039_v30  ;;  %v2339_v45 = vadd.f32 0.8, %v2334_v39 }
 0x17a   :  { %v2269_v37 = vrot.slane %v5547_v36, 4  ;;  %v2299_v38 = vmul.f32 %v5547_v36, %v5547_v36  ;;  %5215 = vrsqrt.f32 %v2339_v45  ;;  %vm2349_vm7 = vweird.f32 %v2339_v45 }
 0x17c   :  { %v2270_v40 = vadd.f32 %v2269_v37, %v5547_v36  ;;  %v2308_v41 = vrot.slane %v2299_v38, 4 }
 0x17d   :  { %v2040_v9 = vpop.f32.mrf.mxu2  ;;  %v2053_v42 = vpop.f32.mrf.mxu3 }
 0x17e   :  { %v2271_v43 = vrot.slane %v2270_v40, 2  ;;  %v2309_v50 = vadd.f32 %v2308_v41, %v2299_v38 }
 0x180   :  { %v2272_v51 = vadd.f32 %v2271_v43, %v2270_v40  ;;  %v2310_v46 = vrot.slane %v2309_v50, 2  ;;  %v5216_v62 = vpop.eup %5215 }
 0x181   :  { %v2344_v0 = vmul.f32 %v5216_v62, %v2339_v45  ;;  %vm2350_vm4 = vweird.f32 %v5216_v62 }
 0x182   :  { %v2273_v47 = vrot.slane %v2272_v51, 1  ;;  %v2311_v48 = vadd.f32 %v2310_v46, %v2309_v50  ;;  %vm2351_vm9 = vmor %vm2349_vm7, %vm2350_vm4 }
 0x183   :  { %v2345_v3 = vmul.f32 %v5216_v62, %v2344_v0 }
 0x184   :  { %v2274_v49 = vadd.f32 %v2273_v47, %v2272_v51  ;;  %v2312_v44 = vrot.slane %v2311_v48, 1 }
 0x185   :  { %v2346_v6 = vmul.f32 0.5, %v2345_v3 }
 0x186   :  { %v5554_v53 = vmul.f32 %v5539_v25, %v2274_v49  ;;  %v2313_v54 = vadd.f32 %v2312_v44, %v2311_v48 }
 0x187   :  { %v2347_v11 = vsub.f32 1.5, %v2346_v6 }
 0x188   :  { %v2327_v58 = vmul.f32 %v2313_v54, %v5539_v25  ;;  %v2331_v31 = vmul.f32 %v5554_v53, %v5554_v53 }
 0x189   :  { %v2064_v55 = vpop.f32.mrf.mxu0  ;;  %v2077_v56 = vpop.f32.mrf.mxu1  ;;  %v2348_v17 = vmul.f32 %v5216_v62, %v2347_v11 }
 0x18a   :  { %v2078_v61 = vadd.f32 %v2077_v56, %v2064_v55  ;;  %v2335_v57 = vsub.f32 %v2327_v58, %v2331_v31 }
 0x18b   :  { %v2352_v22 = vsel %vm2351_vm9, %v5216_v62, %v2348_v17 }
 0x18c   :  { %v2340_v63 = vadd.f32 0.8, %v2335_v57 }
 0x18e   :  { %5217 = vrsqrt.f32 %v2340_v63  ;;  %vm2359_vm5 = vweird.f32 %v2340_v63 }
 0x191   :  { %v2066_v1 = vpop.f32.mrf.mxu0  ;;  %v2079_v2 = vpop.f32.mrf.mxu1 }
 0x194   :  { %v5218_v20 = vpop.eup %5217 }
 0x195   :  { %v2090_v19 = vpop.f32.mrf.mxu2  ;;  %v2103_v4 = vpop.f32.mrf.mxu3  ;;  %v2354_v7 = vmul.f32 %v5218_v20, %v2340_v63  ;;  %vm2360_vm3 = vweird.f32 %v5218_v20 }
 0x196   :  { %v2091_v5 = vadd.f32 %v2090_v19, %v2078_v61  ;;  %vm2361_vm6 = vmor %vm2359_vm5, %vm2360_vm3 }
 0x197   :  { %v2355_v10 = vmul.f32 %v5218_v20, %v2354_v7  ;;  %v5139_v7 = vld [vmem:[#allocation4 + $0xf4] sm:$0xf0] }
 0x198   :  { %v2104_v8 = vadd.f32 %v2103_v4, %v2091_v5  ;;  %v4536_v4 = vld [vmem:[#allocation4 + $0x70] sm:$0xf] }
 0x199   :  { %v2356_v12 = vmul.f32 0.5, %v2355_v10  ;;  %v4600_v5 = vld [vmem:[#allocation4 + $0xf0] sm:$0xf]  ;;  %v5155_v10 = vld [vmem:[#allocation4 + $0x174] sm:$0xf0] }
 0x19b   :  { %v2357_v13 = vsub.f32 1.5, %v2356_v12 }
 0x19d   :  { %v2092_v14 = vpop.f32.mrf.mxu2  ;;  %v2105_v15 = vpop.f32.mrf.mxu3  ;;  %v2358_v16 = vmul.f32 %v5218_v20, %v2357_v13  ;;  %v4601_v13 = vor.u32 %v5139_v7, %v4600_v5  ;;  %v4704_v5 = vld [vmem:[#allocation4 + $0x1c0] sm:$0xf] }
 0x19e   :  { %v4728_v15 = vld [vmem:[#allocation4 + $0x1f0] sm:$0xf] }
 0x19f   :  { %v2362_v18 = vsel %vm2361_vm6, %v5218_v20, %v2358_v16  ;;  %v5123_v20 = vld [vmem:[#allocation4 + $0x74] sm:$0xf0]  ;;  %2850 = vmatpush.bf16.msra.mxu1 %v4601_v13  ;;  %v4504_v13 = vld [vmem:[#allocation4 + $0x30] sm:$0xf] }
 0x1a0   :  { %v2387_v21 = vrot.slane %v2362_v18, 7  ;;  %v4537_v6 = vor.u32 %v5123_v20, %v4536_v4  ;;  %v5171_v16 = vld [vmem:[#allocation4 + $0x1f4] sm:$0xf0] }
 0x1a1   :  { %v4729_v17 = vor.u32 %v5171_v16, %v4728_v15 }
 0x1a2   :  { %v5560_v23 = vsel %vm2390_vm8, %v2352_v22, %v2387_v21  ;;  %2837 = vmatpush.bf16.msra.mxu0 %v4537_v6  ;;  %v4528_v21 = vld [vmem:[#allocation4 + $0x60] sm:$0xf]  ;;  %v5121_v22 = vld [vmem:[#allocation4 + $0x64] sm:$0xf0] }
 0x1a3   :  { %2876 = vmatpush.bf16.msra.mxu3 %v4729_v17  ;;  %v5165_v6 = vld [vmem:[#allocation4 + $0x1c4] sm:$0xf0] }
 0x1a9   :  { %v2116_v24 = vpop.f32.mrf.mxu0  ;;  %v2129_v59 = vpop.f32.mrf.mxu1 }
 0x1aa   :  { %v2117_v60 = vadd.f32 %v2116_v24, %v2104_v8  ;;  %v4664_v8 = vld [vmem:[#allocation4 + $0x170] sm:$0xf]  ;;  %v4592_v24 = vld [vmem:[#allocation4 + $0xe0] sm:$0xf] }
 0x1ab   :  { %v4665_v14 = vor.u32 %v5155_v10, %v4664_v8  ;;  %v4705_v8 = vor.u32 %v5165_v6, %v4704_v5  ;;  %v5159_v5 = vld [vmem:[#allocation4 + $0x194] sm:$0xf0] }
 0x1ac   :  { %v2130_v26 = vadd.f32 %v2129_v59, %v2117_v60  ;;  %v4529_v59 = vor.u32 %v5121_v22, %v4528_v21  ;;  %v5137_v60 = vld [vmem:[#allocation4 + $0xe4] sm:$0xf0]  ;;  %v5131_v21 = vld [vmem:[#allocation4 + $0xb4] sm:$0xf0]  ;;  %v4632_v22 = vld [vmem:[#allocation4 + $0x130] sm:$0xf] }
 0x1ad   :  { %2863 = vmatpush.bf16.msra.mxu2 %v4665_v14  ;;  %v5115_v14 = vld [vmem:[#allocation4 + $0x34] sm:$0xf0] }
 0x1ae   :  { %2838 = vmatpush.bf16.msra.mxu0 %v4529_v59  ;;  %v4505_v17 = vor.u32 %v5115_v14, %v4504_v13  ;;  %v4480_v13 = vld [vmem:[#allocation4] sm:$0xf]  ;;  %v5109_v14 = vld [vmem:[#allocation4 + $0x4] sm:$0xf0] }
 0x1b1   :  { %v2118_v27 = vpop.f32.mrf.mxu0  ;;  %v2131_v32 = vpop.f32.mrf.mxu1 }
 0x1b2   :  { %v5153_v27 = vld [vmem:[#allocation4 + $0x164] sm:$0xf0] }
 0x1b5   :  { %v2142_v29 = vpop.f32.mrf.mxu2  ;;  %v2155_v33 = vpop.f32.mrf.mxu3 }
 0x1b6   :  { %v2143_v30 = vadd.f32 %v2142_v29, %v2130_v26  ;;  %v4656_v26 = vld [vmem:[#allocation4 + $0x160] sm:$0xf] }
 0x1b8   :  { %v5562_v37 = vadd.f32 %v2155_v33, %v2143_v30  ;;  %v4593_v33 = vor.u32 %v5137_v60, %v4592_v24  ;;  %v4657_v30 = vor.u32 %v5153_v27, %v4656_v26  ;;  %v5147_v26 = vld [vmem:[#allocation4 + $0x134] sm:$0xf0]  ;;  %v4696_v27 = vld [vmem:[#allocation4 + $0x1b0] sm:$0xf] }
 0x1ba   :  { %v2275_v38 = vrot.slane %v5562_v37, 4  ;;  %v2300_v39 = vmul.f32 %v5562_v37, %v5562_v37  ;;  %2851 = vmatpush.bf16.msra.mxu1 %v4593_v33  ;;  %2864 = vmatpush.bf16.msra.mxu2 %v4657_v30  ;;  %v5163_v33 = vld [vmem:[#allocation4 + $0x1b4] sm:$0xf0] }
 0x1bc   :  { %v2276_v9 = vadd.f32 %v2275_v38, %v5562_v37  ;;  %v2314_v42 = vrot.slane %v2300_v39, 4 }
 0x1bd   :  { %v2144_v34 = vpop.f32.mrf.mxu2  ;;  %v2157_v35 = vpop.f32.mrf.mxu3 }
 0x1be   :  { %v2277_v43 = vrot.slane %v2276_v9, 2  ;;  %v2315_v50 = vadd.f32 %v2314_v42, %v2300_v39  ;;  %v4720_v34 = vld [vmem:[#allocation4 + $0x1e0] sm:$0xf]  ;;  %v5169_v35 = vld [vmem:[#allocation4 + $0x1e4] sm:$0xf0] }
 0x1bf   :  { %v4721_v38 = vor.u32 %v5169_v35, %v4720_v34  ;;  %v4697_v35 = vor.u32 %v5163_v33, %v4696_v27  ;;  %v5122_v27 = vld [vmem:[#allocation4 + $0x74] sm:$0xf] }
 0x1c0   :  { %v2278_v46 = vadd.f32 %v2277_v43, %v2276_v9  ;;  %v2316_v47 = vrot.slane %v2315_v50, 2  ;;  %v4584_v9 = vld [vmem:[#allocation4 + $0xd0] sm:$0xf]  ;;  %v5138_v33 = vld [vmem:[#allocation4 + $0xf4] sm:$0xf] }
 0x1c1   :  { %2877 = vmatpush.bf16.msra.mxu3 %v4721_v38  ;;  %v4496_v38 = vld [vmem:[#allocation4 + $0x20] sm:$0xf] }
 0x1c2   :  { %v2279_v44 = vrot.slane %v2278_v46, 1  ;;  %v2317_v54 = vadd.f32 %v2316_v47, %v2315_v50 }
 0x1c4   :  { %v2280_v55 = vadd.f32 %v2279_v44, %v2278_v46  ;;  %v2318_v56 = vrot.slane %v2317_v54, 1  ;;  %v5151_v46 = vld [vmem:[#allocation4 + $0x154] sm:$0xf0]  ;;  %v4712_v44 = vld [vmem:[#allocation4 + $0x1d0] sm:$0xf] }
 0x1c6   :  { %v5569_v61 = vmul.f32 %v5539_v25, %v2280_v55  ;;  %v2319_v62 = vadd.f32 %v2318_v56, %v2317_v54  ;;  %v5167_v54 = vld [vmem:[#allocation4 + $0x1d4] sm:$0xf0] }
 0x1c7   :  { %v4713_v55 = vor.u32 %v5167_v54, %v4712_v44 }
 0x1c8   :  { %v2328_v57 = vmul.f32 %v2319_v62, %v5539_v25  ;;  %v2332_v63 = vmul.f32 %v5569_v61, %v5569_v61  ;;  %v5117_v62 = vld [vmem:[#allocation4 + $0x44] sm:$0xf0] }
 0x1c9   :  { %v2168_v40 = vpop.f32.mrf.mxu0  ;;  %v2181_v41 = vpop.f32.mrf.mxu1  ;;  %2878 = vmatpush.bf16.msra.mxu3 %v4713_v55 }
 0x1ca   :  { %v2182_v0 = vadd.f32 %v2181_v41, %v2168_v40  ;;  %v2336_v1 = vsub.f32 %v2328_v57, %v2332_v63  ;;  %v4520_v40 = vld [vmem:[#allocation4 + $0x50] sm:$0xf]  ;;  %v5119_v41 = vld [vmem:[#allocation4 + $0x54] sm:$0xf0]  ;;  %v4576_v57 = vld [vmem:[#allocation4 + $0xc0] sm:$0xf] }
 0x1cb   :  { %v4521_v50 = vor.u32 %v5119_v41, %v4520_v40  ;;  %v4560_v41 = vld [vmem:[#allocation4 + $0xa0] sm:$0xf] }
 0x1cc   :  { %v5574_v11 = vadd.f32 0.8, %v2336_v1  ;;  %v4640_v1 = vld [vmem:[#allocation4 + $0x140] sm:$0xf] }
 0x1cd   :  { %2839 = vmatpush.bf16.msra.mxu0 %v4521_v50  ;;  %2879 = vmatpush.bf16.msra.mxu3 %v4705_v8 }
 0x1ce   :  { %5219 = vrsqrt.f32 %v5574_v11  ;;  %vm2369_vm11 = vweird.f32 %v5574_v11 }
 0x1d1   :  { %v2170_v45 = vpop.f32.mrf.mxu0  ;;  %v2183_v51 = vpop.f32.mrf.mxu1  ;;  %2880 = vmatpush.bf16.msra.mxu3 %v4697_v35 }
 0x1d2   :  { %v5135_v45 = vld [vmem:[#allocation4 + $0xd4] sm:$0xf0]  ;;  %v4648_v51 = vld [vmem:[#allocation4 + $0x150] sm:$0xf] }
 0x1d4   :  { %v5577_v56 = vpop.eup %5219 }
 0x1d5   :  { %v2194_v48 = vpop.f32.mrf.mxu2  ;;  %v2207_v49 = vpop.f32.mrf.mxu3  ;;  %v2364_v7 = vmul.f32 %v5577_v56, %v5574_v11  ;;  %vm2370_vm10 = vweird.f32 %v5577_v56 }
 0x1d6   :  { %v2195_v2 = vadd.f32 %v2194_v48, %v2182_v0  ;;  %v4585_v48 = vor.u32 %v5135_v45, %v4584_v9  ;;  %v5133_v0 = vld [vmem:[#allocation4 + $0xc4] sm:$0xf0]  ;;  %vm5605_vm12 = vmor %vm2369_vm11, %vm2370_vm10  ;;  %vm3308_vm11 = vcmask 523264  }
 0x1d7   :  { %v4577_v4 = vor.u32 %v5133_v0, %v4576_v57  ;;  %v5129_v9 = vld [vmem:[#allocation4 + $0xa4] sm:$0xf0]  ;;  %v5127_v0 = vld [vmem:[#allocation4 + $0x94] sm:$0xf0] }
 0x1d8   :  { %v2208_v12 = vadd.f32 %v2207_v49, %v2195_v2  ;;  %v4649_v49 = vor.u32 %v5151_v46, %v4648_v51  ;;  %2852 = vmatpush.bf16.msra.mxu1 %v4585_v48  ;;  %v5149_v2 = vld [vmem:[#allocation4 + $0x144] sm:$0xf0]  ;;  %v4561_v45 = vor.u32 %v5129_v9, %v4560_v41  ;;  %v4688_v46 = vld [vmem:[#allocation4 + $0x1a0] sm:$0xf]  ;;  %v5170_v9 = vld [vmem:[#allocation4 + $0x1f4] sm:$0xf] }
 0x1d9   :  { %v4641_v20 = vor.u32 %v5149_v2, %v4640_v1  ;;  %v5145_v51 = vld [vmem:[#allocation4 + $0x124] sm:$0xf0]  ;;  %v4616_v1 = vld [vmem:[#allocation4 + $0x110] sm:$0xf] }
 0x1da   :  { %2865 = vmatpush.bf16.msra.mxu2 %v4649_v49  ;;  %v5161_v49 = vld [vmem:[#allocation4 + $0x1a4] sm:$0xf0] }
 0x1db   :  { %v4689_v55 = vor.u32 %v5161_v49, %v4688_v46  ;;  %v4594_v46 = vld [vmem:[#allocation4 + $0xe8] sm:$0xf0]  ;;  %v5152_v49 = vld [vmem:[#allocation4 + $0x164] sm:$0xf] }
 0x1dc   :  { %2853 = vmatpush.bf16.msra.mxu1 %v4577_v4  ;;  %v5143_v4 = vld [vmem:[#allocation4 + $0x114] sm:$0xf0] }
 0x1dd   :  { %v2196_v58 = vpop.f32.mrf.mxu2  ;;  %v2209_v31 = vpop.f32.mrf.mxu3  ;;  %2881 = vmatpush.bf16.msra.mxu3 %v4689_v55 }
 0x1de   :  { %v4512_v31 = vld [vmem:[#allocation4 + $0x40] sm:$0xf]  ;;  %2866 = vmatpush.bf16.msra.mxu2 %v4641_v20  ;;  %v4680_v20 = vld [vmem:[#allocation4 + $0x190] sm:$0xf] }
 0x1df   :  { %v4513_v63 = vor.u32 %v5117_v62, %v4512_v31  ;;  %v4488_v31 = vld [vmem:[#allocation4 + $0x10] sm:$0xf]  ;;  %v5111_v62 = vld [vmem:[#allocation4 + $0x14] sm:$0xf0]  ;;  %v4681_v8 = vor.u32 %v5159_v5, %v4680_v20  ;;  %v4650_v20 = vld [vmem:[#allocation4 + $0x158] sm:$0xf0] }
 0x1e0   :  { %v4489_v57 = vor.u32 %v5111_v62, %v4488_v31  ;;  %v4722_v31 = vld [vmem:[#allocation4 + $0x1e8] sm:$0xf0]  ;;  %v5118_v62 = vld [vmem:[#allocation4 + $0x54] sm:$0xf] }
 0x1e1   :  { %2840 = vmatpush.bf16.msra.mxu0 %v4513_v63  ;;  %v4552_v63 = vld [vmem:[#allocation4 + $0x90] sm:$0xf]  ;;  %2882 = vmatpush.bf16.msra.mxu3 %v4681_v8  ;;  %v5166_v5 = vld [vmem:[#allocation4 + $0x1d4] sm:$0xf] }
 0x1e5   :  { %2841 = vmatpush.bf16.msra.mxu0 %v4505_v17  ;;  %v5125_v17 = vld [vmem:[#allocation4 + $0x84] sm:$0xf0] }
 0x1e9   :  { %v2220_v3 = vpop.f32.mrf.mxu0  ;;  %v2233_v19 = vpop.f32.mrf.mxu1 }
 0x1ea   :  { %v2221_v18 = vadd.f32 %v2220_v3, %v2208_v12 }
 0x1ec   :  { %v2234_v39 = vadd.f32 %v2233_v19, %v2221_v18  ;;  %v4568_v18 = vld [vmem:[#allocation4 + $0xb0] sm:$0xf] }
 0x1ed   :  { %v4569_v60 = vor.u32 %v5131_v21, %v4568_v18  ;;  %v4608_v18 = vld [vmem:[#allocation4 + $0x100] sm:$0xf]  ;;  %v5141_v21 = vld [vmem:[#allocation4 + $0x104] sm:$0xf0] }
 0x1ef   :  { %2854 = vmatpush.bf16.msra.mxu1 %v4569_v60  ;;  %v4672_v60 = vld [vmem:[#allocation4 + $0x180] sm:$0xf] }
 0x1f1   :  { %v2222_v32 = vpop.f32.mrf.mxu0  ;;  %v2235_v29 = vpop.f32.mrf.mxu1 }
 0x1f2   :  { %v2365_v32 = vmul.f32 %v5577_v56, %v2364_v7  ;;  %v4633_v29 = vor.u32 %v5147_v26, %v4632_v22  ;;  %v4617_v7 = vor.u32 %v5143_v4, %v4616_v1  ;;  %v5157_v26 = vld [vmem:[#allocation4 + $0x184] sm:$0xf0]  ;;  %v4586_v1 = vld [vmem:[#allocation4 + $0xd8] sm:$0xf0] }
 0x1f3   :  { %2855 = vmatpush.bf16.msra.mxu1 %v4561_v45  ;;  %v4530_v45 = vld [vmem:[#allocation4 + $0x68] sm:$0xf0] }
 0x1f4   :  { %2867 = vmatpush.bf16.msra.mxu2 %v4633_v29  ;;  %v4538_v29 = vld [vmem:[#allocation4 + $0x78] sm:$0xf0] }
 0x1f5   :  { %v2246_v42 = vpop.f32.mrf.mxu2  ;;  %v2259_v43 = vpop.f32.mrf.mxu3  ;;  %v4541_v35 = vor.u32 %v5122_v27, %v4538_v29 }
 0x1f6   :  { %v2247_v47 = vadd.f32 %v2246_v42, %v2234_v39  ;;  %v5113_v39 = vld [vmem:[#allocation4 + $0x24] sm:$0xf0]  ;;  %v4624_v42 = vld [vmem:[#allocation4 + $0x120] sm:$0xf] }
 0x1f7   :  { %v4497_v40 = vor.u32 %v5113_v39, %v4496_v38  ;;  %v4625_v48 = vor.u32 %v5145_v51, %v4624_v42  ;;  %v5154_v39 = vld [vmem:[#allocation4 + $0x174] sm:$0xf]  ;;  %v4730_v42 = vld [vmem:[#allocation4 + $0x1f8] sm:$0xf0]  ;;  %v5136_v51 = vld [vmem:[#allocation4 + $0xe4] sm:$0xf] }
 0x1f8   :  { %v5579_v58 = vadd.f32 %v2259_v43, %v2247_v47  ;;  %v5588_v47 = vmul.f32 0.5, %v2365_v32  ;;  %v4673_v32 = vor.u32 %v5157_v26, %v4672_v60 }
 0x1f9   :  { %2842 = vmatpush.bf16.msra.mxu0 %v4497_v40  ;;  %2868 = vmatpush.bf16.msra.mxu2 %v4625_v48  ;;  %v4666_v40 = vld [vmem:[#allocation4 + $0x178] sm:$0xf0]  ;;  %v4597_v48 = vor.u32 %v5136_v51, %v4594_v46 }
 0x1fa   :  { %v2281_v3 = vrot.slane %v5579_v58, 4  ;;  %v2301_v19 = vmul.f32 %v5579_v58, %v5579_v58  ;;  %v2367_v6 = vsub.f32 1.5, %v5588_v47  ;;  %v4669_v41 = vor.u32 %v5154_v39, %v4666_v40  ;;  %2883 = vmatpush.bf16.msra.mxu3 %v4673_v32  ;;  %v5130_v39 = vld [vmem:[#allocation4 + $0xb4] sm:$0xf] }
 0x1fc   :  { %v2282_v10 = vadd.f32 %v2281_v3, %v5579_v58  ;;  %v2320_v12 = vrot.slane %v2301_v19, 4 }
 0x1fd   :  { %v2248_v15 = vpop.f32.mrf.mxu2  ;;  %v2261_v16 = vpop.f32.mrf.mxu3  ;;  %2843 = vmatpush.bf16.msra.mxu0 %v4489_v57  ;;  %2869 = vmatpush.bf16.msra.mxu2 %v4617_v7  ;;  %v4522_v57 = vld [vmem:[#allocation4 + $0x58] sm:$0xf0] }
 0x1fe   :  { %v2283_v24 = vrot.slane %v2282_v10, 2  ;;  %v2321_v59 = vadd.f32 %v2320_v12, %v2301_v19  ;;  %v4553_v19 = vor.u32 %v5127_v0, %v4552_v63  ;;  %v4544_v15 = vld [vmem:[#allocation4 + $0x80] sm:$0xf]  ;;  %v4481_v16 = vor.u32 %v5109_v14, %v4480_v13  ;;  %v5134_v0 = vld [vmem:[#allocation4 + $0xd4] sm:$0xf] }
 0x1ff   :  { %v4525_v4 = vor.u32 %v5118_v62, %v4522_v57  ;;  %v4714_v7 = vld [vmem:[#allocation4 + $0x1d8] sm:$0xf0]  ;;  %v4589_v8 = vor.u32 %v5134_v0, %v4586_v1  ;;  %v4514_v13 = vld [vmem:[#allocation4 + $0x48] sm:$0xf0]  ;;  %v5132_v14 = vld [vmem:[#allocation4 + $0xc4] sm:$0xf] }
 0x200   :  { %v2284_v30 = vadd.f32 %v2283_v24, %v2282_v10  ;;  %v2322_v34 = vrot.slane %v2321_v59, 2  ;;  %2856 = vmatpush.bf16.msra.mxu1 %v4553_v19  ;;  %v4545_v24 = vor.u32 %v5125_v17, %v4544_v15  ;;  %v2368_v19 = vmul.f32 %v5577_v56, %v2367_v6  ;;  %v4578_v6 = vld [vmem:[#allocation4 + $0xc8] sm:$0xf0]  ;;  %v5148_v17 = vld [vmem:[#allocation4 + $0x144] sm:$0xf] }
 0x201   :  { %2844 = vmatpush.bf16.msra.mxu0 %v4481_v16  ;;  %v4717_v16 = vor.u32 %v5166_v5, %v4714_v7  ;;  %v4581_v27 = vor.u32 %v5132_v14, %v4578_v6  ;;  %v4626_v62 = vld [vmem:[#allocation4 + $0x128] sm:$0xf0]  ;;  %v2338_v57 = vld [vmem:[%s5742_s4] sm:$0xf]  ;;  %v4490_v7 = vld [vmem:[#allocation4 + $0x18] sm:$0xf0] }
 0x202   :  { %v2285_v43 = vrot.slane %v2284_v30, 1  ;;  %v2323_v50 = vadd.f32 %v2322_v34, %v2321_v59  ;;  %v4609_v59 = vor.u32 %v5141_v21, %v4608_v18  ;;  %v4642_v18 = vld [vmem:[#allocation4 + $0x148] sm:$0xf0]  ;;  %v2372_v60 = vsel %vm5605_vm12, %v5577_v56, %v2368_v19  ;;  %v4682_v6 = vld [vmem:[#allocation4 + $0x198] sm:$0xf0] }
 0x203   :  { %v4645_v32 = vor.u32 %v5148_v17, %v4642_v18  ;;  %v4690_v19 = vld [vmem:[#allocation4 + $0x1a8] sm:$0xf0]  ;;  %v5108_v17 = vld [vmem:[#allocation4 + $0x4] sm:$0xf] }
 0x204   :  { %v2286_v44 = vadd.f32 %v2285_v43, %v2284_v30  ;;  %v2324_v54 = vrot.slane %v2323_v50, 1  ;;  %v4602_v30 = vld [vmem:[#allocation4 + $0xf8] sm:$0xf0]  ;;  %2857 = vmatpush.bf16.msra.mxu1 %v4545_v24  ;;  %2870 = vmatpush.bf16.msra.mxu2 %v4609_v59  ;;  %v5120_v43 = vld [vmem:[#allocation4 + $0x64] sm:$0xf] }
 0x205   :  { %v4605_v38 = vor.u32 %v5138_v33, %v4602_v30  ;;  %2889 = vmatpush.bf16.msrb.mxu0 %v4541_v35  ;;  %v4533_v47 = vor.u32 %v5120_v43, %v4530_v45  ;;  %v5164_v24 = vld [vmem:[#allocation4 + $0x1c4] sm:$0xf]  ;;  %v4706_v59 = vld [vmem:[#allocation4 + $0x1c8] sm:$0xf0]  ;;  %v2388_v30 = vrot.slane %v2372_v60, 6 }
 0x206   :  { %v5591_v2 = vmul.f32 %v5539_v25, %v2286_v44  ;;  %v2325_v3 = vadd.f32 %v2324_v54, %v2323_v50  ;;  %v4733_v50 = vor.u32 %v5170_v9, %v4730_v42  ;;  %v4658_v44 = vld [vmem:[#allocation4 + $0x168] sm:$0xf0]  ;;  %v5168_v54 = vld [vmem:[#allocation4 + $0x1e4] sm:$0xf]  ;;  %v4709_v29 = vor.u32 %v5164_v24, %v4706_v59  ;;  %v5114_v35 = vld [vmem:[#allocation4 + $0x34] sm:$0xf] }
 0x207   :  { %v4661_v55 = vor.u32 %v5152_v49, %v4658_v44  ;;  %v4725_v63 = vor.u32 %v5168_v54, %v4722_v31  ;;  %v4570_v9 = vld [vmem:[#allocation4 + $0xb8] sm:$0xf0]  ;;  %v5146_v42 = vld [vmem:[#allocation4 + $0x134] sm:$0xf]  ;;  %v4498_v49 = vld [vmem:[#allocation4 + $0x28] sm:$0xf0] }
 0x208   :  { %v2329_v10 = vmul.f32 %v2325_v3, %v5539_v25  ;;  %v2333_v12 = vmul.f32 %v5591_v2, %v5591_v2  ;;  %2902 = vmatpush.bf16.msrb.mxu1 %v4605_v38  ;;  %2915 = vmatpush.bf16.msrb.mxu2 %v4669_v41  ;;  %v5150_v3 = vld [vmem:[#allocation4 + $0x154] sm:$0xf]  ;;  %v4506_v38 = vld [vmem:[#allocation4 + $0x38] sm:$0xf0]  ;;  %v4573_v43 = vor.u32 %v5130_v39, %v4570_v9  ;;  %v5128_v44 = vld [vmem:[#allocation4 + $0xa4] sm:$0xf] }
 0x209   :  { %2928 = vmatpush.bf16.msrb.mxu3 %v4733_v50  ;;  %2890 = vmatpush.bf16.msrb.mxu0 %v4533_v47  ;;  %v4509_v41 = vor.u32 %v5114_v35, %v4506_v38  ;;  %v4634_v50 = vld [vmem:[#allocation4 + $0x138] sm:$0xf0]  ;;  %v5162_v45 = vld [vmem:[#allocation4 + $0x1b4] sm:$0xf]  ;;  %v5144_v31 = vld [vmem:[#allocation4 + $0x124] sm:$0xf] }
 0x20a   :  { %v2337_v22 = vsub.f32 %v2329_v10, %v2333_v12  ;;  %v4653_v10 = vor.u32 %v5150_v3, %v4650_v20  ;;  %v5116_v12 = vld [vmem:[#allocation4 + $0x44] sm:$0xf]  ;;  %v4637_v46 = vor.u32 %v5146_v42, %v4634_v50  ;;  %v4629_v1 = vor.u32 %v5144_v31, %v4626_v62  ;;  %v4482_v24 = vld [vmem:[#allocation4 + $0x8] sm:$0xf0] }
 0x20b   :  { %v4517_v11 = vor.u32 %v5116_v12, %v4514_v13  ;;  %v5160_v3 = vld [vmem:[#allocation4 + $0x1a4] sm:$0xf]  ;;  %v5142_v12 = vld [vmem:[#allocation4 + $0x114] sm:$0xf]  ;;  %v4618_v13 = vld [vmem:[#allocation4 + $0x118] sm:$0xf0] }
 0x20c   :  { %v5597_v34 = vadd.f32 0.8, %v2337_v22  ;;  %2903 = vmatpush.bf16.msrb.mxu1 %v4597_v48  ;;  %2916 = vmatpush.bf16.msrb.mxu2 %v4661_v55  ;;  %v5112_v48 = vld [vmem:[#allocation4 + $0x24] sm:$0xf]  ;;  %v4562_v55 = vld [vmem:[#allocation4 + $0xa8] sm:$0xf0]  ;;  %v4693_v5 = vor.u32 %v5160_v3, %v4690_v19 }
 0x20d   :  { %2929 = vmatpush.bf16.msrb.mxu3 %v4725_v63  ;;  %2891 = vmatpush.bf16.msrb.mxu0 %v4525_v4  ;;  %v4501_v54 = vor.u32 %v5112_v48, %v4498_v49  ;;  %v4565_v0 = vor.u32 %v5128_v44, %v4562_v55  ;;  %v5110_v4 = vld [vmem:[#allocation4 + $0x14] sm:$0xf]  ;;  %v5124_v59 = vld [vmem:[#allocation4 + $0x84] sm:$0xf] }
 0x20e   :  { %5221 = vrsqrt.f32 %v5597_v34  ;;  %vm2379_vm14 = vweird.f32 %v5597_v34 }
 0x210   :  { %2904 = vmatpush.bf16.msrb.mxu1 %v4589_v8  ;;  %2917 = vmatpush.bf16.msrb.mxu2 %v4653_v10  ;;  %v5126_v8 = vld [vmem:[#allocation4 + $0x94] sm:$0xf]  ;;  %v4554_v10 = vld [vmem:[#allocation4 + $0x98] sm:$0xf0] }
 0x211   :  { %2930 = vmatpush.bf16.msrb.mxu3 %v4717_v16  ;;  %2892 = vmatpush.bf16.msrb.mxu0 %v4517_v11  ;;  %v5158_v16 = vld [vmem:[#allocation4 + $0x194] sm:$0xf]  ;;  %v4557_v21 = vor.u32 %v5126_v8, %v4554_v10 }
 0x212   :  { %v4685_v11 = vor.u32 %v5158_v16, %v4682_v6 }
 0x214   :  { %v5222_v15 = vpop.eup %5221  ;;  %2905 = vmatpush.bf16.msrb.mxu1 %v4581_v27  ;;  %2918 = vmatpush.bf16.msrb.mxu2 %v4645_v32  ;;  %v5140_v27 = vld [vmem:[#allocation4 + $0x104] sm:$0xf]  ;;  %v4610_v32 = vld [vmem:[#allocation4 + $0x108] sm:$0xf0] }
 0x215   :  { %v2374_v22 = vmul.f32 %v5222_v15, %v5597_v34  ;;  %vm2380_vm13 = vweird.f32 %v5222_v15  ;;  %2931 = vmatpush.bf16.msrb.mxu3 %v4709_v29  ;;  %v4698_v34 = vld [vmem:[#allocation4 + $0x1b8] sm:$0xf0]  ;;  %2893 = vmatpush.bf16.msrb.mxu0 %v4509_v41  ;;  %v4485_v29 = vor.u32 %v5108_v17, %v4482_v24  ;;  %v4613_v56 = vor.u32 %v5140_v27, %v4610_v32 }
 0x216   :  { %vm5614_vm15 = vmor %vm2379_vm14, %vm2380_vm13  ;;  %v4701_v47 = vor.u32 %v5162_v45, %v4698_v34 }
 0x217   :  { %v2375_v26 = vmul.f32 %v5222_v15, %v2374_v22  ;;  %v4621_v22 = vor.u32 %v5142_v12, %v4618_v13 }
 0x218   :  { %2906 = vmatpush.bf16.msrb.mxu1 %v4573_v43  ;;  %2919 = vmatpush.bf16.msrb.mxu2 %v4637_v46 }
 0x219   :  { %v2376_v33 = vmul.f32 0.5, %v2375_v26  ;;  %2932 = vmatpush.bf16.msrb.mxu3 %v4701_v47  ;;  %2894 = vmatpush.bf16.msrb.mxu0 %v4501_v54  ;;  %v4546_v26 = vld [vmem:[#allocation4 + $0x88] sm:$0xf0] }
 0x21b   :  { %v2377_v40 = vsub.f32 1.5, %v2376_v33  ;;  %v5156_v33 = vld [vmem:[#allocation4 + $0x184] sm:$0xf] }
 0x21c   :  { %2907 = vmatpush.bf16.msrb.mxu1 %v4565_v0  ;;  %2920 = vmatpush.bf16.msrb.mxu2 %v4629_v1 }
 0x21d   :  { %v2378_v51 = vmul.f32 %v5222_v15, %v2377_v40  ;;  %2933 = vmatpush.bf16.msrb.mxu3 %v4693_v5 }
 0x21f   :  { %v2382_v63 = vsel %vm5614_vm15, %v5222_v15, %v2378_v51  ;;  %v4493_v15 = vor.u32 %v5110_v4, %v4490_v7  ;;  %vm3421_vm15 = vcmask 130048  }
 0x220   :  { %v2389_v20 = vrot.slane %v2382_v63, 5  ;;  %2908 = vmatpush.bf16.msrb.mxu1 %v4557_v21  ;;  %2921 = vmatpush.bf16.msrb.mxu2 %v4621_v22 }
 0x221   :  { %2895 = vmatpush.bf16.msrb.mxu0 %v4493_v15  ;;  %2934 = vmatpush.bf16.msrb.mxu3 %v4685_v11 }
 0x222   :  { %v2393_v14 = vsel %vm2392_vm0, %v2388_v30, %v2389_v20  ;;  %v4674_v30 = vld [vmem:[#allocation4 + $0x188] sm:$0xf0] }
 0x223   :  { %v2395_v18 = vsel %vm2394_vm1, %v5560_v23, %v2393_v14  ;;  %v4549_v23 = vor.u32 %v5124_v59, %v4546_v26  ;;  %v4677_v43 = vor.u32 %v5156_v33, %v4674_v30 }
 0x224   :  { %v2397_v60 = vmul.f32 %v2395_v18, %v2338_v57  ;;  %2922 = vmatpush.bf16.msrb.mxu2 %v4613_v56 }
 0x225   :  { %2896 = vmatpush.bf16.msrb.mxu0 %v4485_v29  ;;  %2909 = vmatpush.bf16.msrb.mxu1 %v4549_v23 }
 0x226   :  { %v2401_v35 = vperm.slane %v2397_v60, 1  ;;  %v2402_v38 = vperm.slane %v2397_v60, 2  ;;  %v2403_v39 = vperm.slane %v2397_v60, 3  ;;  %v2400_v40 = vperm.slane %v2397_v60, 0  ;;  %2935 = vmatpush.bf16.msrb.mxu3 %v4677_v43 }
 0x228   :  { %v2410_v41 = vmul.f32 %v2402_v38, %v5569_v61  ;;  %v2411_v9 = vmul.f32 %v2403_v39, %v5591_v2  ;;  %v2408_v42 = vmul.f32 %v2400_v40, %v5542_v28  ;;  %v2409_v50 = vmul.f32 %v2401_v35, %v5554_v53  ;;  %v2398_v28 = vld [vmem:[%s5743_s5] sm:$0xf] }
 0x229   :  { %v2424_v45 = vmul.f32 %v2400_v40, %v5524_v52  ;;  %v2425_v34 = vmul.f32 %v2401_v35, %v5547_v36  ;;  %v2426_v51 = vmul.f32 %v2402_v38, %v5562_v37  ;;  %v2427_v37 = vmul.f32 %v2403_v39, %v5579_v58 }
 0x22a   :  { %v2417_v46 = vrot.slane %v2410_v41, 6  ;;  %v2418_v47 = vrot.slane %v2411_v9, 5  ;;  %v2416_v48 = vrot.slane %v2409_v50, 7 }
 0x22c   :  { %v2420_v61 = vsel %vm2392_vm0, %v2417_v46, %v2418_v47  ;;  %v2419_v53 = vsel %vm2390_vm8, %v2408_v42, %v2416_v48  ;;  %v5187_v46 = vld [vmem:[#allocation6 + $0x78] sm:$0xff]  ;;  %vm3438_vm0 = vcmask 261120  }
 0x22d   :  { %v2421_v52 = vsel %vm2394_vm1, %v2419_v53, %v2420_v61 }
 0x22e   :  { %v2423_v36 = vsub.f32 %v2398_v28, %v2421_v52  ;;  %v5178_v52 = vld [vmem:[#allocation6 + $0x30] sm:$0xff] }
 0x230   :  { %v2429_v2 = vperm.slane %v2423_v36, 0  ;;  %v2430_v49 = vperm.slane %v2423_v36, 1  ;;  %v2431_v44 = vperm.slane %v2423_v36, 2  ;;  %v2432_v54 = vperm.slane %v2423_v36, 3  ;;  %v5186_v36 = vld [vmem:[#allocation6 + $0x70] sm:$0xff] }
 0x232   :  { %v2437_v55 = vadd.f32 %v2429_v2, %v2424_v45  ;;  %v2438_v31 = vadd.f32 %v2430_v49, %v2425_v34  ;;  %v2439_v62 = vadd.f32 %v2431_v44, %v2426_v51  ;;  %v2440_v57 = vadd.f32 %v2432_v54, %v2427_v37  ;;  %v5179_v51 = vld [vmem:[#allocation6 + $0x38] sm:$0xff] }
 0x234   :  { %v2441_v63 = vmul.f32 0.2, %v2437_v55  ;;  %v2442_v0 = vmul.f32 0.2, %v2438_v31  ;;  %v2443_v1 = vmul.f32 0.2, %v2439_v62 }
 0x235   :  { %v2444_v3 = vmul.f32 0.2, %v2440_v57 }
 0x236   :  { %v2445_v19 = vmax.f32 %v2437_v55, %v2441_v63  ;;  %v2446_v4 = vmax.f32 %v2438_v31, %v2442_v0  ;;  %v2447_v20 = vmax.f32 %v2439_v62, %v2443_v1  ;;  %v5177_v62 = vld [vmem:[#allocation6 + $0x28] sm:$0xff] }
 0x237   :  { %v2448_v5 = vmax.f32 %v2440_v57, %v2444_v3  ;;  %v5185_v57 = vld [vmem:[#allocation6 + $0x68] sm:$0xff] }
 0x238   :  { %v2449_v7 = vpack.c.bf16 %v2445_v19, %v2445_v19  ;;  %v2450_v8 = vpack.c.bf16 %v2446_v4, %v2446_v4  ;;  %v2451_v10 = vpack.c.bf16 %v2447_v20, %v2447_v20  ;;  %v5176_v4 = vld [vmem:[#allocation6 + $0x20] sm:$0xff] }
 0x239   :  { %v2452_v58 = vpack.c.bf16 %v2448_v5, %v2448_v5  ;;  %v5184_v20 = vld [vmem:[#allocation6 + $0x60] sm:$0xff] }
 0x23a   :  { %2845 = vmatmul.bf16.vlgmr.msra.gmra.mxu0 %v2449_v7  ;;  %2858 = vmatmul.bf16.vlgmr.msra.gmra.mxu1 %v2450_v8 }
 0x23b   :  { %2871 = vmatmul.bf16.vlgmr.msra.gmra.mxu2 %v2451_v10  ;;  %2884 = vmatmul.bf16.vlgmr.msra.gmra.mxu3 %v2452_v58 }
 0x23c   :  { %3161 = vmatpush.bf16.msra.mxu0 %v5179_v51  ;;  %3174 = vmatpush.bf16.msra.mxu1 %v5187_v46  ;;  %v3004_v46 = vld [vmem:[%s5746_s8] sm:$0x3] }
 0x240   :  { %3162 = vmatpush.bf16.msra.mxu0 %v5178_v52  ;;  %3175 = vmatpush.bf16.msra.mxu1 %v5186_v36 }
 0x244   :  { %3163 = vmatpush.bf16.msra.mxu0 %v5177_v62  ;;  %3176 = vmatpush.bf16.msra.mxu1 %v5185_v57 }
 0x248   :  { %3164 = vmatpush.bf16.msra.mxu0 %v5176_v4  ;;  %3177 = vmatpush.bf16.msra.mxu1 %v5184_v20  ;;  %v5192_v20 = vld [vmem:[%s5750_s12 + $0x20] sm:$0xff] }
 0x24a   :  { %2897 = vmatmul.bf16.vlgmr.msrb.gmra.mxu0 %v2449_v7  ;;  %2910 = vmatmul.bf16.vlgmr.msrb.gmra.mxu1 %v2450_v8 }
 0x24b   :  { %2923 = vmatmul.bf16.vlgmr.msrb.gmra.mxu2 %v2451_v10  ;;  %2936 = vmatmul.bf16.vlgmr.msrb.gmra.mxu3 %v2452_v58  ;;  %v5175_v58 = vld [vmem:[#allocation6 + $0x18] sm:$0xff] }
 0x24c   :  { %3165 = vmatpush.bf16.msra.mxu0 %v5175_v58 }
 0x2b7   :  { %v2846_v12 = vpop.f32.mrf.mxu0  ;;  %v2859_v13 = vpop.f32.mrf.mxu1 }
 0x2b8   :  { %v2860_v14 = vadd.f32 %v2859_v13, %v2846_v12  ;;  %v5183_v12 = vld [vmem:[#allocation6 + $0x58] sm:$0xff] }
 0x2b9   :  { %3178 = vmatpush.bf16.msra.mxu1 %v5183_v12 }
 0x2be   :  { %v2872_v15 = vpop.f32.mrf.mxu2  ;;  %v2885_v16 = vpop.f32.mrf.mxu3 }
 0x2bf   :  { %v2873_v6 = vadd.f32 %v2872_v15, %v2860_v14  ;;  %v2848_v17 = vpop.f32.mrf.mxu0  ;;  %v2861_v18 = vpop.f32.mrf.mxu1 }
 0x2c0   :  { %v5182_v17 = vld [vmem:[#allocation6 + $0x50] sm:$0xff] }
 0x2c1   :  { %v5640_v21 = vadd.f32 %v2885_v16, %v2873_v6  ;;  %v5174_v6 = vld [vmem:[#allocation6 + $0x10] sm:$0xff]  ;;  %3179 = vmatpush.bf16.msra.mxu1 %v5182_v17 }
 0x2c2   :  { %3166 = vmatpush.bf16.msra.mxu0 %v5174_v6  ;;  %v5190_v17 = vld [vmem:[%s5750_s12 + $0x10] sm:$0xff] }
 0x2c3   :  { %v2941_v22 = vrot.slane %v5640_v21, 4  ;;  %v2955_v24 = vmul.f32 %v5640_v21, %v5640_v21 }
 0x2c5   :  { %v2942_v59 = vadd.f32 %v2941_v22, %v5640_v21  ;;  %v2957_v60 = vrot.slane %v2955_v24, 4 }
 0x2c6   :  { %v2874_v11 = vpop.f32.mrf.mxu2  ;;  %v2887_v26 = vpop.f32.mrf.mxu3 }
 0x2c7   :  { %v2943_v27 = vrot.slane %v2942_v59, 2  ;;  %v2958_v32 = vadd.f32 %v2957_v60, %v2955_v24  ;;  %v2898_v29 = vpop.f32.mrf.mxu0  ;;  %v2911_v33 = vpop.f32.mrf.mxu1  ;;  %v5173_v24 = vld [vmem:[#allocation6 + $0x8] sm:$0xff]  ;;  %v5172_v11 = vld [vmem:[#allocation6] sm:$0xff] }
 0x2c8   :  { %v2912_v56 = vadd.f32 %v2911_v33, %v2898_v29  ;;  %3167 = vmatpush.bf16.msra.mxu0 %v5173_v24  ;;  %v5180_v26 = vld [vmem:[#allocation6 + $0x40] sm:$0xff] }
 0x2c9   :  { %v2944_v30 = vadd.f32 %v2943_v27, %v2942_v59  ;;  %v2959_v35 = vrot.slane %v2958_v32, 2  ;;  %v5181_v59 = vld [vmem:[#allocation6 + $0x48] sm:$0xff] }
 0x2ca   :  { %3180 = vmatpush.bf16.msra.mxu1 %v5181_v59 }
 0x2cb   :  { %v2945_v38 = vrot.slane %v2944_v30, 1  ;;  %v2960_v39 = vadd.f32 %v2959_v35, %v2958_v32 }
 0x2cc   :  { %3168 = vmatpush.bf16.msra.mxu0 %v5172_v11 }
 0x2cd   :  { %v2946_v40 = vadd.f32 %v2945_v38, %v2944_v30  ;;  %v2961_v23 = vrot.slane %v2960_v39, 1 }
 0x2ce   :  { %v2924_v41 = vpop.f32.mrf.mxu2  ;;  %v2937_v9 = vpop.f32.mrf.mxu3  ;;  %3181 = vmatpush.bf16.msra.mxu1 %v5180_v26 }
 0x2cf   :  { %v5647_v42 = vmul.f32 %v2946_v40, %v5539_v25  ;;  %v2962_v43 = vadd.f32 %v2961_v23, %v2960_v39  ;;  %v2925_v50 = vadd.f32 %v2924_v41, %v2912_v56  ;;  %v2900_v45 = vpop.f32.mrf.mxu0  ;;  %v2913_v34 = vpop.f32.mrf.mxu1  ;;  %v2975_v56 = vld [vmem:[%s5745_s7] sm:$0x3] }
 0x2d1   :  { %v2969_v47 = vmul.f32 %v2962_v43, %v5539_v25  ;;  %v2971_v48 = vmul.f32 %v5647_v42, %v5647_v42  ;;  %v5652_v61 = vadd.f32 %v2937_v9, %v2925_v50 }
 0x2d3   :  { %v2947_v28 = vrot.slane %v5652_v61, 4  ;;  %v2956_v53 = vmul.f32 %v5652_v61, %v5652_v61  ;;  %v2973_v37 = vsub.f32 %v2969_v47, %v2971_v48 }
 0x2d5   :  { %v2948_v2 = vadd.f32 %v2947_v28, %v5652_v61  ;;  %v2963_v49 = vrot.slane %v2956_v53, 4  ;;  %v2976_v63 = vadd.f32 0.8, %v2973_v37 }
 0x2d6   :  { %v2926_v44 = vpop.f32.mrf.mxu2  ;;  %v2939_v54 = vpop.f32.mrf.mxu3 }
 0x2d7   :  { %v2949_v55 = vrot.slane %v2948_v2, 2  ;;  %v2964_v31 = vadd.f32 %v2963_v49, %v2956_v53  ;;  %5223 = vrsqrt.f32 %v2976_v63  ;;  %vm2984_vm6 = vweird.f32 %v2976_v63 }
 0x2d9   :  { %v2950_v0 = vadd.f32 %v2949_v55, %v2948_v2  ;;  %v2965_v1 = vrot.slane %v2964_v31, 2 }
 0x2db   :  { %v2951_v3 = vrot.slane %v2950_v0, 1  ;;  %v2966_v19 = vadd.f32 %v2965_v1, %v2964_v31  ;;  %v5193_v1 = vld [vmem:[%s5750_s12 + $0x28] sm:$0xff] }
 0x2dd   :  { %v2952_v5 = vadd.f32 %v2951_v3, %v2950_v0  ;;  %v2967_v7 = vrot.slane %v2966_v19, 1  ;;  %v5224_v15 = vpop.eup %5223 }
 0x2de   :  { %v2979_v22 = vmul.f32 %v5224_v15, %v2976_v63  ;;  %vm2985_vm3 = vweird.f32 %v5224_v15 }
 0x2df   :  { %v2954_v8 = vmul.f32 %v2952_v5, %v5539_v25  ;;  %v2968_v10 = vadd.f32 %v2967_v7, %v2966_v19  ;;  %vm2986_vm7 = vmor %vm2984_vm6, %vm2985_vm3 }
 0x2e0   :  { %v2980_v60 = vmul.f32 %v5224_v15, %v2979_v22 }
 0x2e1   :  { %v2970_v13 = vmul.f32 %v2968_v10, %v5539_v25  ;;  %v2972_v14 = vmul.f32 %v2954_v8, %v2954_v8 }
 0x2e2   :  { %v2981_v32 = vmul.f32 0.5, %v2980_v60  ;;  %v5189_v60 = vld [vmem:[%s5750_s12 + $0x8] sm:$0xff] }
 0x2e3   :  { %v2974_v16 = vsub.f32 %v2970_v13, %v2972_v14  ;;  %v5191_v13 = vld [vmem:[%s5750_s12 + $0x18] sm:$0xff] }
 0x2e4   :  { %v2982_v30 = vsub.f32 1.5, %v2981_v32  ;;  %v5188_v32 = vld [vmem:[%s5750_s12] sm:$0xff] }
 0x2e5   :  { %v2977_v18 = vadd.f32 0.8, %v2974_v16 }
 0x2e6   :  { %v2983_v39 = vmul.f32 %v5224_v15, %v2982_v30 }
 0x2e7   :  { %5225 = vrsqrt.f32 %v2977_v18  ;;  %vm2994_vm4 = vweird.f32 %v2977_v18 }
 0x2e8   :  { %v2987_v9 = vsel %vm2986_vm7, %v5224_v15, %v2983_v39 }
 0x2ed   :  { %v5226_v27 = vpop.eup %5225 }
 0x2ee   :  { %v2989_v29 = vmul.f32 %v5226_v27, %v2977_v18  ;;  %vm2995_vm2 = vweird.f32 %v5226_v27 }
 0x2ef   :  { %vm2996_vm5 = vmor %vm2994_vm4, %vm2995_vm2 }
 0x2f0   :  { %v2990_v33 = vmul.f32 %v5226_v27, %v2989_v29 }
 0x2f2   :  { %v2991_v35 = vmul.f32 0.5, %v2990_v33 }
 0x2f4   :  { %v2992_v38 = vsub.f32 1.5, %v2991_v35 }
 0x2f6   :  { %v2993_v40 = vmul.f32 %v5226_v27, %v2992_v38 }
 0x2f8   :  { %v2997_v23 = vsel %vm2996_vm5, %v5226_v27, %v2993_v40  ;;  %v3204_v40 = vld [vmem:[%s5748_s10] sm:$0x1] }
 0x2f9   :  { %v3000_v41 = vrot.slane %v2997_v23, 7 }
 0x2fb   :  { %v3001_v43 = vsel %vm2390_vm8, %v2987_v9, %v3000_v41  ;;  %v3217_v9 = vld [vmem:[%s5749_s11] sm:$0x1] }
 0x2fc   :  { %v3003_v50 = vmul.f32 %v3001_v43, %v2975_v56 }
 0x2fe   :  { %v3006_v45 = vperm.slane %v3003_v50, 0  ;;  %v3007_v34 = vperm.slane %v3003_v50, 1 }
 0x300   :  { %v3011_v51 = vmul.f32 %v3007_v34, %v2954_v8  ;;  %v3010_v47 = vmul.f32 %v3006_v45, %v5647_v42  ;;  %v3019_v52 = vmul.f32 %v3007_v34, %v5652_v61  ;;  %v3018_v37 = vmul.f32 %v3006_v45, %v5640_v21  ;;  %v5195_v42 = vld [vmem:[%s5750_s12 + $0x38] sm:$0xff]  ;;  %v5194_v21 = vld [vmem:[%s5750_s12 + $0x30] sm:$0xff] }
 0x301   :  { %3295 = vmatpush.bf16.msra.mxu2 %v5195_v42 }
 0x302   :  { %v3014_v48 = vrot.slane %v3011_v51, 7 }
 0x304   :  { %v3015_v28 = vsel %vm2390_vm8, %v3010_v47, %v3014_v48 }
 0x305   :  { %v3017_v53 = vsub.f32 %v3004_v46, %v3015_v28  ;;  %3296 = vmatpush.bf16.msra.mxu2 %v5194_v21 }
 0x307   :  { %v3022_v36 = vperm.slane %v3017_v53, 1  ;;  %v3021_v2 = vperm.slane %v3017_v53, 0 }
 0x309   :  { %v3026_v49 = vadd.f32 %v3022_v36, %v3019_v52  ;;  %v3025_v44 = vadd.f32 %v3021_v2, %v3018_v37  ;;  %3297 = vmatpush.bf16.msra.mxu2 %v5193_v1 }
 0x30b   :  { %v3028_v54 = vmul.f32 0.2, %v3026_v49  ;;  %v3027_v55 = vmul.f32 0.2, %v3025_v44 }
 0x30d   :  { %v3029_v31 = vmax.f32 %v3025_v44, %v3027_v55  ;;  %v3030_v62 = vmax.f32 %v3026_v49, %v3028_v54  ;;  %3298 = vmatpush.bf16.msra.mxu2 %v5192_v20 }
 0x30f   :  { %v3031_v57 = vpack.c.bf16 %v3029_v31, %v3029_v31  ;;  %v3032_v63 = vpack.c.bf16 %v3030_v62, %v3030_v62  ;;  %v5199_v31 = vld [vmem:[%s5753_s15 + $0x18] sm:$0xff] }
 0x310   :  { %3398 = vmatpush.bf16.msra.mxu3 %v5199_v31 }
 0x311   :  { %3169 = vmatmul.bf16.vlgmr.msra.gmra.mxu0 %v3031_v57  ;;  %3182 = vmatmul.bf16.vlgmr.msra.gmra.mxu1 %v3032_v63 }
 0x312   :  { %3299 = vmatpush.bf16.msra.mxu2 %v5191_v13 }
 0x316   :  { %3300 = vmatpush.bf16.msra.mxu2 %v5190_v17 }
 0x31a   :  { %3301 = vmatpush.bf16.msra.mxu2 %v5189_v60 }
 0x31e   :  { %3302 = vmatpush.bf16.msra.mxu2 %v5188_v32 }
 0x38e   :  { %v3170_v61 = vpop.f32.mrf.mxu0  ;;  %v3183_v0 = vpop.f32.mrf.mxu1 }
 0x38f   :  { %v3184_v3 = vadd.f32 %v3183_v0, %v3170_v61  ;;  %v5198_v61 = vld [vmem:[%s5753_s15 + $0x10] sm:$0xff] }
 0x390   :  { %3399 = vmatpush.bf16.msra.mxu3 %v5198_v61 }
 0x391   :  { %v3187_v19 = vrot.slane %v3184_v3, 4  ;;  %v3194_v4 = vmul.f32 %v3184_v3, %v3184_v3 }
 0x393   :  { %v3188_v5 = vadd.f32 %v3187_v19, %v3184_v3  ;;  %v3195_v7 = vrot.slane %v3194_v4, 4 }
 0x395   :  { %v3189_v8 = vrot.slane %v3188_v5, 2  ;;  %v3196_v10 = vadd.f32 %v3195_v7, %v3194_v4  ;;  %v5197_v4 = vld [vmem:[%s5753_s15 + $0x8] sm:$0xff] }
 0x396   :  { %v3172_v58 = vpop.f32.mrf.mxu0  ;;  %v3185_v12 = vpop.f32.mrf.mxu1  ;;  %3400 = vmatpush.bf16.msra.mxu3 %v5197_v4 }
 0x397   :  { %v3190_v14 = vadd.f32 %v3189_v8, %v3188_v5  ;;  %v3197_v15 = vrot.slane %v3196_v10, 2  ;;  %v5196_v8 = vld [vmem:[%s5753_s15] sm:$0xff] }
 0x398   :  { %v5200_v58 = vld [vmem:[%s5755_s17] sm:$0xff] }
 0x399   :  { %v3191_v16 = vrot.slane %v3190_v14, 1  ;;  %v3198_v6 = vadd.f32 %v3197_v15, %v3196_v10 }
 0x39a   :  { %3401 = vmatpush.bf16.msra.mxu3 %v5196_v8 }
 0x39b   :  { %v3192_v18 = vadd.f32 %v3191_v16, %v3190_v14  ;;  %v3199_v22 = vrot.slane %v3198_v6, 1  ;;  %v3328_v16 = vld [vmem:[%s5751_s13] sm:$0x1] }
 0x39d   :  { %v3193_v24 = vmul.f32 %v3192_v18, %v5539_v25  ;;  %v3200_v59 = vadd.f32 %v3199_v22, %v3198_v6  ;;  %v3341_v22 = vld [vmem:[%s5752_s14] sm:$0x1] }
 0x39e   :  { %3432 = vmatpush.bf16.msrb.mxu3 %v5200_v58 }
 0x39f   :  { %v3201_v11 = vmul.f32 %v3200_v59, %v5539_v25  ;;  %v3202_v26 = vmul.f32 %v3193_v24, %v3193_v24 }
 0x3a1   :  { %v3203_v27 = vsub.f32 %v3201_v11, %v3202_v26 }
 0x3a3   :  { %v3205_v29 = vadd.f32 0.8, %v3203_v27 }
 0x3a5   :  { %5227 = vrsqrt.f32 %v3205_v29  ;;  %vm3212_vm9 = vweird.f32 %v3205_v29 }
 0x3ab   :  { %v5228_v33 = vpop.eup %5227 }
 0x3ac   :  { %v3207_v30 = vmul.f32 %v5228_v33, %v3205_v29  ;;  %vm3213_vm8 = vweird.f32 %v5228_v33 }
 0x3ad   :  { %vm3214_vm10 = vmor %vm3212_vm9, %vm3213_vm8 }
 0x3ae   :  { %v3208_v35 = vmul.f32 %v5228_v33, %v3207_v30  ;;  %v5211_v30 = vld [vmem:[%s5754_s16] ss:$0 sm:$0xff] }
 0x3b0   :  { %v3209_v38 = vmul.f32 0.5, %v3208_v35 }
 0x3b2   :  { %v3210_v39 = vsub.f32 1.5, %v3209_v38 }
 0x3b4   :  { %v3211_v23 = vmul.f32 %v5228_v33, %v3210_v39 }
 0x3b6   :  { %v3215_v56 = vsel %vm3214_vm10, %v5228_v33, %v3211_v23 }
 0x3b7   :  { %v3216_v41 = vmul.f32 %v3215_v56, %v3204_v40  ;;  %v5212_v56 = vld [vmem:[%s5756_s18] ss:$0 sm:$0xff] }
 0x3b9   :  { %v3218_v43 = vmul.f32 %v3216_v41, %v3193_v24  ;;  %v3221_v50 = vperm.slane %v3216_v41, 0 }
 0x3bb   :  { %v3219_v45 = vsub.f32 %v3217_v9, %v3218_v43  ;;  %v3223_v34 = vmul.f32 %v3221_v50, %v3184_v3 }
 0x3bd   :  { %v3225_v51 = vperm.slane %v3219_v45, 0 }
 0x3bf   :  { %v3227_v46 = vadd.f32 %v3225_v51, %v3223_v34 }
 0x3c1   :  { %v3228_v47 = vmul.f32 0.2, %v3227_v46 }
 0x3c3   :  { %v3229_v48 = vmax.f32 %v3227_v46, %v3228_v47 }
 0x3c5   :  { %v3230_v28 = vpack.c.bf16 %v3229_v48, %v3229_v48 }
 0x3c7   :  { %3303 = vmatmul.bf16.vlgmr.msra.gmra.mxu2 %v3230_v28 }
 0x44a   :  { %v3304_v53 = vpop.f32.mrf.mxu2 }
 0x44b   :  { %v3309_v52 = vsel %vm3308_vm11, %v3304_v53, 0.0  ;;  %v3317_v36 = vmul.f32 %v3304_v53, %v3304_v53 }
 0x44c   :  { %v3310_v37 = vrot.slane %v3309_v52, 4 }
 0x44d   :  { %v3318_v2 = vsel %vm3308_vm11, %v3317_v36, 0.0 }
 0x44e   :  { %v3311_v49 = vadd.f32 %v3310_v37, %v3309_v52  ;;  %v3319_v44 = vrot.slane %v3318_v2, 4 }
 0x450   :  { %v3312_v54 = vrot.slane %v3311_v49, 2  ;;  %v3320_v55 = vadd.f32 %v3319_v44, %v3318_v2 }
 0x452   :  { %v3313_v62 = vadd.f32 %v3312_v54, %v3311_v49  ;;  %v3321_v57 = vrot.slane %v3320_v55, 2  ;;  %v3306_v63 = vpop.f32.mrf.mxu2 }
 0x454   :  { %v3314_v42 = vrot.slane %v3313_v62, 1  ;;  %v3322_v21 = vadd.f32 %v3321_v57, %v3320_v55 }
 0x456   :  { %v3315_v0 = vadd.f32 %v3314_v42, %v3313_v62  ;;  %v3323_v1 = vrot.slane %v3322_v21, 1 }
 0x458   :  { %v3316_v3 = vmul.f32 %v3315_v0, %v5539_v25  ;;  %v3324_v19 = vadd.f32 %v3323_v1, %v3322_v21 }
 0x45a   :  { %v3325_v20 = vmul.f32 %v3324_v19, %v5539_v25  ;;  %v3326_v5 = vmul.f32 %v3316_v3, %v3316_v3 }
 0x45c   :  { %v3327_v7 = vsub.f32 %v3325_v20, %v3326_v5 }
 0x45e   :  { %v3329_v10 = vadd.f32 0.8, %v3327_v7 }
 0x460   :  { %5229 = vrsqrt.f32 %v3329_v10  ;;  %vm3336_vm13 = vweird.f32 %v3329_v10 }
 0x466   :  { %v5230_v12 = vpop.eup %5229 }
 0x467   :  { %v3331_v13 = vmul.f32 %v5230_v12, %v3329_v10  ;;  %vm3337_vm12 = vweird.f32 %v5230_v12 }
 0x468   :  { %vm3338_vm14 = vmor %vm3336_vm13, %vm3337_vm12 }
 0x469   :  { %v3332_v14 = vmul.f32 %v5230_v12, %v3331_v13 }
 0x46b   :  { %v3333_v15 = vmul.f32 0.5, %v3332_v14 }
 0x46d   :  { %v3334_v25 = vsub.f32 1.5, %v3333_v15 }
 0x46f   :  { %v3335_v6 = vmul.f32 %v5230_v12, %v3334_v25 }
 0x471   :  { %v3339_v17 = vsel %vm3338_vm14, %v5230_v12, %v3335_v6 }
 0x472   :  { %v3340_v18 = vmul.f32 %v3339_v17, %v3328_v16 }
 0x474   :  { %v3342_v24 = vmul.f32 %v3340_v18, %v3316_v3  ;;  %v3345_v59 = vperm.slane %v3340_v18, 0 }
 0x476   :  { %v3343_v60 = vsub.f32 %v3341_v22, %v3342_v24  ;;  %v3347_v11 = vmul.f32 %v3345_v59, %v3304_v53 }
 0x478   :  { %v3349_v26 = vperm.slane %v3343_v60, 0 }
 0x47a   :  { %v3351_v27 = vadd.f32 %v3349_v26, %v3347_v11 }
 0x47c   :  { %v3352_v32 = vmul.f32 0.2, %v3351_v27 }
 0x47e   :  { %v3353_v29 = vmax.f32 %v3351_v27, %v3352_v32 }
 0x480   :  { %v3354_v33 = vpack.c.bf16 %v3353_v29, %v3353_v29 }
 0x482   :  { %4846 = vmatmul.msk.bf16.vlgmr.msra.gmra.mxu3 %vm3308_vm11, %v3354_v33 }
 0x505   :  { %v3403_v35 = vpop.f32.mrf.mxu3 }
 0x506   :  { %v3404_v38 = vadd.f32 %v5211_v30, %v3403_v35 }
 0x508   :  { %5231 = vtanh.f32 %v3404_v38 }
 0x50d   :  { %v3405_v39 = vpop.f32.mrf.mxu3 }
 0x50e   :  { %v5232_v40 = vpop.eup %5231 }
 0x50f   :  { %v3408_v23 = vpack.c.bf16 %v5232_v40, %v5232_v40 }
 0x511   :  { %4851 = vmatmul.msk.bf16.vlgmr.msrb.gmra.mxu3 %vm3421_vm15, %v3408_v23 }
 0x594   :  { %v3434_v41 = vpop.f32.mrf.mxu3 }
 0x595   :  { %v3435_v9 = vadd.f32 %v5212_v56, %v3434_v41 }
 0x597   :  { %3439 = vst.msk [vmem:[%s5772_s0] sm:$0xff] %vm3438_vm0, %v3435_v9 }
 0x59c   :  { %v3436_v43 = vpop.f32.mrf.mxu3 }
 0x59d   :  { %3444 = vsyncpa [#allocation3], 1 }
 0x59e   :  { %3445 = vsyncpa [#allocation5], 1 }

</bundles_post_ra>
